<compile_context>
chip_gen: v6e
topology: v6e:2x2x1
jax: 0.10.0
libtpu: 0.0.40
codegen_flags: <defaults>
</compile_context>

<pallas_src>
import jax
import jax.numpy as jnp
import numpy as np
from jax.experimental import pallas as pl
from jax.experimental.pallas import tpu as pltpu

# Problem sizes (small, consistent with the module: Cin must be 64)
N, C_IN, H, W = 2, 64, 8, 8
C_OUT, KH, KW = 192, 5, 5
PAD = 2
POOL_K, POOL_S = 3, 2
H_OUT = (H - POOL_K) // POOL_S + 1          # 3
W_OUT = (W - POOL_K) // POOL_S + 1          # 3

C_PAD = 256                                 # lane-dense Cout (192 zero-padded to 256)
M = N * H * W                               # 128 GEMM rows (N folded into M)
HP, WP = H + 2 * PAD, W + 2 * PAD           # padded spatial extent: 12 x 12


# ---------------------------------------------------------------------------
# Fused kernel: conv (25 accumulated MXU matmuls) + bias + ReLU + 3x3/2 maxpool
# ---------------------------------------------------------------------------
def fused_conv_relu_pool_kernel(x_ref, w_ref, b_ref, o_ref, acc_ref):
    # x_ref:   (N, HP, WP, C_IN)        f32   zero-padded NHWC input
    # w_ref:   (KH*KW, C_IN, C_PAD)     bf16  weights, (kh,kw)-major, Cout zero-padded
    # b_ref:   (1, C_PAD)               f32   bias, Cout zero-padded
    # o_ref:   (H_OUT, W_OUT, N, C_PAD) f32   pooled output (wrapper converts to NCHW)
    # acc_ref: (N, H, W, C_PAD)         f32   VMEM conv accumulator (never leaves VMEM)
    acc_ref[...] = jnp.zeros_like(acc_ref)

    # Convolution as in-kernel im2col: one (M, C_IN) x (C_IN, C_PAD) MXU matmul per (kh, kw) tap.
    for kh in range(KH):
        for kw in range(KW):
            lhs = x_ref[:, kh:kh + H, kw:kw + W, :]            # (N, H, W, C_IN) f32
            lhs = lhs.reshape(M, C_IN).astype(jnp.bfloat16)    # (128, 64) bf16
            rhs = w_ref[kh * KW + kw]                          # (64, 256) bf16
            acc_ref[...] += jnp.dot(
                lhs, rhs, preferred_element_type=jnp.float32
            ).reshape(N, H, W, C_PAD)

    # Bias + ReLU epilogue in f32 on the f32 accumulator.
    acc_ref[...] = jnp.maximum(acc_ref[...] + b_ref[...], 0.0)

    # MaxPool2d(kernel_size=3, stride=2), VALID: row maxes over full-width slabs on the VPU,
    # then column maxes; every store is a lane-dense (N, 256) block.
    for oh in range(H_OUT):
        r = POOL_S * oh
        hm = jnp.maximum(
            jnp.maximum(acc_ref[:, r, :, :], acc_ref[:, r + 1, :, :]),
            acc_ref[:, r + 2, :, :])                           # (N, W, C_PAD)
        for ow in range(W_OUT):
            c = POOL_S * ow
            wm = jnp.maximum(jnp.maximum(hm[:, c, :], hm[:, c + 1, :]),
                             hm[:, c + 2, :])                  # (N, C_PAD)
            o_ref[oh, ow, :, :] = wm


# ---------------------------------------------------------------------------
# Wrapper: layout plumbing only (tiny arrays), all compute in the Pallas kernel
# ---------------------------------------------------------------------------
@jax.jit
def alexnet_features2(x_nchw, w_oihw, b):
    # NCHW -> NHWC, zero-pad spatial by 2 (Conv2d padding=2). Stays f32 into the kernel.
    x_nhwc = jnp.transpose(x_nchw, (0, 2, 3, 1)).astype(jnp.float32)
    xp = jnp.pad(x_nhwc, ((0, 0), (PAD, PAD), (PAD, PAD), (0, 0)))

    # OIHW -> (kh, kw, Cin, Cout) -> (KH*KW, Cin, Cout); zero-pad Cout 192->256; bf16 for the MXU.
    w_k = jnp.transpose(w_oihw, (2, 3, 1, 0)).reshape(KH * KW, C_IN, C_OUT)
    w_k = jnp.pad(w_k, ((0, 0), (0, 0), (0, C_PAD - C_OUT))).astype(jnp.bfloat16)
    b_p = jnp.pad(b, (0, C_PAD - C_OUT)).reshape(1, C_PAD).astype(jnp.float32)

    pooled = pl.pallas_call(
        fused_conv_relu_pool_kernel,
        out_shape=jax.ShapeDtypeStruct((H_OUT, W_OUT, N, C_PAD), jnp.float32),
        grid=(1,),
        in_specs=[
            pl.BlockSpec((N, HP, WP, C_IN), lambda i: (0, 0, 0, 0)),
            pl.BlockSpec((KH * KW, C_IN, C_PAD), lambda i: (0, 0, 0)),
            pl.BlockSpec((1, C_PAD), lambda i: (0, 0)),
        ],
        out_specs=pl.BlockSpec((H_OUT, W_OUT, N, C_PAD), lambda i: (0, 0, 0, 0)),
        scratch_shapes=[pltpu.VMEM((N, H, W, C_PAD), jnp.float32)],
        compiler_params=pltpu.CompilerParams(dimension_semantics=("arbitrary",)),
    )(xp, w_k, b_p)

    # (H_OUT, W_OUT, N, C_PAD) -> NCHW (N, C_OUT, H_OUT, W_OUT), drop the Cout padding.
    return jnp.transpose(pooled[..., :C_OUT], (2, 3, 0, 1))


# ---------------------------------------------------------------------------
# Pure-JAX reference (for correctness check)
# ---------------------------------------------------------------------------
def reference(x_nchw, w_oihw, b):
    y = jax.lax.conv_general_dilated(
        x_nchw, w_oihw, window_strides=(1, 1),
        padding=((PAD, PAD), (PAD, PAD)),
        dimension_numbers=("NCHW", "OIHW", "NCHW"))
    y = y + b[None, :, None, None]
    y = jnp.maximum(y, 0.0)
    y = jax.lax.reduce_window(
        y, -jnp.inf, jax.lax.max,
        window_dimensions=(1, 1, POOL_K, POOL_K),
        window_strides=(1, 1, POOL_S, POOL_S),
        padding="VALID")
    return y


if __name__ == "__main__":
    key = jax.random.PRNGKey(0)
    kx, kw, kb = jax.random.split(key, 3)

    # Deterministic synthetic parameters (shapes from nn.Conv2d(64, 192, 5, padding=2)).
    # TODO(synk): original module loads './cifar_AlexNet_features2.pth'; synthetic init instead.
    x = jax.random.normal(kx, (N, C_IN, H, W), dtype=jnp.float32)
    w = jax.random.normal(kw, (C_OUT, C_IN, KH, KW), dtype=jnp.float32) * 0.02
    b = jax.random.normal(kb, (C_OUT,), dtype=jnp.float32) * 0.1

    out = jax.block_until_ready(alexnet_features2(x, w, b))
    ref = jax.block_until_ready(reference(x, w, b))

    assert out.shape == (N, C_OUT, H_OUT, W_OUT), out.shape
    np.testing.assert_allclose(np.asarray(out), np.asarray(ref), rtol=1e-2, atol=1e-2)

    print("KERNEL_OK")
</pallas_src>

<mosaic_0001>
module attributes {stable_mosaic.version = 11 : i64} {
  func.func @fused_conv_relu_pool_kernel(%arg0: i32, %arg1: memref<2x12x12x64xf32, #tpu.memory_space<vmem>>, %arg2: memref<25x64x256xbf16, #tpu.memory_space<vmem>>, %arg3: memref<1x256xf32, #tpu.memory_space<vmem>>, %arg4: memref<3x3x2x256xf32, #tpu.memory_space<vmem>>, %arg5: memref<2x8x8x256xf32, #tpu.memory_space<vmem>>) attributes {dimension_semantics = [#tpu.dimension_semantics<arbitrary>], iteration_bounds = array<i64: 1>, scalar_prefetch = 0 : i64, scratch_operands = 1 : i64, tpu.core_type = #tpu.core_type<tc>, window_params = [{pipeline_mode = #tpu.pipeline_mode<synchronous>, transform_indices = @transform_0, window_bounds = array<i64: 2, 12, 12, 64>}, {pipeline_mode = #tpu.pipeline_mode<synchronous>, transform_indices = @transform_1, window_bounds = array<i64: 25, 64, 256>}, {pipeline_mode = #tpu.pipeline_mode<synchronous>, transform_indices = @transform_2, window_bounds = array<i64: 1, 256>}, {pipeline_mode = #tpu.pipeline_mode<synchronous>, transform_indices = @transform_3, window_bounds = array<i64: 3, 3, 2, 256>}]} {
    %cst = arith.constant 0.000000e+00 : f32
    %0 = vector.broadcast %cst : f32 to vector<2x8x8x256xf32>
    %c0 = arith.constant 0 : index
    %c0_0 = arith.constant 0 : index
    %c0_1 = arith.constant 0 : index
    %c0_2 = arith.constant 0 : index
    %1 = vector.load %arg5[%c0, %c0_0, %c0_1, %c0_2] : memref<2x8x8x256xf32, #tpu.memory_space<vmem>>, vector<2x8x8x256xf32>
    tpu.vector_store %arg5[%c0, %c0_0, %c0_1, %c0_2], %0 {strides = array<i32>} : memref<2x8x8x256xf32, #tpu.memory_space<vmem>>, vector<2x8x8x256xf32>,
    %c0_3 = arith.constant 0 : index
    %c0_4 = arith.constant 0 : index
    %c0_5 = arith.constant 0 : index
    %c0_6 = arith.constant 0 : index
    %2 = vector.load %arg1[%c0_3, %c0_4, %c0_5, %c0_6] : memref<2x12x12x64xf32, #tpu.memory_space<vmem>>, vector<2x8x8x64xf32>
    %3 = vector.shape_cast %2 : vector<2x8x8x64xf32> to vector<128x64xf32>
    %4 = arith.truncf %3 : vector<128x64xf32> to vector<128x64xbf16>
    %c0_7 = arith.constant 0 : index
    %c0_8 = arith.constant 0 : index
    %c0_9 = arith.constant 0 : index
    %5 = vector.load %arg2[%c0_7, %c0_8, %c0_9] : memref<25x64x256xbf16, #tpu.memory_space<vmem>>, vector<1x64x256xbf16>
    %6 = vector.shape_cast %5 : vector<1x64x256xbf16> to vector<64x256xbf16>
    %c0_10 = arith.constant 0 : index
    %c0_11 = arith.constant 0 : index
    %c0_12 = arith.constant 0 : index
    %c0_13 = arith.constant 0 : index
    %7 = vector.load %arg5[%c0_10, %c0_11, %c0_12, %c0_13] : memref<2x8x8x256xf32, #tpu.memory_space<vmem>>, vector<2x8x8x256xf32>
    %cst_14 = arith.constant dense<0.000000e+00> : vector<128x256xf32>
    %8 = tpu.matmul %4, %6, %cst_14 {dimension_numbers = #tpu.dot_dimension_numbers<[1], [0], [0], [1], [0, 0, 1, 1], [], []>} : vector<128x64xbf16>, vector<64x256xbf16>, vector<128x256xf32> -> vector<128x256xf32>
    %9 = vector.shape_cast %8 : vector<128x256xf32> to vector<2x8x8x256xf32>
    %10 = arith.addf %7, %9 : vector<2x8x8x256xf32>
    %c0_15 = arith.constant 0 : index
    %c0_16 = arith.constant 0 : index
    %c0_17 = arith.constant 0 : index
    %c0_18 = arith.constant 0 : index
    %11 = vector.load %arg5[%c0_15, %c0_16, %c0_17, %c0_18] : memref<2x8x8x256xf32, #tpu.memory_space<vmem>>, vector<2x8x8x256xf32>
    tpu.vector_store %arg5[%c0_15, %c0_16, %c0_17, %c0_18], %10 {strides = array<i32>} : memref<2x8x8x256xf32, #tpu.memory_space<vmem>>, vector<2x8x8x256xf32>,
    %c0_19 = arith.constant 0 : index
    %c0_20 = arith.constant 0 : index
    %c1 = arith.constant 1 : index
    %c0_21 = arith.constant 0 : index
    %12 = vector.load %arg1[%c0_19, %c0_20, %c1, %c0_21] : memref<2x12x12x64xf32, #tpu.memory_space<vmem>>, vector<2x8x8x64xf32>
    %13 = vector.shape_cast %12 : vector<2x8x8x64xf32> to vector<128x64xf32>
    %14 = arith.truncf %13 : vector<128x64xf32> to vector<128x64xbf16>
    %c1_22 = arith.constant 1 : index
    %c0_23 = arith.constant 0 : index
    %c0_24 = arith.constant 0 : index
    %15 = vector.load %arg2[%c1_22, %c0_23, %c0_24] : memref<25x64x256xbf16, #tpu.memory_space<vmem>>, vector<1x64x256xbf16>
    %16 = vector.shape_cast %15 : vector<1x64x256xbf16> to vector<64x256xbf16>
    %c0_25 = arith.constant 0 : index
    %c0_26 = arith.constant 0 : index
    %c0_27 = arith.constant 0 : index
    %c0_28 = arith.constant 0 : index
    %17 = vector.load %arg5[%c0_25, %c0_26, %c0_27, %c0_28] : memref<2x8x8x256xf32, #tpu.memory_space<vmem>>, vector<2x8x8x256xf32>
    %cst_29 = arith.constant dense<0.000000e+00> : vector<128x256xf32>
    %18 = tpu.matmul %14, %16, %cst_29 {dimension_numbers = #tpu.dot_dimension_numbers<[1], [0], [0], [1], [0, 0, 1, 1], [], []>} : vector<128x64xbf16>, vector<64x256xbf16>, vector<128x256xf32> -> vector<128x256xf32>
    %19 = vector.shape_cast %18 : vector<128x256xf32> to vector<2x8x8x256xf32>
    %20 = arith.addf %17, %19 : vector<2x8x8x256xf32>
    %c0_30 = arith.constant 0 : index
    %c0_31 = arith.constant 0 : index
    %c0_32 = arith.constant 0 : index
    %c0_33 = arith.constant 0 : index
    %21 = vector.load %arg5[%c0_30, %c0_31, %c0_32, %c0_33] : memref<2x8x8x256xf32, #tpu.memory_space<vmem>>, vector<2x8x8x256xf32>
    tpu.vector_store %arg5[%c0_30, %c0_31, %c0_32, %c0_33], %20 {strides = array<i32>} : memref<2x8x8x256xf32, #tpu.memory_space<vmem>>, vector<2x8x8x256xf32>,
    %c0_34 = arith.constant 0 : index
    %c0_35 = arith.constant 0 : index
    %c2 = arith.constant 2 : index
    %c0_36 = arith.constant 0 : index
    %22 = vector.load %arg1[%c0_34, %c0_35, %c2, %c0_36] : memref<2x12x12x64xf32, #tpu.memory_space<vmem>>, vector<2x8x8x64xf32>
    %23 = vector.shape_cast %22 : vector<2x8x8x64xf32> to vector<128x64xf32>
    %24 = arith.truncf %23 : vector<128x64xf32> to vector<128x64xbf16>
    %c2_37 = arith.constant 2 : index
    %c0_38 = arith.constant 0 : index
    %c0_39 = arith.constant 0 : index
    %25 = vector.load %arg2[%c2_37, %c0_38, %c0_39] : memref<25x64x256xbf16, #tpu.memory_space<vmem>>, vector<1x64x256xbf16>
    %26 = vector.shape_cast %25 : vector<1x64x256xbf16> to vector<64x256xbf16>
    %c0_40 = arith.constant 0 : index
    %c0_41 = arith.constant 0 : index
    %c0_42 = arith.constant 0 : index
    %c0_43 = arith.constant 0 : index
    %27 = vector.load %arg5[%c0_40, %c0_41, %c0_42, %c0_43] : memref<2x8x8x256xf32, #tpu.memory_space<vmem>>, vector<2x8x8x256xf32>
    %cst_44 = arith.constant dense<0.000000e+00> : vector<128x256xf32>
    %28 = tpu.matmul %24, %26, %cst_44 {dimension_numbers = #tpu.dot_dimension_numbers<[1], [0], [0], [1], [0, 0, 1, 1], [], []>} : vector<128x64xbf16>, vector<64x256xbf16>, vector<128x256xf32> -> vector<128x256xf32>
    %29 = vector.shape_cast %28 : vector<128x256xf32> to vector<2x8x8x256xf32>
    %30 = arith.addf %27, %29 : vector<2x8x8x256xf32>
    %c0_45 = arith.constant 0 : index
    %c0_46 = arith.constant 0 : index
    %c0_47 = arith.constant 0 : index
    %c0_48 = arith.constant 0 : index
    %31 = vector.load %arg5[%c0_45, %c0_46, %c0_47, %c0_48] : memref<2x8x8x256xf32, #tpu.memory_space<vmem>>, vector<2x8x8x256xf32>
    tpu.vector_store %arg5[%c0_45, %c0_46, %c0_47, %c0_48], %30 {strides = array<i32>} : memref<2x8x8x256xf32, #tpu.memory_space<vmem>>, vector<2x8x8x256xf32>,
    %c0_49 = arith.constant 0 : index
    %c0_50 = arith.constant 0 : index
    %c3 = arith.constant 3 : index
    %c0_51 = arith.constant 0 : index
    %32 = vector.load %arg1[%c0_49, %c0_50, %c3, %c0_51] : memref<2x12x12x64xf32, #tpu.memory_space<vmem>>, vector<2x8x8x64xf32>
    %33 = vector.shape_cast %32 : vector<2x8x8x64xf32> to vector<128x64xf32>
    %34 = arith.truncf %33 : vector<128x64xf32> to vector<128x64xbf16>
    %c3_52 = arith.constant 3 : index
    %c0_53 = arith.constant 0 : index
    %c0_54 = arith.constant 0 : index
    %35 = vector.load %arg2[%c3_52, %c0_53, %c0_54] : memref<25x64x256xbf16, #tpu.memory_space<vmem>>, vector<1x64x256xbf16>
    %36 = vector.shape_cast %35 : vector<1x64x256xbf16> to vector<64x256xbf16>
    %c0_55 = arith.constant 0 : index
    %c0_56 = arith.constant 0 : index
    %c0_57 = arith.constant 0 : index
    %c0_58 = arith.constant 0 : index
    %37 = vector.load %arg5[%c0_55, %c0_56, %c0_57, %c0_58] : memref<2x8x8x256xf32, #tpu.memory_space<vmem>>, vector<2x8x8x256xf32>
    %cst_59 = arith.constant dense<0.000000e+00> : vector<128x256xf32>
    %38 = tpu.matmul %34, %36, %cst_59 {dimension_numbers = #tpu.dot_dimension_numbers<[1], [0], [0], [1], [0, 0, 1, 1], [], []>} : vector<128x64xbf16>, vector<64x256xbf16>, vector<128x256xf32> -> vector<128x256xf32>
    %39 = vector.shape_cast %38 : vector<128x256xf32> to vector<2x8x8x256xf32>
    %40 = arith.addf %37, %39 : vector<2x8x8x256xf32>
    %c0_60 = arith.constant 0 : index
    %c0_61 = arith.constant 0 : index
    %c0_62 = arith.constant 0 : index
    %c0_63 = arith.constant 0 : index
    %41 = vector.load %arg5[%c0_60, %c0_61, %c0_62, %c0_63] : memref<2x8x8x256xf32, #tpu.memory_space<vmem>>, vector<2x8x8x256xf32>
    tpu.vector_store %arg5[%c0_60, %c0_61, %c0_62, %c0_63], %40 {strides = array<i32>} : memref<2x8x8x256xf32, #tpu.memory_space<vmem>>, vector<2x8x8x256xf32>,
    %c0_64 = arith.constant 0 : index
    %c0_65 = arith.constant 0 : index
    %c4 = arith.constant 4 : index
    %c0_66 = arith.constant 0 : index
    %42 = vector.load %arg1[%c0_64, %c0_65, %c4, %c0_66] : memref<2x12x12x64xf32, #tpu.memory_space<vmem>>, vector<2x8x8x64xf32>
    %43 = vector.shape_cast %42 : vector<2x8x8x64xf32> to vector<128x64xf32>
    %44 = arith.truncf %43 : vector<128x64xf32> to vector<128x64xbf16>
    %c4_67 = arith.constant 4 : index
    %c0_68 = arith.constant 0 : index
    %c0_69 = arith.constant 0 : index
    %45 = vector.load %arg2[%c4_67, %c0_68, %c0_69] : memref<25x64x256xbf16, #tpu.memory_space<vmem>>, vector<1x64x256xbf16>
    %46 = vector.shape_cast %45 : vector<1x64x256xbf16> to vector<64x256xbf16>
    %c0_70 = arith.constant 0 : index
    %c0_71 = arith.constant 0 : index
    %c0_72 = arith.constant 0 : index
    %c0_73 = arith.constant 0 : index
    %47 = vector.load %arg5[%c0_70, %c0_71, %c0_72, %c0_73] : memref<2x8x8x256xf32, #tpu.memory_space<vmem>>, vector<2x8x8x256xf32>
    %cst_74 = arith.constant dense<0.000000e+00> : vector<128x256xf32>
    %48 = tpu.matmul %44, %46, %cst_74 {dimension_numbers = #tpu.dot_dimension_numbers<[1], [0], [0], [1], [0, 0, 1, 1], [], []>} : vector<128x64xbf16>, vector<64x256xbf16>, vector<128x256xf32> -> vector<128x256xf32>
    %49 = vector.shape_cast %48 : vector<128x256xf32> to vector<2x8x8x256xf32>
    %50 = arith.addf %47, %49 : vector<2x8x8x256xf32>
    %c0_75 = arith.constant 0 : index
    %c0_76 = arith.constant 0 : index
    %c0_77 = arith.constant 0 : index
    %c0_78 = arith.constant 0 : index
    %51 = vector.load %arg5[%c0_75, %c0_76, %c0_77, %c0_78] : memref<2x8x8x256xf32, #tpu.memory_space<vmem>>, vector<2x8x8x256xf32>
    tpu.vector_store %arg5[%c0_75, %c0_76, %c0_77, %c0_78], %50 {strides = array<i32>} : memref<2x8x8x256xf32, #tpu.memory_space<vmem>>, vector<2x8x8x256xf32>,
    %c0_79 = arith.constant 0 : index
    %c1_80 = arith.constant 1 : index
    %c0_81 = arith.constant 0 : index
    %c0_82 = arith.constant 0 : index
    %52 = vector.load %arg1[%c0_79, %c1_80, %c0_81, %c0_82] : memref<2x12x12x64xf32, #tpu.memory_space<vmem>>, vector<2x8x8x64xf32>
    %53 = vector.shape_cast %52 : vector<2x8x8x64xf32> to vector<128x64xf32>
    %54 = arith.truncf %53 : vector<128x64xf32> to vector<128x64xbf16>
    %c5 = arith.constant 5 : index
    %c0_83 = arith.constant 0 : index
    %c0_84 = arith.constant 0 : index
    %55 = vector.load %arg2[%c5, %c0_83, %c0_84] : memref<25x64x256xbf16, #tpu.memory_space<vmem>>, vector<1x64x256xbf16>
    %56 = vector.shape_cast %55 : vector<1x64x256xbf16> to vector<64x256xbf16>
    %c0_85 = arith.constant 0 : index
    %c0_86 = arith.constant 0 : index
    %c0_87 = arith.constant 0 : index
    %c0_88 = arith.constant 0 : index
    %57 = vector.load %arg5[%c0_85, %c0_86, %c0_87, %c0_88] : memref<2x8x8x256xf32, #tpu.memory_space<vmem>>, vector<2x8x8x256xf32>
    %cst_89 = arith.constant dense<0.000000e+00> : vector<128x256xf32>
    %58 = tpu.matmul %54, %56, %cst_89 {dimension_numbers = #tpu.dot_dimension_numbers<[1], [0], [0], [1], [0, 0, 1, 1], [], []>} : vector<128x64xbf16>, vector<64x256xbf16>, vector<128x256xf32> -> vector<128x256xf32>
    %59 = vector.shape_cast %58 : vector<128x256xf32> to vector<2x8x8x256xf32>
    %60 = arith.addf %57, %59 : vector<2x8x8x256xf32>
    %c0_90 = arith.constant 0 : index
    %c0_91 = arith.constant 0 : index
    %c0_92 = arith.constant 0 : index
    %c0_93 = arith.constant 0 : index
    %61 = vector.load %arg5[%c0_90, %c0_91, %c0_92, %c0_93] : memref<2x8x8x256xf32, #tpu.memory_space<vmem>>, vector<2x8x8x256xf32>
    tpu.vector_store %arg5[%c0_90, %c0_91, %c0_92, %c0_93], %60 {strides = array<i32>} : memref<2x8x8x256xf32, #tpu.memory_space<vmem>>, vector<2x8x8x256xf32>,
    %c0_94 = arith.constant 0 : index
    %c1_95 = arith.constant 1 : index
    %c1_96 = arith.constant 1 : index
    %c0_97 = arith.constant 0 : index
    %62 = vector.load %arg1[%c0_94, %c1_95, %c1_96, %c0_97] : memref<2x12x12x64xf32, #tpu.memory_space<vmem>>, vector<2x8x8x64xf32>
    %63 = vector.shape_cast %62 : vector<2x8x8x64xf32> to vector<128x64xf32>
    %64 = arith.truncf %63 : vector<128x64xf32> to vector<128x64xbf16>
    %c6 = arith.constant 6 : index
    %c0_98 = arith.constant 0 : index
    %c0_99 = arith.constant 0 : index
    %65 = vector.load %arg2[%c6, %c0_98, %c0_99] : memref<25x64x256xbf16, #tpu.memory_space<vmem>>, vector<1x64x256xbf16>
    %66 = vector.shape_cast %65 : vector<1x64x256xbf16> to vector<64x256xbf16>
    %c0_100 = arith.constant 0 : index
    %c0_101 = arith.constant 0 : index
    %c0_102 = arith.constant 0 : index
    %c0_103 = arith.constant 0 : index
    %67 = vector.load %arg5[%c0_100, %c0_101, %c0_102, %c0_103] : memref<2x8x8x256xf32, #tpu.memory_space<vmem>>, vector<2x8x8x256xf32>
    %cst_104 = arith.constant dense<0.000000e+00> : vector<128x256xf32>
    %68 = tpu.matmul %64, %66, %cst_104 {dimension_numbers = #tpu.dot_dimension_numbers<[1], [0], [0], [1], [0, 0, 1, 1], [], []>} : vector<128x64xbf16>, vector<64x256xbf16>, vector<128x256xf32> -> vector<128x256xf32>
    %69 = vector.shape_cast %68 : vector<128x256xf32> to vector<2x8x8x256xf32>
    %70 = arith.addf %67, %69 : vector<2x8x8x256xf32>
    %c0_105 = arith.constant 0 : index
    %c0_106 = arith.constant 0 : index
    %c0_107 = arith.constant 0 : index
    %c0_108 = arith.constant 0 : index
    %71 = vector.load %arg5[%c0_105, %c0_106, %c0_107, %c0_108] : memref<2x8x8x256xf32, #tpu.memory_space<vmem>>, vector<2x8x8x256xf32>
    tpu.vector_store %arg5[%c0_105, %c0_106, %c0_107, %c0_108], %70 {strides = array<i32>} : memref<2x8x8x256xf32, #tpu.memory_space<vmem>>, vector<2x8x8x256xf32>,
    %c0_109 = arith.constant 0 : index
    %c1_110 = arith.constant 1 : index
    %c2_111 = arith.constant 2 : index
    %c0_112 = arith.constant 0 : index
    %72 = vector.load %arg1[%c0_109, %c1_110, %c2_111, %c0_112] : memref<2x12x12x64xf32, #tpu.memory_space<vmem>>, vector<2x8x8x64xf32>
    %73 = vector.shape_cast %72 : vector<2x8x8x64xf32> to vector<128x64xf32>
    %74 = arith.truncf %73 : vector<128x64xf32> to vector<128x64xbf16>
    %c7 = arith.constant 7 : index
    %c0_113 = arith.constant 0 : index
    %c0_114 = arith.constant 0 : index
    %75 = vector.load %arg2[%c7, %c0_113, %c0_114] : memref<25x64x256xbf16, #tpu.memory_space<vmem>>, vector<1x64x256xbf16>
    %76 = vector.shape_cast %75 : vector<1x64x256xbf16> to vector<64x256xbf16>
    %c0_115 = arith.constant 0 : index
    %c0_116 = arith.constant 0 : index
    %c0_117 = arith.constant 0 : index
    %c0_118 = arith.constant 0 : index
    %77 = vector.load %arg5[%c0_115, %c0_116, %c0_117, %c0_118] : memref<2x8x8x256xf32, #tpu.memory_space<vmem>>, vector<2x8x8x256xf32>
    %cst_119 = arith.constant dense<0.000000e+00> : vector<128x256xf32>
    %78 = tpu.matmul %74, %76, %cst_119 {dimension_numbers = #tpu.dot_dimension_numbers<[1], [0], [0], [1], [0, 0, 1, 1], [], []>} : vector<128x64xbf16>, vector<64x256xbf16>, vector<128x256xf32> -> vector<128x256xf32>
    %79 = vector.shape_cast %78 : vector<128x256xf32> to vector<2x8x8x256xf32>
    %80 = arith.addf %77, %79 : vector<2x8x8x256xf32>
    %c0_120 = arith.constant 0 : index
    %c0_121 = arith.constant 0 : index
    %c0_122 = arith.constant 0 : index
    %c0_123 = arith.constant 0 : index
    %81 = vector.load %arg5[%c0_120, %c0_121, %c0_122, %c0_123] : memref<2x8x8x256xf32, #tpu.memory_space<vmem>>, vector<2x8x8x256xf32>
    tpu.vector_store %arg5[%c0_120, %c0_121, %c0_122, %c0_123], %80 {strides = array<i32>} : memref<2x8x8x256xf32, #tpu.memory_space<vmem>>, vector<2x8x8x256xf32>,
    %c0_124 = arith.constant 0 : index
    %c1_125 = arith.constant 1 : index
    %c3_126 = arith.constant 3 : index
    %c0_127 = arith.constant 0 : index
    %82 = vector.load %arg1[%c0_124, %c1_125, %c3_126, %c0_127] : memref<2x12x12x64xf32, #tpu.memory_space<vmem>>, vector<2x8x8x64xf32>
    %83 = vector.shape_cast %82 : vector<2x8x8x64xf32> to vector<128x64xf32>
    %84 = arith.truncf %83 : vector<128x64xf32> to vector<128x64xbf16>
    %c8 = arith.constant 8 : index
    %c0_128 = arith.constant 0 : index
    %c0_129 = arith.constant 0 : index
    %85 = vector.load %arg2[%c8, %c0_128, %c0_129] : memref<25x64x256xbf16, #tpu.memory_space<vmem>>, vector<1x64x256xbf16>
    %86 = vector.shape_cast %85 : vector<1x64x256xbf16> to vector<64x256xbf16>
    %c0_130 = arith.constant 0 : index
    %c0_131 = arith.constant 0 : index
    %c0_132 = arith.constant 0 : index
    %c0_133 = arith.constant 0 : index
    %87 = vector.load %arg5[%c0_130, %c0_131, %c0_132, %c0_133] : memref<2x8x8x256xf32, #tpu.memory_space<vmem>>, vector<2x8x8x256xf32>
    %cst_134 = arith.constant dense<0.000000e+00> : vector<128x256xf32>
    %88 = tpu.matmul %84, %86, %cst_134 {dimension_numbers = #tpu.dot_dimension_numbers<[1], [0], [0], [1], [0, 0, 1, 1], [], []>} : vector<128x64xbf16>, vector<64x256xbf16>, vector<128x256xf32> -> vector<128x256xf32>
    %89 = vector.shape_cast %88 : vector<128x256xf32> to vector<2x8x8x256xf32>
    %90 = arith.addf %87, %89 : vector<2x8x8x256xf32>
    %c0_135 = arith.constant 0 : index
    %c0_136 = arith.constant 0 : index
    %c0_137 = arith.constant 0 : index
    %c0_138 = arith.constant 0 : index
    %91 = vector.load %arg5[%c0_135, %c0_136, %c0_137, %c0_138] : memref<2x8x8x256xf32, #tpu.memory_space<vmem>>, vector<2x8x8x256xf32>
    tpu.vector_store %arg5[%c0_135, %c0_136, %c0_137, %c0_138], %90 {strides = array<i32>} : memref<2x8x8x256xf32, #tpu.memory_space<vmem>>, vector<2x8x8x256xf32>,
    %c0_139 = arith.constant 0 : index
    %c1_140 = arith.constant 1 : index
    %c4_141 = arith.constant 4 : index
    %c0_142 = arith.constant 0 : index
    %92 = vector.load %arg1[%c0_139, %c1_140, %c4_141, %c0_142] : memref<2x12x12x64xf32, #tpu.memory_space<vmem>>, vector<2x8x8x64xf32>
    %93 = vector.shape_cast %92 : vector<2x8x8x64xf32> to vector<128x64xf32>
    %94 = arith.truncf %93 : vector<128x64xf32> to vector<128x64xbf16>
    %c9 = arith.constant 9 : index
    %c0_143 = arith.constant 0 : index
    %c0_144 = arith.constant 0 : index
    %95 = vector.load %arg2[%c9, %c0_143, %c0_144] : memref<25x64x256xbf16, #tpu.memory_space<vmem>>, vector<1x64x256xbf16>
    %96 = vector.shape_cast %95 : vector<1x64x256xbf16> to vector<64x256xbf16>
    %c0_145 = arith.constant 0 : index
    %c0_146 = arith.constant 0 : index
    %c0_147 = arith.constant 0 : index
    %c0_148 = arith.constant 0 : index
    %97 = vector.load %arg5[%c0_145, %c0_146, %c0_147, %c0_148] : memref<2x8x8x256xf32, #tpu.memory_space<vmem>>, vector<2x8x8x256xf32>
    %cst_149 = arith.constant dense<0.000000e+00> : vector<128x256xf32>
    %98 = tpu.matmul %94, %96, %cst_149 {dimension_numbers = #tpu.dot_dimension_numbers<[1], [0], [0], [1], [0, 0, 1, 1], [], []>} : vector<128x64xbf16>, vector<64x256xbf16>, vector<128x256xf32> -> vector<128x256xf32>
    %99 = vector.shape_cast %98 : vector<128x256xf32> to vector<2x8x8x256xf32>
    %100 = arith.addf %97, %99 : vector<2x8x8x256xf32>
    %c0_150 = arith.constant 0 : index
    %c0_151 = arith.constant 0 : index
    %c0_152 = arith.constant 0 : index
    %c0_153 = arith.constant 0 : index
    %101 = vector.load %arg5[%c0_150, %c0_151, %c0_152, %c0_153] : memref<2x8x8x256xf32, #tpu.memory_space<vmem>>, vector<2x8x8x256xf32>
    tpu.vector_store %arg5[%c0_150, %c0_151, %c0_152, %c0_153], %100 {strides = array<i32>} : memref<2x8x8x256xf32, #tpu.memory_space<vmem>>, vector<2x8x8x256xf32>,
    %c0_154 = arith.constant 0 : index
    %c2_155 = arith.constant 2 : index
    %c0_156 = arith.constant 0 : index
    %c0_157 = arith.constant 0 : index
    %102 = vector.load %arg1[%c0_154, %c2_155, %c0_156, %c0_157] : memref<2x12x12x64xf32, #tpu.memory_space<vmem>>, vector<2x8x8x64xf32>
    %103 = vector.shape_cast %102 : vector<2x8x8x64xf32> to vector<128x64xf32>
    %104 = arith.truncf %103 : vector<128x64xf32> to vector<128x64xbf16>
    %c10 = arith.constant 10 : index
    %c0_158 = arith.constant 0 : index
    %c0_159 = arith.constant 0 : index
    %105 = vector.load %arg2[%c10, %c0_158, %c0_159] : memref<25x64x256xbf16, #tpu.memory_space<vmem>>, vector<1x64x256xbf16>
    %106 = vector.shape_cast %105 : vector<1x64x256xbf16> to vector<64x256xbf16>
    %c0_160 = arith.constant 0 : index
    %c0_161 = arith.constant 0 : index
    %c0_162 = arith.constant 0 : index
    %c0_163 = arith.constant 0 : index
    %107 = vector.load %arg5[%c0_160, %c0_161, %c0_162, %c0_163] : memref<2x8x8x256xf32, #tpu.memory_space<vmem>>, vector<2x8x8x256xf32>
    %cst_164 = arith.constant dense<0.000000e+00> : vector<128x256xf32>
    %108 = tpu.matmul %104, %106, %cst_164 {dimension_numbers = #tpu.dot_dimension_numbers<[1], [0], [0], [1], [0, 0, 1, 1], [], []>} : vector<128x64xbf16>, vector<64x256xbf16>, vector<128x256xf32> -> vector<128x256xf32>
    %109 = vector.shape_cast %108 : vector<128x256xf32> to vector<2x8x8x256xf32>
    %110 = arith.addf %107, %109 : vector<2x8x8x256xf32>
    %c0_165 = arith.constant 0 : index
    %c0_166 = arith.constant 0 : index
    %c0_167 = arith.constant 0 : index
    %c0_168 = arith.constant 0 : index
    %111 = vector.load %arg5[%c0_165, %c0_166, %c0_167, %c0_168] : memref<2x8x8x256xf32, #tpu.memory_space<vmem>>, vector<2x8x8x256xf32>
    tpu.vector_store %arg5[%c0_165, %c0_166, %c0_167, %c0_168], %110 {strides = array<i32>} : memref<2x8x8x256xf32, #tpu.memory_space<vmem>>, vector<2x8x8x256xf32>,
    %c0_169 = arith.constant 0 : index
    %c2_170 = arith.constant 2 : index
    %c1_171 = arith.constant 1 : index
    %c0_172 = arith.constant 0 : index
    %112 = vector.load %arg1[%c0_169, %c2_170, %c1_171, %c0_172] : memref<2x12x12x64xf32, #tpu.memory_space<vmem>>, vector<2x8x8x64xf32>
    %113 = vector.shape_cast %112 : vector<2x8x8x64xf32> to vector<128x64xf32>
    %114 = arith.truncf %113 : vector<128x64xf32> to vector<128x64xbf16>
    %c11 = arith.constant 11 : index
    %c0_173 = arith.constant 0 : index
    %c0_174 = arith.constant 0 : index
    %115 = vector.load %arg2[%c11, %c0_173, %c0_174] : memref<25x64x256xbf16, #tpu.memory_space<vmem>>, vector<1x64x256xbf16>
    %116 = vector.shape_cast %115 : vector<1x64x256xbf16> to vector<64x256xbf16>
    %c0_175 = arith.constant 0 : index
    %c0_176 = arith.constant 0 : index
    %c0_177 = arith.constant 0 : index
    %c0_178 = arith.constant 0 : index
    %117 = vector.load %arg5[%c0_175, %c0_176, %c0_177, %c0_178] : memref<2x8x8x256xf32, #tpu.memory_space<vmem>>, vector<2x8x8x256xf32>
    %cst_179 = arith.constant dense<0.000000e+00> : vector<128x256xf32>
    %118 = tpu.matmul %114, %116, %cst_179 {dimension_numbers = #tpu.dot_dimension_numbers<[1], [0], [0], [1], [0, 0, 1, 1], [], []>} : vector<128x64xbf16>, vector<64x256xbf16>, vector<128x256xf32> -> vector<128x256xf32>
    %119 = vector.shape_cast %118 : vector<128x256xf32> to vector<2x8x8x256xf32>
    %120 = arith.addf %117, %119 : vector<2x8x8x256xf32>
    %c0_180 = arith.constant 0 : index
    %c0_181 = arith.constant 0 : index
    %c0_182 = arith.constant 0 : index
    %c0_183 = arith.constant 0 : index
    %121 = vector.load %arg5[%c0_180, %c0_181, %c0_182, %c0_183] : memref<2x8x8x256xf32, #tpu.memory_space<vmem>>, vector<2x8x8x256xf32>
    tpu.vector_store %arg5[%c0_180, %c0_181, %c0_182, %c0_183], %120 {strides = array<i32>} : memref<2x8x8x256xf32, #tpu.memory_space<vmem>>, vector<2x8x8x256xf32>,
    %c0_184 = arith.constant 0 : index
    %c2_185 = arith.constant 2 : index
    %c2_186 = arith.constant 2 : index
    %c0_187 = arith.constant 0 : index
    %122 = vector.load %arg1[%c0_184, %c2_185, %c2_186, %c0_187] : memref<2x12x12x64xf32, #tpu.memory_space<vmem>>, vector<2x8x8x64xf32>
    %123 = vector.shape_cast %122 : vector<2x8x8x64xf32> to vector<128x64xf32>
    %124 = arith.truncf %123 : vector<128x64xf32> to vector<128x64xbf16>
    %c12 = arith.constant 12 : index
    %c0_188 = arith.constant 0 : index
    %c0_189 = arith.constant 0 : index
    %125 = vector.load %arg2[%c12, %c0_188, %c0_189] : memref<25x64x256xbf16, #tpu.memory_space<vmem>>, vector<1x64x256xbf16>
    %126 = vector.shape_cast %125 : vector<1x64x256xbf16> to vector<64x256xbf16>
    %c0_190 = arith.constant 0 : index
    %c0_191 = arith.constant 0 : index
    %c0_192 = arith.constant 0 : index
    %c0_193 = arith.constant 0 : index
    %127 = vector.load %arg5[%c0_190, %c0_191, %c0_192, %c0_193] : memref<2x8x8x256xf32, #tpu.memory_space<vmem>>, vector<2x8x8x256xf32>
    %cst_194 = arith.constant dense<0.000000e+00> : vector<128x256xf32>
    %128 = tpu.matmul %124, %126, %cst_194 {dimension_numbers = #tpu.dot_dimension_numbers<[1], [0], [0], [1], [0, 0, 1, 1], [], []>} : vector<128x64xbf16>, vector<64x256xbf16>, vector<128x256xf32> -> vector<128x256xf32>
    %129 = vector.shape_cast %128 : vector<128x256xf32> to vector<2x8x8x256xf32>
    %130 = arith.addf %127, %129 : vector<2x8x8x256xf32>
    %c0_195 = arith.constant 0 : index
    %c0_196 = arith.constant 0 : index
    %c0_197 = arith.constant 0 : index
    %c0_198 = arith.constant 0 : index
    %131 = vector.load %arg5[%c0_195, %c0_196, %c0_197, %c0_198] : memref<2x8x8x256xf32, #tpu.memory_space<vmem>>, vector<2x8x8x256xf32>
    tpu.vector_store %arg5[%c0_195, %c0_196, %c0_197, %c0_198], %130 {strides = array<i32>} : memref<2x8x8x256xf32, #tpu.memory_space<vmem>>, vector<2x8x8x256xf32>,
    %c0_199 = arith.constant 0 : index
    %c2_200 = arith.constant 2 : index
    %c3_201 = arith.constant 3 : index
    %c0_202 = arith.constant 0 : index
    %132 = vector.load %arg1[%c0_199, %c2_200, %c3_201, %c0_202] : memref<2x12x12x64xf32, #tpu.memory_space<vmem>>, vector<2x8x8x64xf32>
    %133 = vector.shape_cast %132 : vector<2x8x8x64xf32> to vector<128x64xf32>
    %134 = arith.truncf %133 : vector<128x64xf32> to vector<128x64xbf16>
    %c13 = arith.constant 13 : index
    %c0_203 = arith.constant 0 : index
    %c0_204 = arith.constant 0 : index
    %135 = vector.load %arg2[%c13, %c0_203, %c0_204] : memref<25x64x256xbf16, #tpu.memory_space<vmem>>, vector<1x64x256xbf16>
    %136 = vector.shape_cast %135 : vector<1x64x256xbf16> to vector<64x256xbf16>
    %c0_205 = arith.constant 0 : index
    %c0_206 = arith.constant 0 : index
    %c0_207 = arith.constant 0 : index
    %c0_208 = arith.constant 0 : index
    %137 = vector.load %arg5[%c0_205, %c0_206, %c0_207, %c0_208] : memref<2x8x8x256xf32, #tpu.memory_space<vmem>>, vector<2x8x8x256xf32>
    %cst_209 = arith.constant dense<0.000000e+00> : vector<128x256xf32>
    %138 = tpu.matmul %134, %136, %cst_209 {dimension_numbers = #tpu.dot_dimension_numbers<[1], [0], [0], [1], [0, 0, 1, 1], [], []>} : vector<128x64xbf16>, vector<64x256xbf16>, vector<128x256xf32> -> vector<128x256xf32>
    %139 = vector.shape_cast %138 : vector<128x256xf32> to vector<2x8x8x256xf32>
    %140 = arith.addf %137, %139 : vector<2x8x8x256xf32>
    %c0_210 = arith.constant 0 : index
    %c0_211 = arith.constant 0 : index
    %c0_212 = arith.constant 0 : index
    %c0_213 = arith.constant 0 : index
    %141 = vector.load %arg5[%c0_210, %c0_211, %c0_212, %c0_213] : memref<2x8x8x256xf32, #tpu.memory_space<vmem>>, vector<2x8x8x256xf32>
    tpu.vector_store %arg5[%c0_210, %c0_211, %c0_212, %c0_213], %140 {strides = array<i32>} : memref<2x8x8x256xf32, #tpu.memory_space<vmem>>, vector<2x8x8x256xf32>,
    %c0_214 = arith.constant 0 : index
    %c2_215 = arith.constant 2 : index
    %c4_216 = arith.constant 4 : index
    %c0_217 = arith.constant 0 : index
    %142 = vector.load %arg1[%c0_214, %c2_215, %c4_216, %c0_217] : memref<2x12x12x64xf32, #tpu.memory_space<vmem>>, vector<2x8x8x64xf32>
    %143 = vector.shape_cast %142 : vector<2x8x8x64xf32> to vector<128x64xf32>
    %144 = arith.truncf %143 : vector<128x64xf32> to vector<128x64xbf16>
    %c14 = arith.constant 14 : index
    %c0_218 = arith.constant 0 : index
    %c0_219 = arith.constant 0 : index
    %145 = vector.load %arg2[%c14, %c0_218, %c0_219] : memref<25x64x256xbf16, #tpu.memory_space<vmem>>, vector<1x64x256xbf16>
    %146 = vector.shape_cast %145 : vector<1x64x256xbf16> to vector<64x256xbf16>
    %c0_220 = arith.constant 0 : index
    %c0_221 = arith.constant 0 : index
    %c0_222 = arith.constant 0 : index
    %c0_223 = arith.constant 0 : index
    %147 = vector.load %arg5[%c0_220, %c0_221, %c0_222, %c0_223] : memref<2x8x8x256xf32, #tpu.memory_space<vmem>>, vector<2x8x8x256xf32>
    %cst_224 = arith.constant dense<0.000000e+00> : vector<128x256xf32>
    %148 = tpu.matmul %144, %146, %cst_224 {dimension_numbers = #tpu.dot_dimension_numbers<[1], [0], [0], [1], [0, 0, 1, 1], [], []>} : vector<128x64xbf16>, vector<64x256xbf16>, vector<128x256xf32> -> vector<128x256xf32>
    %149 = vector.shape_cast %148 : vector<128x256xf32> to vector<2x8x8x256xf32>
    %150 = arith.addf %147, %149 : vector<2x8x8x256xf32>
    %c0_225 = arith.constant 0 : index
    %c0_226 = arith.constant 0 : index
    %c0_227 = arith.constant 0 : index
    %c0_228 = arith.constant 0 : index
    %151 = vector.load %arg5[%c0_225, %c0_226, %c0_227, %c0_228] : memref<2x8x8x256xf32, #tpu.memory_space<vmem>>, vector<2x8x8x256xf32>
    tpu.vector_store %arg5[%c0_225, %c0_226, %c0_227, %c0_228], %150 {strides = array<i32>} : memref<2x8x8x256xf32, #tpu.memory_space<vmem>>, vector<2x8x8x256xf32>,
    %c0_229 = arith.constant 0 : index
    %c3_230 = arith.constant 3 : index
    %c0_231 = arith.constant 0 : index
    %c0_232 = arith.constant 0 : index
    %152 = vector.load %arg1[%c0_229, %c3_230, %c0_231, %c0_232] : memref<2x12x12x64xf32, #tpu.memory_space<vmem>>, vector<2x8x8x64xf32>
    %153 = vector.shape_cast %152 : vector<2x8x8x64xf32> to vector<128x64xf32>
    %154 = arith.truncf %153 : vector<128x64xf32> to vector<128x64xbf16>
    %c15 = arith.constant 15 : index
    %c0_233 = arith.constant 0 : index
    %c0_234 = arith.constant 0 : index
    %155 = vector.load %arg2[%c15, %c0_233, %c0_234] : memref<25x64x256xbf16, #tpu.memory_space<vmem>>, vector<1x64x256xbf16>
    %156 = vector.shape_cast %155 : vector<1x64x256xbf16> to vector<64x256xbf16>
    %c0_235 = arith.constant 0 : index
    %c0_236 = arith.constant 0 : index
    %c0_237 = arith.constant 0 : index
    %c0_238 = arith.constant 0 : index
    %157 = vector.load %arg5[%c0_235, %c0_236, %c0_237, %c0_238] : memref<2x8x8x256xf32, #tpu.memory_space<vmem>>, vector<2x8x8x256xf32>
    %cst_239 = arith.constant dense<0.000000e+00> : vector<128x256xf32>
    %158 = tpu.matmul %154, %156, %cst_239 {dimension_numbers = #tpu.dot_dimension_numbers<[1], [0], [0], [1], [0, 0, 1, 1], [], []>} : vector<128x64xbf16>, vector<64x256xbf16>, vector<128x256xf32> -> vector<128x256xf32>
    %159 = vector.shape_cast %158 : vector<128x256xf32> to vector<2x8x8x256xf32>
    %160 = arith.addf %157, %159 : vector<2x8x8x256xf32>
    %c0_240 = arith.constant 0 : index
    %c0_241 = arith.constant 0 : index
    %c0_242 = arith.constant 0 : index
    %c0_243 = arith.constant 0 : index
    %161 = vector.load %arg5[%c0_240, %c0_241, %c0_242, %c0_243] : memref<2x8x8x256xf32, #tpu.memory_space<vmem>>, vector<2x8x8x256xf32>
    tpu.vector_store %arg5[%c0_240, %c0_241, %c0_242, %c0_243], %160 {strides = array<i32>} : memref<2x8x8x256xf32, #tpu.memory_space<vmem>>, vector<2x8x8x256xf32>,
    %c0_244 = arith.constant 0 : index
    %c3_245 = arith.constant 3 : index
    %c1_246 = arith.constant 1 : index
    %c0_247 = arith.constant 0 : index
    %162 = vector.load %arg1[%c0_244, %c3_245, %c1_246, %c0_247] : memref<2x12x12x64xf32, #tpu.memory_space<vmem>>, vector<2x8x8x64xf32>
    %163 = vector.shape_cast %162 : vector<2x8x8x64xf32> to vector<128x64xf32>
    %164 = arith.truncf %163 : vector<128x64xf32> to vector<128x64xbf16>
    %c16 = arith.constant 16 : index
    %c0_248 = arith.constant 0 : index
    %c0_249 = arith.constant 0 : index
    %165 = vector.load %arg2[%c16, %c0_248, %c0_249] : memref<25x64x256xbf16, #tpu.memory_space<vmem>>, vector<1x64x256xbf16>
    %166 = vector.shape_cast %165 : vector<1x64x256xbf16> to vector<64x256xbf16>
    %c0_250 = arith.constant 0 : index
    %c0_251 = arith.constant 0 : index
    %c0_252 = arith.constant 0 : index
    %c0_253 = arith.constant 0 : index
    %167 = vector.load %arg5[%c0_250, %c0_251, %c0_252, %c0_253] : memref<2x8x8x256xf32, #tpu.memory_space<vmem>>, vector<2x8x8x256xf32>
    %cst_254 = arith.constant dense<0.000000e+00> : vector<128x256xf32>
    %168 = tpu.matmul %164, %166, %cst_254 {dimension_numbers = #tpu.dot_dimension_numbers<[1], [0], [0], [1], [0, 0, 1, 1], [], []>} : vector<128x64xbf16>, vector<64x256xbf16>, vector<128x256xf32> -> vector<128x256xf32>
    %169 = vector.shape_cast %168 : vector<128x256xf32> to vector<2x8x8x256xf32>
    %170 = arith.addf %167, %169 : vector<2x8x8x256xf32>
    %c0_255 = arith.constant 0 : index
    %c0_256 = arith.constant 0 : index
    %c0_257 = arith.constant 0 : index
    %c0_258 = arith.constant 0 : index
    %171 = vector.load %arg5[%c0_255, %c0_256, %c0_257, %c0_258] : memref<2x8x8x256xf32, #tpu.memory_space<vmem>>, vector<2x8x8x256xf32>
    tpu.vector_store %arg5[%c0_255, %c0_256, %c0_257, %c0_258], %170 {strides = array<i32>} : memref<2x8x8x256xf32, #tpu.memory_space<vmem>>, vector<2x8x8x256xf32>,
    %c0_259 = arith.constant 0 : index
    %c3_260 = arith.constant 3 : index
    %c2_261 = arith.constant 2 : index
    %c0_262 = arith.constant 0 : index
    %172 = vector.load %arg1[%c0_259, %c3_260, %c2_261, %c0_262] : memref<2x12x12x64xf32, #tpu.memory_space<vmem>>, vector<2x8x8x64xf32>
    %173 = vector.shape_cast %172 : vector<2x8x8x64xf32> to vector<128x64xf32>
    %174 = arith.truncf %173 : vector<128x64xf32> to vector<128x64xbf16>
    %c17 = arith.constant 17 : index
    %c0_263 = arith.constant 0 : index
    %c0_264 = arith.constant 0 : index
    %175 = vector.load %arg2[%c17, %c0_263, %c0_264] : memref<25x64x256xbf16, #tpu.memory_space<vmem>>, vector<1x64x256xbf16>
    %176 = vector.shape_cast %175 : vector<1x64x256xbf16> to vector<64x256xbf16>
    %c0_265 = arith.constant 0 : index
    %c0_266 = arith.constant 0 : index
    %c0_267 = arith.constant 0 : index
    %c0_268 = arith.constant 0 : index
    %177 = vector.load %arg5[%c0_265, %c0_266, %c0_267, %c0_268] : memref<2x8x8x256xf32, #tpu.memory_space<vmem>>, vector<2x8x8x256xf32>
    %cst_269 = arith.constant dense<0.000000e+00> : vector<128x256xf32>
    %178 = tpu.matmul %174, %176, %cst_269 {dimension_numbers = #tpu.dot_dimension_numbers<[1], [0], [0], [1], [0, 0, 1, 1], [], []>} : vector<128x64xbf16>, vector<64x256xbf16>, vector<128x256xf32> -> vector<128x256xf32>
    %179 = vector.shape_cast %178 : vector<128x256xf32> to vector<2x8x8x256xf32>
    %180 = arith.addf %177, %179 : vector<2x8x8x256xf32>
    %c0_270 = arith.constant 0 : index
    %c0_271 = arith.constant 0 : index
    %c0_272 = arith.constant 0 : index
    %c0_273 = arith.constant 0 : index
    %181 = vector.load %arg5[%c0_270, %c0_271, %c0_272, %c0_273] : memref<2x8x8x256xf32, #tpu.memory_space<vmem>>, vector<2x8x8x256xf32>
    tpu.vector_store %arg5[%c0_270, %c0_271, %c0_272, %c0_273], %180 {strides = array<i32>} : memref<2x8x8x256xf32, #tpu.memory_space<vmem>>, vector<2x8x8x256xf32>,
    %c0_274 = arith.constant 0 : index
    %c3_275 = arith.constant 3 : index
    %c3_276 = arith.constant 3 : index
    %c0_277 = arith.constant 0 : index
    %182 = vector.load %arg1[%c0_274, %c3_275, %c3_276, %c0_277] : memref<2x12x12x64xf32, #tpu.memory_space<vmem>>, vector<2x8x8x64xf32>
    %183 = vector.shape_cast %182 : vector<2x8x8x64xf32> to vector<128x64xf32>
    %184 = arith.truncf %183 : vector<128x64xf32> to vector<128x64xbf16>
    %c18 = arith.constant 18 : index
    %c0_278 = arith.constant 0 : index
    %c0_279 = arith.constant 0 : index
    %185 = vector.load %arg2[%c18, %c0_278, %c0_279] : memref<25x64x256xbf16, #tpu.memory_space<vmem>>, vector<1x64x256xbf16>
    %186 = vector.shape_cast %185 : vector<1x64x256xbf16> to vector<64x256xbf16>
    %c0_280 = arith.constant 0 : index
    %c0_281 = arith.constant 0 : index
    %c0_282 = arith.constant 0 : index
    %c0_283 = arith.constant 0 : index
    %187 = vector.load %arg5[%c0_280, %c0_281, %c0_282, %c0_283] : memref<2x8x8x256xf32, #tpu.memory_space<vmem>>, vector<2x8x8x256xf32>
    %cst_284 = arith.constant dense<0.000000e+00> : vector<128x256xf32>
    %188 = tpu.matmul %184, %186, %cst_284 {dimension_numbers = #tpu.dot_dimension_numbers<[1], [0], [0], [1], [0, 0, 1, 1], [], []>} : vector<128x64xbf16>, vector<64x256xbf16>, vector<128x256xf32> -> vector<128x256xf32>
    %189 = vector.shape_cast %188 : vector<128x256xf32> to vector<2x8x8x256xf32>
    %190 = arith.addf %187, %189 : vector<2x8x8x256xf32>
    %c0_285 = arith.constant 0 : index
    %c0_286 = arith.constant 0 : index
    %c0_287 = arith.constant 0 : index
    %c0_288 = arith.constant 0 : index
    %191 = vector.load %arg5[%c0_285, %c0_286, %c0_287, %c0_288] : memref<2x8x8x256xf32, #tpu.memory_space<vmem>>, vector<2x8x8x256xf32>
    tpu.vector_store %arg5[%c0_285, %c0_286, %c0_287, %c0_288], %190 {strides = array<i32>} : memref<2x8x8x256xf32, #tpu.memory_space<vmem>>, vector<2x8x8x256xf32>,
    %c0_289 = arith.constant 0 : index
    %c3_290 = arith.constant 3 : index
    %c4_291 = arith.constant 4 : index
    %c0_292 = arith.constant 0 : index
    %192 = vector.load %arg1[%c0_289, %c3_290, %c4_291, %c0_292] : memref<2x12x12x64xf32, #tpu.memory_space<vmem>>, vector<2x8x8x64xf32>
    %193 = vector.shape_cast %192 : vector<2x8x8x64xf32> to vector<128x64xf32>
    %194 = arith.truncf %193 : vector<128x64xf32> to vector<128x64xbf16>
    %c19 = arith.constant 19 : index
    %c0_293 = arith.constant 0 : index
    %c0_294 = arith.constant 0 : index
    %195 = vector.load %arg2[%c19, %c0_293, %c0_294] : memref<25x64x256xbf16, #tpu.memory_space<vmem>>, vector<1x64x256xbf16>
    %196 = vector.shape_cast %195 : vector<1x64x256xbf16> to vector<64x256xbf16>
    %c0_295 = arith.constant 0 : index
    %c0_296 = arith.constant 0 : index
    %c0_297 = arith.constant 0 : index
    %c0_298 = arith.constant 0 : index
    %197 = vector.load %arg5[%c0_295, %c0_296, %c0_297, %c0_298] : memref<2x8x8x256xf32, #tpu.memory_space<vmem>>, vector<2x8x8x256xf32>
    %cst_299 = arith.constant dense<0.000000e+00> : vector<128x256xf32>
    %198 = tpu.matmul %194, %196, %cst_299 {dimension_numbers = #tpu.dot_dimension_numbers<[1], [0], [0], [1], [0, 0, 1, 1], [], []>} : vector<128x64xbf16>, vector<64x256xbf16>, vector<128x256xf32> -> vector<128x256xf32>
    %199 = vector.shape_cast %198 : vector<128x256xf32> to vector<2x8x8x256xf32>
    %200 = arith.addf %197, %199 : vector<2x8x8x256xf32>
    %c0_300 = arith.constant 0 : index
    %c0_301 = arith.constant 0 : index
    %c0_302 = arith.constant 0 : index
    %c0_303 = arith.constant 0 : index
    %201 = vector.load %arg5[%c0_300, %c0_301, %c0_302, %c0_303] : memref<2x8x8x256xf32, #tpu.memory_space<vmem>>, vector<2x8x8x256xf32>
    tpu.vector_store %arg5[%c0_300, %c0_301, %c0_302, %c0_303], %200 {strides = array<i32>} : memref<2x8x8x256xf32, #tpu.memory_space<vmem>>, vector<2x8x8x256xf32>,
    %c0_304 = arith.constant 0 : index
    %c4_305 = arith.constant 4 : index
    %c0_306 = arith.constant 0 : index
    %c0_307 = arith.constant 0 : index
    %202 = vector.load %arg1[%c0_304, %c4_305, %c0_306, %c0_307] : memref<2x12x12x64xf32, #tpu.memory_space<vmem>>, vector<2x8x8x64xf32>
    %203 = vector.shape_cast %202 : vector<2x8x8x64xf32> to vector<128x64xf32>
    %204 = arith.truncf %203 : vector<128x64xf32> to vector<128x64xbf16>
    %c20 = arith.constant 20 : index
    %c0_308 = arith.constant 0 : index
    %c0_309 = arith.constant 0 : index
    %205 = vector.load %arg2[%c20, %c0_308, %c0_309] : memref<25x64x256xbf16, #tpu.memory_space<vmem>>, vector<1x64x256xbf16>
    %206 = vector.shape_cast %205 : vector<1x64x256xbf16> to vector<64x256xbf16>
    %c0_310 = arith.constant 0 : index
    %c0_311 = arith.constant 0 : index
    %c0_312 = arith.constant 0 : index
    %c0_313 = arith.constant 0 : index
    %207 = vector.load %arg5[%c0_310, %c0_311, %c0_312, %c0_313] : memref<2x8x8x256xf32, #tpu.memory_space<vmem>>, vector<2x8x8x256xf32>
    %cst_314 = arith.constant dense<0.000000e+00> : vector<128x256xf32>
    %208 = tpu.matmul %204, %206, %cst_314 {dimension_numbers = #tpu.dot_dimension_numbers<[1], [0], [0], [1], [0, 0, 1, 1], [], []>} : vector<128x64xbf16>, vector<64x256xbf16>, vector<128x256xf32> -> vector<128x256xf32>
    %209 = vector.shape_cast %208 : vector<128x256xf32> to vector<2x8x8x256xf32>
    %210 = arith.addf %207, %209 : vector<2x8x8x256xf32>
    %c0_315 = arith.constant 0 : index
    %c0_316 = arith.constant 0 : index
    %c0_317 = arith.constant 0 : index
    %c0_318 = arith.constant 0 : index
    %211 = vector.load %arg5[%c0_315, %c0_316, %c0_317, %c0_318] : memref<2x8x8x256xf32, #tpu.memory_space<vmem>>, vector<2x8x8x256xf32>
    tpu.vector_store %arg5[%c0_315, %c0_316, %c0_317, %c0_318], %210 {strides = array<i32>} : memref<2x8x8x256xf32, #tpu.memory_space<vmem>>, vector<2x8x8x256xf32>,
    %c0_319 = arith.constant 0 : index
    %c4_320 = arith.constant 4 : index
    %c1_321 = arith.constant 1 : index
    %c0_322 = arith.constant 0 : index
    %212 = vector.load %arg1[%c0_319, %c4_320, %c1_321, %c0_322] : memref<2x12x12x64xf32, #tpu.memory_space<vmem>>, vector<2x8x8x64xf32>
    %213 = vector.shape_cast %212 : vector<2x8x8x64xf32> to vector<128x64xf32>
    %214 = arith.truncf %213 : vector<128x64xf32> to vector<128x64xbf16>
    %c21 = arith.constant 21 : index
    %c0_323 = arith.constant 0 : index
    %c0_324 = arith.constant 0 : index
    %215 = vector.load %arg2[%c21, %c0_323, %c0_324] : memref<25x64x256xbf16, #tpu.memory_space<vmem>>, vector<1x64x256xbf16>
    %216 = vector.shape_cast %215 : vector<1x64x256xbf16> to vector<64x256xbf16>
    %c0_325 = arith.constant 0 : index
    %c0_326 = arith.constant 0 : index
    %c0_327 = arith.constant 0 : index
    %c0_328 = arith.constant 0 : index
    %217 = vector.load %arg5[%c0_325, %c0_326, %c0_327, %c0_328] : memref<2x8x8x256xf32, #tpu.memory_space<vmem>>, vector<2x8x8x256xf32>
    %cst_329 = arith.constant dense<0.000000e+00> : vector<128x256xf32>
    %218 = tpu.matmul %214, %216, %cst_329 {dimension_numbers = #tpu.dot_dimension_numbers<[1], [0], [0], [1], [0, 0, 1, 1], [], []>} : vector<128x64xbf16>, vector<64x256xbf16>, vector<128x256xf32> -> vector<128x256xf32>
    %219 = vector.shape_cast %218 : vector<128x256xf32> to vector<2x8x8x256xf32>
    %220 = arith.addf %217, %219 : vector<2x8x8x256xf32>
    %c0_330 = arith.constant 0 : index
    %c0_331 = arith.constant 0 : index
    %c0_332 = arith.constant 0 : index
    %c0_333 = arith.constant 0 : index
    %221 = vector.load %arg5[%c0_330, %c0_331, %c0_332, %c0_333] : memref<2x8x8x256xf32, #tpu.memory_space<vmem>>, vector<2x8x8x256xf32>
    tpu.vector_store %arg5[%c0_330, %c0_331, %c0_332, %c0_333], %220 {strides = array<i32>} : memref<2x8x8x256xf32, #tpu.memory_space<vmem>>, vector<2x8x8x256xf32>,
    %c0_334 = arith.constant 0 : index
    %c4_335 = arith.constant 4 : index
    %c2_336 = arith.constant 2 : index
    %c0_337 = arith.constant 0 : index
    %222 = vector.load %arg1[%c0_334, %c4_335, %c2_336, %c0_337] : memref<2x12x12x64xf32, #tpu.memory_space<vmem>>, vector<2x8x8x64xf32>
    %223 = vector.shape_cast %222 : vector<2x8x8x64xf32> to vector<128x64xf32>
    %224 = arith.truncf %223 : vector<128x64xf32> to vector<128x64xbf16>
    %c22 = arith.constant 22 : index
    %c0_338 = arith.constant 0 : index
    %c0_339 = arith.constant 0 : index
    %225 = vector.load %arg2[%c22, %c0_338, %c0_339] : memref<25x64x256xbf16, #tpu.memory_space<vmem>>, vector<1x64x256xbf16>
    %226 = vector.shape_cast %225 : vector<1x64x256xbf16> to vector<64x256xbf16>
    %c0_340 = arith.constant 0 : index
    %c0_341 = arith.constant 0 : index
    %c0_342 = arith.constant 0 : index
    %c0_343 = arith.constant 0 : index
    %227 = vector.load %arg5[%c0_340, %c0_341, %c0_342, %c0_343] : memref<2x8x8x256xf32, #tpu.memory_space<vmem>>, vector<2x8x8x256xf32>
    %cst_344 = arith.constant dense<0.000000e+00> : vector<128x256xf32>
    %228 = tpu.matmul %224, %226, %cst_344 {dimension_numbers = #tpu.dot_dimension_numbers<[1], [0], [0], [1], [0, 0, 1, 1], [], []>} : vector<128x64xbf16>, vector<64x256xbf16>, vector<128x256xf32> -> vector<128x256xf32>
    %229 = vector.shape_cast %228 : vector<128x256xf32> to vector<2x8x8x256xf32>
    %230 = arith.addf %227, %229 : vector<2x8x8x256xf32>
    %c0_345 = arith.constant 0 : index
    %c0_346 = arith.constant 0 : index
    %c0_347 = arith.constant 0 : index
    %c0_348 = arith.constant 0 : index
    %231 = vector.load %arg5[%c0_345, %c0_346, %c0_347, %c0_348] : memref<2x8x8x256xf32, #tpu.memory_space<vmem>>, vector<2x8x8x256xf32>
    tpu.vector_store %arg5[%c0_345, %c0_346, %c0_347, %c0_348], %230 {strides = array<i32>} : memref<2x8x8x256xf32, #tpu.memory_space<vmem>>, vector<2x8x8x256xf32>,
    %c0_349 = arith.constant 0 : index
    %c4_350 = arith.constant 4 : index
    %c3_351 = arith.constant 3 : index
    %c0_352 = arith.constant 0 : index
    %232 = vector.load %arg1[%c0_349, %c4_350, %c3_351, %c0_352] : memref<2x12x12x64xf32, #tpu.memory_space<vmem>>, vector<2x8x8x64xf32>
    %233 = vector.shape_cast %232 : vector<2x8x8x64xf32> to vector<128x64xf32>
    %234 = arith.truncf %233 : vector<128x64xf32> to vector<128x64xbf16>
    %c23 = arith.constant 23 : index
    %c0_353 = arith.constant 0 : index
    %c0_354 = arith.constant 0 : index
    %235 = vector.load %arg2[%c23, %c0_353, %c0_354] : memref<25x64x256xbf16, #tpu.memory_space<vmem>>, vector<1x64x256xbf16>
    %236 = vector.shape_cast %235 : vector<1x64x256xbf16> to vector<64x256xbf16>
    %c0_355 = arith.constant 0 : index
    %c0_356 = arith.constant 0 : index
    %c0_357 = arith.constant 0 : index
    %c0_358 = arith.constant 0 : index
    %237 = vector.load %arg5[%c0_355, %c0_356, %c0_357, %c0_358] : memref<2x8x8x256xf32, #tpu.memory_space<vmem>>, vector<2x8x8x256xf32>
    %cst_359 = arith.constant dense<0.000000e+00> : vector<128x256xf32>
    %238 = tpu.matmul %234, %236, %cst_359 {dimension_numbers = #tpu.dot_dimension_numbers<[1], [0], [0], [1], [0, 0, 1, 1], [], []>} : vector<128x64xbf16>, vector<64x256xbf16>, vector<128x256xf32> -> vector<128x256xf32>
    %239 = vector.shape_cast %238 : vector<128x256xf32> to vector<2x8x8x256xf32>
    %240 = arith.addf %237, %239 : vector<2x8x8x256xf32>
    %c0_360 = arith.constant 0 : index
    %c0_361 = arith.constant 0 : index
    %c0_362 = arith.constant 0 : index
    %c0_363 = arith.constant 0 : index
    %241 = vector.load %arg5[%c0_360, %c0_361, %c0_362, %c0_363] : memref<2x8x8x256xf32, #tpu.memory_space<vmem>>, vector<2x8x8x256xf32>
    tpu.vector_store %arg5[%c0_360, %c0_361, %c0_362, %c0_363], %240 {strides = array<i32>} : memref<2x8x8x256xf32, #tpu.memory_space<vmem>>, vector<2x8x8x256xf32>,
    %c0_364 = arith.constant 0 : index
    %c4_365 = arith.constant 4 : index
    %c4_366 = arith.constant 4 : index
    %c0_367 = arith.constant 0 : index
    %242 = vector.load %arg1[%c0_364, %c4_365, %c4_366, %c0_367] : memref<2x12x12x64xf32, #tpu.memory_space<vmem>>, vector<2x8x8x64xf32>
    %243 = vector.shape_cast %242 : vector<2x8x8x64xf32> to vector<128x64xf32>
    %244 = arith.truncf %243 : vector<128x64xf32> to vector<128x64xbf16>
    %c24 = arith.constant 24 : index
    %c0_368 = arith.constant 0 : index
    %c0_369 = arith.constant 0 : index
    %245 = vector.load %arg2[%c24, %c0_368, %c0_369] : memref<25x64x256xbf16, #tpu.memory_space<vmem>>, vector<1x64x256xbf16>
    %246 = vector.shape_cast %245 : vector<1x64x256xbf16> to vector<64x256xbf16>
    %c0_370 = arith.constant 0 : index
    %c0_371 = arith.constant 0 : index
    %c0_372 = arith.constant 0 : index
    %c0_373 = arith.constant 0 : index
    %247 = vector.load %arg5[%c0_370, %c0_371, %c0_372, %c0_373] : memref<2x8x8x256xf32, #tpu.memory_space<vmem>>, vector<2x8x8x256xf32>
    %cst_374 = arith.constant dense<0.000000e+00> : vector<128x256xf32>
    %248 = tpu.matmul %244, %246, %cst_374 {dimension_numbers = #tpu.dot_dimension_numbers<[1], [0], [0], [1], [0, 0, 1, 1], [], []>} : vector<128x64xbf16>, vector<64x256xbf16>, vector<128x256xf32> -> vector<128x256xf32>
    %249 = vector.shape_cast %248 : vector<128x256xf32> to vector<2x8x8x256xf32>
    %250 = arith.addf %247, %249 : vector<2x8x8x256xf32>
    %c0_375 = arith.constant 0 : index
    %c0_376 = arith.constant 0 : index
    %c0_377 = arith.constant 0 : index
    %c0_378 = arith.constant 0 : index
    %251 = vector.load %arg5[%c0_375, %c0_376, %c0_377, %c0_378] : memref<2x8x8x256xf32, #tpu.memory_space<vmem>>, vector<2x8x8x256xf32>
    tpu.vector_store %arg5[%c0_375, %c0_376, %c0_377, %c0_378], %250 {strides = array<i32>} : memref<2x8x8x256xf32, #tpu.memory_space<vmem>>, vector<2x8x8x256xf32>,
    %c0_379 = arith.constant 0 : index
    %c0_380 = arith.constant 0 : index
    %c0_381 = arith.constant 0 : index
    %c0_382 = arith.constant 0 : index
    %252 = vector.load %arg5[%c0_379, %c0_380, %c0_381, %c0_382] : memref<2x8x8x256xf32, #tpu.memory_space<vmem>>, vector<2x8x8x256xf32>
    %c0_383 = arith.constant 0 : index
    %c0_384 = arith.constant 0 : index
    %253 = vector.load %arg3[%c0_383, %c0_384] : memref<1x256xf32, #tpu.memory_space<vmem>>, vector<1x256xf32>
    %254 = vector.shape_cast %253 : vector<1x256xf32> to vector<1x1x1x256xf32>
    %255 = vector.broadcast %254 : vector<1x1x1x256xf32> to vector<2x8x8x256xf32>
    %256 = arith.addf %252, %255 : vector<2x8x8x256xf32>
    %cst_385 = arith.constant 0.000000e+00 : f32
    %257 = vector.broadcast %cst_385 : f32 to vector<2x8x8x256xf32>
    %258 = arith.maximumf %256, %257 : vector<2x8x8x256xf32>
    %c0_386 = arith.constant 0 : index
    %c0_387 = arith.constant 0 : index
    %c0_388 = arith.constant 0 : index
    %c0_389 = arith.constant 0 : index
    %259 = vector.load %arg5[%c0_386, %c0_387, %c0_388, %c0_389] : memref<2x8x8x256xf32, #tpu.memory_space<vmem>>, vector<2x8x8x256xf32>
    tpu.vector_store %arg5[%c0_386, %c0_387, %c0_388, %c0_389], %258 {strides = array<i32>} : memref<2x8x8x256xf32, #tpu.memory_space<vmem>>, vector<2x8x8x256xf32>,
    %c0_390 = arith.constant 0 : index
    %c0_391 = arith.constant 0 : index
    %c0_392 = arith.constant 0 : index
    %c0_393 = arith.constant 0 : index
    %260 = vector.load %arg5[%c0_390, %c0_391, %c0_392, %c0_393] : memref<2x8x8x256xf32, #tpu.memory_space<vmem>>, vector<2x1x8x256xf32>
    %261 = vector.shape_cast %260 : vector<2x1x8x256xf32> to vector<2x8x256xf32>
    %c0_394 = arith.constant 0 : index
    %c1_395 = arith.constant 1 : index
    %c0_396 = arith.constant 0 : index
    %c0_397 = arith.constant 0 : index
    %262 = vector.load %arg5[%c0_394, %c1_395, %c0_396, %c0_397] : memref<2x8x8x256xf32, #tpu.memory_space<vmem>>, vector<2x1x8x256xf32>
    %263 = vector.shape_cast %262 : vector<2x1x8x256xf32> to vector<2x8x256xf32>
    %264 = arith.maximumf %261, %263 : vector<2x8x256xf32>
    %c0_398 = arith.constant 0 : index
    %c2_399 = arith.constant 2 : index
    %c0_400 = arith.constant 0 : index
    %c0_401 = arith.constant 0 : index
    %265 = vector.load %arg5[%c0_398, %c2_399, %c0_400, %c0_401] : memref<2x8x8x256xf32, #tpu.memory_space<vmem>>, vector<2x1x8x256xf32>
    %266 = vector.shape_cast %265 : vector<2x1x8x256xf32> to vector<2x8x256xf32>
    %267 = arith.maximumf %264, %266 : vector<2x8x256xf32>
    %268 = vector.extract_strided_slice %267 {offsets = [0, 0, 0], sizes = [2, 1, 256], strides = [1, 1, 1]} : vector<2x8x256xf32> to vector<2x1x256xf32>
    %269 = vector.shape_cast %268 : vector<2x1x256xf32> to vector<2x256xf32>
    %270 = vector.extract_strided_slice %267 {offsets = [0, 1, 0], sizes = [2, 1, 256], strides = [1, 1, 1]} : vector<2x8x256xf32> to vector<2x1x256xf32>
    %271 = vector.shape_cast %270 : vector<2x1x256xf32> to vector<2x256xf32>
    %272 = arith.maximumf %269, %271 : vector<2x256xf32>
    %273 = vector.extract_strided_slice %267 {offsets = [0, 2, 0], sizes = [2, 1, 256], strides = [1, 1, 1]} : vector<2x8x256xf32> to vector<2x1x256xf32>
    %274 = vector.shape_cast %273 : vector<2x1x256xf32> to vector<2x256xf32>
    %275 = arith.maximumf %272, %274 : vector<2x256xf32>
    %c0_402 = arith.constant 0 : index
    %c0_403 = arith.constant 0 : index
    %c0_404 = arith.constant 0 : index
    %c0_405 = arith.constant 0 : index
    %276 = vector.load %arg4[%c0_402, %c0_403, %c0_404, %c0_405] : memref<3x3x2x256xf32, #tpu.memory_space<vmem>>, vector<1x1x2x256xf32>
    %277 = vector.shape_cast %276 : vector<1x1x2x256xf32> to vector<2x256xf32>
    %278 = vector.shape_cast %275 : vector<2x256xf32> to vector<1x1x2x256xf32>
    tpu.vector_store %arg4[%c0_402, %c0_403, %c0_404, %c0_405], %278 {strides = array<i32>} : memref<3x3x2x256xf32, #tpu.memory_space<vmem>>, vector<1x1x2x256xf32>,
    %279 = vector.extract_strided_slice %267 {offsets = [0, 2, 0], sizes = [2, 1, 256], strides = [1, 1, 1]} : vector<2x8x256xf32> to vector<2x1x256xf32>
    %280 = vector.shape_cast %279 : vector<2x1x256xf32> to vector<2x256xf32>
    %281 = vector.extract_strided_slice %267 {offsets = [0, 3, 0], sizes = [2, 1, 256], strides = [1, 1, 1]} : vector<2x8x256xf32> to vector<2x1x256xf32>
    %282 = vector.shape_cast %281 : vector<2x1x256xf32> to vector<2x256xf32>
    %283 = arith.maximumf %280, %282 : vector<2x256xf32>
    %284 = vector.extract_strided_slice %267 {offsets = [0, 4, 0], sizes = [2, 1, 256], strides = [1, 1, 1]} : vector<2x8x256xf32> to vector<2x1x256xf32>
    %285 = vector.shape_cast %284 : vector<2x1x256xf32> to vector<2x256xf32>
    %286 = arith.maximumf %283, %285 : vector<2x256xf32>
    %c0_406 = arith.constant 0 : index
    %c1_407 = arith.constant 1 : index
    %c0_408 = arith.constant 0 : index
    %c0_409 = arith.constant 0 : index
    %287 = vector.load %arg4[%c0_406, %c1_407, %c0_408, %c0_409] : memref<3x3x2x256xf32, #tpu.memory_space<vmem>>, vector<1x1x2x256xf32>
    %288 = vector.shape_cast %287 : vector<1x1x2x256xf32> to vector<2x256xf32>
    %289 = vector.shape_cast %286 : vector<2x256xf32> to vector<1x1x2x256xf32>
    tpu.vector_store %arg4[%c0_406, %c1_407, %c0_408, %c0_409], %289 {strides = array<i32>} : memref<3x3x2x256xf32, #tpu.memory_space<vmem>>, vector<1x1x2x256xf32>,
    %290 = vector.extract_strided_slice %267 {offsets = [0, 4, 0], sizes = [2, 1, 256], strides = [1, 1, 1]} : vector<2x8x256xf32> to vector<2x1x256xf32>
    %291 = vector.shape_cast %290 : vector<2x1x256xf32> to vector<2x256xf32>
    %292 = vector.extract_strided_slice %267 {offsets = [0, 5, 0], sizes = [2, 1, 256], strides = [1, 1, 1]} : vector<2x8x256xf32> to vector<2x1x256xf32>
    %293 = vector.shape_cast %292 : vector<2x1x256xf32> to vector<2x256xf32>
    %294 = arith.maximumf %291, %293 : vector<2x256xf32>
    %295 = vector.extract_strided_slice %267 {offsets = [0, 6, 0], sizes = [2, 1, 256], strides = [1, 1, 1]} : vector<2x8x256xf32> to vector<2x1x256xf32>
    %296 = vector.shape_cast %295 : vector<2x1x256xf32> to vector<2x256xf32>
    %297 = arith.maximumf %294, %296 : vector<2x256xf32>
    %c0_410 = arith.constant 0 : index
    %c2_411 = arith.constant 2 : index
    %c0_412 = arith.constant 0 : index
    %c0_413 = arith.constant 0 : index
    %298 = vector.load %arg4[%c0_410, %c2_411, %c0_412, %c0_413] : memref<3x3x2x256xf32, #tpu.memory_space<vmem>>, vector<1x1x2x256xf32>
    %299 = vector.shape_cast %298 : vector<1x1x2x256xf32> to vector<2x256xf32>
    %300 = vector.shape_cast %297 : vector<2x256xf32> to vector<1x1x2x256xf32>
    tpu.vector_store %arg4[%c0_410, %c2_411, %c0_412, %c0_413], %300 {strides = array<i32>} : memref<3x3x2x256xf32, #tpu.memory_space<vmem>>, vector<1x1x2x256xf32>,
    %c0_414 = arith.constant 0 : index
    %c2_415 = arith.constant 2 : index
    %c0_416 = arith.constant 0 : index
    %c0_417 = arith.constant 0 : index
    %301 = vector.load %arg5[%c0_414, %c2_415, %c0_416, %c0_417] : memref<2x8x8x256xf32, #tpu.memory_space<vmem>>, vector<2x1x8x256xf32>
    %302 = vector.shape_cast %301 : vector<2x1x8x256xf32> to vector<2x8x256xf32>
    %c0_418 = arith.constant 0 : index
    %c3_419 = arith.constant 3 : index
    %c0_420 = arith.constant 0 : index
    %c0_421 = arith.constant 0 : index
    %303 = vector.load %arg5[%c0_418, %c3_419, %c0_420, %c0_421] : memref<2x8x8x256xf32, #tpu.memory_space<vmem>>, vector<2x1x8x256xf32>
    %304 = vector.shape_cast %303 : vector<2x1x8x256xf32> to vector<2x8x256xf32>
    %305 = arith.maximumf %302, %304 : vector<2x8x256xf32>
    %c0_422 = arith.constant 0 : index
    %c4_423 = arith.constant 4 : index
    %c0_424 = arith.constant 0 : index
    %c0_425 = arith.constant 0 : index
    %306 = vector.load %arg5[%c0_422, %c4_423, %c0_424, %c0_425] : memref<2x8x8x256xf32, #tpu.memory_space<vmem>>, vector<2x1x8x256xf32>
    %307 = vector.shape_cast %306 : vector<2x1x8x256xf32> to vector<2x8x256xf32>
    %308 = arith.maximumf %305, %307 : vector<2x8x256xf32>
    %309 = vector.extract_strided_slice %308 {offsets = [0, 0, 0], sizes = [2, 1, 256], strides = [1, 1, 1]} : vector<2x8x256xf32> to vector<2x1x256xf32>
    %310 = vector.shape_cast %309 : vector<2x1x256xf32> to vector<2x256xf32>
    %311 = vector.extract_strided_slice %308 {offsets = [0, 1, 0], sizes = [2, 1, 256], strides = [1, 1, 1]} : vector<2x8x256xf32> to vector<2x1x256xf32>
    %312 = vector.shape_cast %311 : vector<2x1x256xf32> to vector<2x256xf32>
    %313 = arith.maximumf %310, %312 : vector<2x256xf32>
    %314 = vector.extract_strided_slice %308 {offsets = [0, 2, 0], sizes = [2, 1, 256], strides = [1, 1, 1]} : vector<2x8x256xf32> to vector<2x1x256xf32>
    %315 = vector.shape_cast %314 : vector<2x1x256xf32> to vector<2x256xf32>
    %316 = arith.maximumf %313, %315 : vector<2x256xf32>
    %c1_426 = arith.constant 1 : index
    %c0_427 = arith.constant 0 : index
    %c0_428 = arith.constant 0 : index
    %c0_429 = arith.constant 0 : index
    %317 = vector.load %arg4[%c1_426, %c0_427, %c0_428, %c0_429] : memref<3x3x2x256xf32, #tpu.memory_space<vmem>>, vector<1x1x2x256xf32>
    %318 = vector.shape_cast %317 : vector<1x1x2x256xf32> to vector<2x256xf32>
    %319 = vector.shape_cast %316 : vector<2x256xf32> to vector<1x1x2x256xf32>
    tpu.vector_store %arg4[%c1_426, %c0_427, %c0_428, %c0_429], %319 {strides = array<i32>} : memref<3x3x2x256xf32, #tpu.memory_space<vmem>>, vector<1x1x2x256xf32>,
    %320 = vector.extract_strided_slice %308 {offsets = [0, 2, 0], sizes = [2, 1, 256], strides = [1, 1, 1]} : vector<2x8x256xf32> to vector<2x1x256xf32>
    %321 = vector.shape_cast %320 : vector<2x1x256xf32> to vector<2x256xf32>
    %322 = vector.extract_strided_slice %308 {offsets = [0, 3, 0], sizes = [2, 1, 256], strides = [1, 1, 1]} : vector<2x8x256xf32> to vector<2x1x256xf32>
    %323 = vector.shape_cast %322 : vector<2x1x256xf32> to vector<2x256xf32>
    %324 = arith.maximumf %321, %323 : vector<2x256xf32>
    %325 = vector.extract_strided_slice %308 {offsets = [0, 4, 0], sizes = [2, 1, 256], strides = [1, 1, 1]} : vector<2x8x256xf32> to vector<2x1x256xf32>
    %326 = vector.shape_cast %325 : vector<2x1x256xf32> to vector<2x256xf32>
    %327 = arith.maximumf %324, %326 : vector<2x256xf32>
    %c1_430 = arith.constant 1 : index
    %c1_431 = arith.constant 1 : index
    %c0_432 = arith.constant 0 : index
    %c0_433 = arith.constant 0 : index
    %328 = vector.load %arg4[%c1_430, %c1_431, %c0_432, %c0_433] : memref<3x3x2x256xf32, #tpu.memory_space<vmem>>, vector<1x1x2x256xf32>
    %329 = vector.shape_cast %328 : vector<1x1x2x256xf32> to vector<2x256xf32>
    %330 = vector.shape_cast %327 : vector<2x256xf32> to vector<1x1x2x256xf32>
    tpu.vector_store %arg4[%c1_430, %c1_431, %c0_432, %c0_433], %330 {strides = array<i32>} : memref<3x3x2x256xf32, #tpu.memory_space<vmem>>, vector<1x1x2x256xf32>,
    %331 = vector.extract_strided_slice %308 {offsets = [0, 4, 0], sizes = [2, 1, 256], strides = [1, 1, 1]} : vector<2x8x256xf32> to vector<2x1x256xf32>
    %332 = vector.shape_cast %331 : vector<2x1x256xf32> to vector<2x256xf32>
    %333 = vector.extract_strided_slice %308 {offsets = [0, 5, 0], sizes = [2, 1, 256], strides = [1, 1, 1]} : vector<2x8x256xf32> to vector<2x1x256xf32>
    %334 = vector.shape_cast %333 : vector<2x1x256xf32> to vector<2x256xf32>
    %335 = arith.maximumf %332, %334 : vector<2x256xf32>
    %336 = vector.extract_strided_slice %308 {offsets = [0, 6, 0], sizes = [2, 1, 256], strides = [1, 1, 1]} : vector<2x8x256xf32> to vector<2x1x256xf32>
    %337 = vector.shape_cast %336 : vector<2x1x256xf32> to vector<2x256xf32>
    %338 = arith.maximumf %335, %337 : vector<2x256xf32>
    %c1_434 = arith.constant 1 : index
    %c2_435 = arith.constant 2 : index
    %c0_436 = arith.constant 0 : index
    %c0_437 = arith.constant 0 : index
    %339 = vector.load %arg4[%c1_434, %c2_435, %c0_436, %c0_437] : memref<3x3x2x256xf32, #tpu.memory_space<vmem>>, vector<1x1x2x256xf32>
    %340 = vector.shape_cast %339 : vector<1x1x2x256xf32> to vector<2x256xf32>
    %341 = vector.shape_cast %338 : vector<2x256xf32> to vector<1x1x2x256xf32>
    tpu.vector_store %arg4[%c1_434, %c2_435, %c0_436, %c0_437], %341 {strides = array<i32>} : memref<3x3x2x256xf32, #tpu.memory_space<vmem>>, vector<1x1x2x256xf32>,
    %c0_438 = arith.constant 0 : index
    %c4_439 = arith.constant 4 : index
    %c0_440 = arith.constant 0 : index
    %c0_441 = arith.constant 0 : index
    %342 = vector.load %arg5[%c0_438, %c4_439, %c0_440, %c0_441] : memref<2x8x8x256xf32, #tpu.memory_space<vmem>>, vector<2x1x8x256xf32>
    %343 = vector.shape_cast %342 : vector<2x1x8x256xf32> to vector<2x8x256xf32>
    %c0_442 = arith.constant 0 : index
    %c5_443 = arith.constant 5 : index
    %c0_444 = arith.constant 0 : index
    %c0_445 = arith.constant 0 : index
    %344 = vector.load %arg5[%c0_442, %c5_443, %c0_444, %c0_445] : memref<2x8x8x256xf32, #tpu.memory_space<vmem>>, vector<2x1x8x256xf32>
    %345 = vector.shape_cast %344 : vector<2x1x8x256xf32> to vector<2x8x256xf32>
    %346 = arith.maximumf %343, %345 : vector<2x8x256xf32>
    %c0_446 = arith.constant 0 : index
    %c6_447 = arith.constant 6 : index
    %c0_448 = arith.constant 0 : index
    %c0_449 = arith.constant 0 : index
    %347 = vector.load %arg5[%c0_446, %c6_447, %c0_448, %c0_449] : memref<2x8x8x256xf32, #tpu.memory_space<vmem>>, vector<2x1x8x256xf32>
    %348 = vector.shape_cast %347 : vector<2x1x8x256xf32> to vector<2x8x256xf32>
    %349 = arith.maximumf %346, %348 : vector<2x8x256xf32>
    %350 = vector.extract_strided_slice %349 {offsets = [0, 0, 0], sizes = [2, 1, 256], strides = [1, 1, 1]} : vector<2x8x256xf32> to vector<2x1x256xf32>
    %351 = vector.shape_cast %350 : vector<2x1x256xf32> to vector<2x256xf32>
    %352 = vector.extract_strided_slice %349 {offsets = [0, 1, 0], sizes = [2, 1, 256], strides = [1, 1, 1]} : vector<2x8x256xf32> to vector<2x1x256xf32>
    %353 = vector.shape_cast %352 : vector<2x1x256xf32> to vector<2x256xf32>
    %354 = arith.maximumf %351, %353 : vector<2x256xf32>
    %355 = vector.extract_strided_slice %349 {offsets = [0, 2, 0], sizes = [2, 1, 256], strides = [1, 1, 1]} : vector<2x8x256xf32> to vector<2x1x256xf32>
    %356 = vector.shape_cast %355 : vector<2x1x256xf32> to vector<2x256xf32>
    %357 = arith.maximumf %354, %356 : vector<2x256xf32>
    %c2_450 = arith.constant 2 : index
    %c0_451 = arith.constant 0 : index
    %c0_452 = arith.constant 0 : index
    %c0_453 = arith.constant 0 : index
    %358 = vector.load %arg4[%c2_450, %c0_451, %c0_452, %c0_453] : memref<3x3x2x256xf32, #tpu.memory_space<vmem>>, vector<1x1x2x256xf32>
    %359 = vector.shape_cast %358 : vector<1x1x2x256xf32> to vector<2x256xf32>
    %360 = vector.shape_cast %357 : vector<2x256xf32> to vector<1x1x2x256xf32>
    tpu.vector_store %arg4[%c2_450, %c0_451, %c0_452, %c0_453], %360 {strides = array<i32>} : memref<3x3x2x256xf32, #tpu.memory_space<vmem>>, vector<1x1x2x256xf32>,
    %361 = vector.extract_strided_slice %349 {offsets = [0, 2, 0], sizes = [2, 1, 256], strides = [1, 1, 1]} : vector<2x8x256xf32> to vector<2x1x256xf32>
    %362 = vector.shape_cast %361 : vector<2x1x256xf32> to vector<2x256xf32>
    %363 = vector.extract_strided_slice %349 {offsets = [0, 3, 0], sizes = [2, 1, 256], strides = [1, 1, 1]} : vector<2x8x256xf32> to vector<2x1x256xf32>
    %364 = vector.shape_cast %363 : vector<2x1x256xf32> to vector<2x256xf32>
    %365 = arith.maximumf %362, %364 : vector<2x256xf32>
    %366 = vector.extract_strided_slice %349 {offsets = [0, 4, 0], sizes = [2, 1, 256], strides = [1, 1, 1]} : vector<2x8x256xf32> to vector<2x1x256xf32>
    %367 = vector.shape_cast %366 : vector<2x1x256xf32> to vector<2x256xf32>
    %368 = arith.maximumf %365, %367 : vector<2x256xf32>
    %c2_454 = arith.constant 2 : index
    %c1_455 = arith.constant 1 : index
    %c0_456 = arith.constant 0 : index
    %c0_457 = arith.constant 0 : index
    %369 = vector.load %arg4[%c2_454, %c1_455, %c0_456, %c0_457] : memref<3x3x2x256xf32, #tpu.memory_space<vmem>>, vector<1x1x2x256xf32>
    %370 = vector.shape_cast %369 : vector<1x1x2x256xf32> to vector<2x256xf32>
    %371 = vector.shape_cast %368 : vector<2x256xf32> to vector<1x1x2x256xf32>
    tpu.vector_store %arg4[%c2_454, %c1_455, %c0_456, %c0_457], %371 {strides = array<i32>} : memref<3x3x2x256xf32, #tpu.memory_space<vmem>>, vector<1x1x2x256xf32>,
    %372 = vector.extract_strided_slice %349 {offsets = [0, 4, 0], sizes = [2, 1, 256], strides = [1, 1, 1]} : vector<2x8x256xf32> to vector<2x1x256xf32>
    %373 = vector.shape_cast %372 : vector<2x1x256xf32> to vector<2x256xf32>
    %374 = vector.extract_strided_slice %349 {offsets = [0, 5, 0], sizes = [2, 1, 256], strides = [1, 1, 1]} : vector<2x8x256xf32> to vector<2x1x256xf32>
    %375 = vector.shape_cast %374 : vector<2x1x256xf32> to vector<2x256xf32>
    %376 = arith.maximumf %373, %375 : vector<2x256xf32>
    %377 = vector.extract_strided_slice %349 {offsets = [0, 6, 0], sizes = [2, 1, 256], strides = [1, 1, 1]} : vector<2x8x256xf32> to vector<2x1x256xf32>
    %378 = vector.shape_cast %377 : vector<2x1x256xf32> to vector<2x256xf32>
    %379 = arith.maximumf %376, %378 : vector<2x256xf32>
    %c2_458 = arith.constant 2 : index
    %c2_459 = arith.constant 2 : index
    %c0_460 = arith.constant 0 : index
    %c0_461 = arith.constant 0 : index
    %380 = vector.load %arg4[%c2_458, %c2_459, %c0_460, %c0_461] : memref<3x3x2x256xf32, #tpu.memory_space<vmem>>, vector<1x1x2x256xf32>
    %381 = vector.shape_cast %380 : vector<1x1x2x256xf32> to vector<2x256xf32>
    %382 = vector.shape_cast %379 : vector<2x256xf32> to vector<1x1x2x256xf32>
    tpu.vector_store %arg4[%c2_458, %c2_459, %c0_460, %c0_461], %382 {strides = array<i32>} : memref<3x3x2x256xf32, #tpu.memory_space<vmem>>, vector<1x1x2x256xf32>,
    return
  }
  func.func @transform_0(%arg0: i32) -> (i32, i32, i32, i32) {
    %c0_i32 = arith.constant 0 : i32
    %c0_i32_0 = arith.constant 0 : i32
    %c0_i32_1 = arith.constant 0 : i32
    %c0_i32_2 = arith.constant 0 : i32
    %c0_i32_3 = arith.constant 0 : i32
    return %c0_i32, %c0_i32_0, %c0_i32_1, %c0_i32_2 : i32, i32, i32, i32
  }
  func.func @transform_1(%arg0: i32) -> (i32, i32, i32) {
    %c0_i32 = arith.constant 0 : i32
    %c0_i32_0 = arith.constant 0 : i32
    %c0_i32_1 = arith.constant 0 : i32
    %c0_i32_2 = arith.constant 0 : i32
    return %c0_i32, %c0_i32_0, %c0_i32_1 : i32, i32, i32
  }
  func.func @transform_2(%arg0: i32) -> (i32, i32) {
    %c0_i32 = arith.constant 0 : i32
    %c0_i32_0 = arith.constant 0 : i32
    %c0_i32_1 = arith.constant 0 : i32
    return %c0_i32, %c0_i32_0 : i32, i32
  }
  func.func @transform_3(%arg0: i32) -> (i32, i32, i32, i32) {
    %c0_i32 = arith.constant 0 : i32
    %c0_i32_0 = arith.constant 0 : i32
    %c0_i32_1 = arith.constant 0 : i32
    %c0_i32_2 = arith.constant 0 : i32
    %c0_i32_3 = arith.constant 0 : i32
    return %c0_i32, %c0_i32_0, %c0_i32_1, %c0_i32_2 : i32, i32, i32, i32
  }
}

</mosaic_0001>

<bundles_post_ra>
// kernel: alexnet_features2.1
= control target key start
LH: loop header
LB: loop body
LE: loop exit
PB: predicated region body
PF: predicated region fallthrough
CT: control target
= control target key end

     0   :  { %v13009_v1 = vmov 0   ;;  %vm151_vm0 = vcmask 523264   ;;  %vm7916_vm1 = vcmask 1041409   ;;  %vm7918_vm2 = vcmask 1043459   ;;  %s13005_s1 = inlined_call_operand.vmem [shape: bf16[25,64,256], index: 1, kind: input, shape index: {}]   ;;  %s13006_s0 = inlined_call_operand.vmem [shape: f32[2,12,12,64], index: 0, kind: input, shape index: {}]   ;;  %s13007_s2 = inlined_call_operand.vmem [shape: f32[1,256], index: 2, kind: input, shape index: {}]   ;;  %s13008_s3 = inlined_call_operand.vmem [shape: f32[3,3,2,256], index: 3, kind: output, shape index: {}]  }
   0x1   :  { %v9134_v0 = vld [vmem:[%s13005_s1 + $0x34] ss:$8 sps:$4 sm:$0xff]   ;;  %208 = vmatprep.mubr.bf16.mxu0 %v13009_v1  ;;  %248 = vmatprep.mubr.bf16.mxu1 %v13009_v1  ;;  %v9136_v2 = vld [vmem:[%s13005_s1 + $0x30] ss:$8 sps:$4 sm:$0xff]   ;;  %v9137_v3 = vld [vmem:[%s13005_s1 + $0x24] ss:$8 sps:$4 sm:$0xff]  }
   0x2   :  { %184 = vmatprep.subr.bf16.mxu0 %v9134_v0  ;;  %9124 = vmatprep.subr.bf16.mxu1 %v9134_v0  ;;  %v9139_v4 = vld [vmem:[%s13005_s1 + $0x20] ss:$8 sps:$4 sm:$0xff]   ;;  %v9140_v5 = vld [vmem:[%s13005_s1 + $0x14] ss:$8 sps:$4 sm:$0xff]   ;;  %v9142_v6 = vld [vmem:[%s13005_s1 + $0x10] ss:$8 sps:$4 sm:$0xff]  }
   0x3   :  { %185 = vmatpush1.bf16.msra.mxu0 %v9136_v2  ;;  %9128 = vmatpush1.bf16.msra.mxu1 %v9136_v2  ;;  %v9143_v7 = vld [vmem:[%s13005_s1 + $0x4] ss:$8 sps:$4 sm:$0xff]   ;;  %v9145_v8 = vld [vmem:[%s13005_s1] ss:$8 sps:$4 sm:$0xff]   ;;  %v9491_v10 = vld [vmem:[%s13006_s0 + $0x10] sm:$0xff]  ;;  %vm7920_vm3 = vcmask 1045509  }
   0x4   :  { %186 = vmatprep.subr.bf16.mxu0 %v9137_v3  ;;  %9125 = vmatprep.subr.bf16.mxu1 %v9137_v3  ;;  %v47_v9 = vld [vmem:[%s13006_s0] sm:$0xff]  ;;  %v56_v12 = vld [vmem:[%s13006_s0 + $0xd0] sm:$0xff]  ;;  %vm7922_vm4 = vcmask 1047559  }
   0x5   :  { %v55_v11 = vld [vmem:[%s13006_s0 + $0xc0] sm:$0xff]  ;;  %v9148_v13 = vld [vmem:[%s13005_s1 + $0x74] ss:$8 sps:$4 sm:$0xff]   ;;  %v63_v15 = vpack.c.bf16 %v9491_v10, %v47_v9  ;;  %v9146_v17 = vld [vmem:[%s13005_s1 + $0x70] ss:$8 sps:$4 sm:$0xff]  }
   0x6   :  { %v9151_v14 = vld [vmem:[%s13005_s1 + $0xb4] ss:$8 sps:$4 sm:$0xff]   ;;  %v67_v16 = vpack.c.bf16 %v56_v12, %v55_v11  ;;  %v9149_v18 = vld [vmem:[%s13005_s1 + $0xb0] ss:$8 sps:$4 sm:$0xff]   ;;  %v9515_v19 = vld [vmem:[%s13006_s0 + $0x20] sm:$0xff] }
   0x7   :  { %187 = vmatpush1.bf16.msra.mxu0 %v9139_v4  ;;  %9129 = vmatpush1.bf16.msra.mxu1 %v9139_v4  ;;  %v9520_v20 = vld [vmem:[%s13006_s0 + $0x30] sm:$0xff]  ;;  %v57_v21 = vld [vmem:[%s13006_s0 + $0xe0] sm:$0xff]  ;;  %v1594_v55 = vpack.c.bf16 %v9515_v19, %v9491_v10 }
   0x8   :  { %188 = vmatprep.subr.bf16.mxu0 %v9140_v5  ;;  %9126 = vmatprep.subr.bf16.mxu1 %v9140_v5  ;;  %v9154_v22 = vld [vmem:[%s13005_s1 + $0x64] ss:$8 sps:$4 sm:$0xff]   ;;  %v58_v24 = vld [vmem:[%s13006_s0 + $0xf0] sm:$0xff]  ;;  %v9152_v25 = vld [vmem:[%s13005_s1 + $0x60] ss:$8 sps:$4 sm:$0xff]   ;;  %v64_v29 = vpack.c.bf16 %v9520_v20, %v9515_v19 }
   0x9   :  { %v9157_v23 = vld [vmem:[%s13005_s1 + $0xa4] ss:$8 sps:$4 sm:$0xff]   ;;  %v9155_v26 = vld [vmem:[%s13005_s1 + $0xa0] ss:$8 sps:$4 sm:$0xff]   ;;  %v9160_v27 = vld [vmem:[%s13005_s1 + $0x54] ss:$8 sps:$4 sm:$0xff]   ;;  %v68_v30 = vpack.c.bf16 %v58_v24, %v57_v21 }
   0xa   :  { %v9163_v28 = vld [vmem:[%s13005_s1 + $0x94] ss:$8 sps:$4 sm:$0xff]   ;;  %v9158_v31 = vld [vmem:[%s13005_s1 + $0x50] ss:$8 sps:$4 sm:$0xff]   ;;  %v9166_v33 = vld [vmem:[%s13005_s1 + $0x44] ss:$8 sps:$4 sm:$0xff]  }
   0xb   :  { %189 = vmatpush1.bf16.msra.mxu0 %v9142_v6  ;;  %9130 = vmatpush1.bf16.msra.mxu1 %v9142_v6  ;;  %v9161_v32 = vld [vmem:[%s13005_s1 + $0x90] ss:$8 sps:$4 sm:$0xff]   ;;  %v9169_v34 = vld [vmem:[%s13005_s1 + $0x84] ss:$8 sps:$4 sm:$0xff]   ;;  %v9164_v39 = vld [vmem:[%s13005_s1 + $0x40] ss:$8 sps:$4 sm:$0xff]  }
   0xc   :  { %190 = vmatprep.subr.bf16.mxu0 %v9143_v7  ;;  %9127 = vmatprep.subr.bf16.mxu1 %v9143_v7  ;;  %v9569_v35 = vld [vmem:[%s13006_s0 + $0x40] sm:$0xff]  ;;  %v9574_v36 = vld [vmem:[%s13006_s0 + $0x50] sm:$0xff] }
   0xd   :  { %v9579_v37 = vld [vmem:[%s13006_s0 + $0x100] sm:$0xff]  ;;  %v9586_v38 = vld [vmem:[%s13006_s0 + $0x110] sm:$0xff]  ;;  %v65_v43 = vpack.c.bf16 %v9574_v36, %v9569_v35 }
   0xe   :  { %v9167_v40 = vld [vmem:[%s13005_s1 + $0x80] ss:$8 sps:$4 sm:$0xff]   ;;  %v9172_v41 = vld [vmem:[%s13005_s1 + $0xf4] ss:$8 sps:$4 sm:$0xff]   ;;  %v69_v44 = vpack.c.bf16 %v9586_v38, %v9579_v37  ;;  %v9170_v58 = vld [vmem:[%s13005_s1 + $0xf0] ss:$8 sps:$4 sm:$0xff]  }
   0xf   :  { %191 = vmatpush1.bf16.msra.mxu0 %v9145_v8  ;;  %9131 = vmatpush1.bf16.msra.mxu1 %v9145_v8  ;;  %v9175_v42 = vld [vmem:[%s13005_s1 + $0x134] ss:$8 sps:$4 sm:$0xff]   ;;  %v9609_v45 = vld [vmem:[%s13006_s0 + $0x60] sm:$0xff]  ;;  %v9173_v59 = vld [vmem:[%s13005_s1 + $0x130] ss:$8 sps:$4 sm:$0xff]   ;;  %v1595_v8 = vpack.c.bf16 %v9569_v35, %v9520_v20 }
  0x10   :  { %490 = vmatprep.subr.bf16.mxu1 %v9148_v13  ;;  %796 = vmatprep.subr.bf16.mxu0 %v9151_v14  ;;  %v9614_v46 = vld [vmem:[%s13006_s0 + $0x70] sm:$0xff]  ;;  %v9621_v47 = vld [vmem:[%s13006_s0 + $0x120] sm:$0xff] }
  0x11   :  { %v9626_v48 = vld [vmem:[%s13006_s0 + $0x130] sm:$0xff]  ;;  %v66_v49 = vpack.c.bf16 %v9614_v46, %v9609_v45  ;;  %v353_v51 = vld [vmem:[%s13006_s0 + $0x1] sm:$0xff] }
  0x12   :  { %8212 = vmatmul.mubr.msk.bf16.vlgmr.msra.gmra.mxu0 %vm151_vm0, %v63_v15  ;;  %8216 = vmatmul.mubr.msk.bf16.vlgmr.msra.gmra.mxu1 %vm151_vm0, %v67_v16  ;;  %v70_v50 = vpack.c.bf16 %v9626_v48, %v9621_v47  ;;  %v9642_v52 = vld [vmem:[%s13006_s0 + $0x11] sm:$0xff]  ;;  %v659_v53 = vld [vmem:[%s13006_s0 + $0x2] sm:$0xff] }
  0x13   :  { %491 = vmatpush1.bf16.msra.mxu1 %v9146_v17  ;;  %797 = vmatpush1.bf16.msra.mxu0 %v9149_v18  ;;  %v9650_v54 = vld [vmem:[%s13006_s0 + $0x12] sm:$0xff]  ;;  %v369_v56 = vpack.c.bf16 %v9642_v52, %v353_v51  ;;  %v9665_v60 = vld [vmem:[%s13006_s0 + $0x21] sm:$0xff] }
  0x14   :  { %218 = vmatprep.mubr.bf16.mxu0 %v13009_v1  ;;  %258 = vmatprep.mubr.bf16.mxu1 %v13009_v1  ;;  %v675_v57 = vpack.c.bf16 %v9650_v54, %v659_v53  ;;  %v9178_v61 = vld [vmem:[%s13005_s1 + $0xe4] ss:$8 sps:$4 sm:$0xff]   ;;  %v1900_v62 = vpack.c.bf16 %v9665_v60, %v9642_v52  ;;  %v9675_v63 = vld [vmem:[%s13006_s0 + $0x31] sm:$0xff]  ;;  %v9176_v4 = vld [vmem:[%s13005_s1 + $0xe0] ss:$8 sps:$4 sm:$0xff]  }
  0x15   :  { %492 = vmatprep.subr.bf16.mxu1 %v9154_v22  ;;  %798 = vmatprep.subr.bf16.mxu0 %v9157_v23  ;;  %v9181_v0 = vld [vmem:[%s13005_s1 + $0x124] ss:$8 sps:$4 sm:$0xff]   ;;  %v9690_v3 = vld [vmem:[%s13006_s0 + $0x32] sm:$0xff]  ;;  %v9179_v5 = vld [vmem:[%s13005_s1 + $0x120] ss:$8 sps:$4 sm:$0xff]   ;;  %v370_v9 = vpack.c.bf16 %v9675_v63, %v9665_v60 }
  0x16   :  { %v9685_v2 = vld [vmem:[%s13006_s0 + $0x22] sm:$0xff]  ;;  %v9184_v6 = vld [vmem:[%s13005_s1 + $0xd4] ss:$8 sps:$4 sm:$0xff]   ;;  %v9182_v13 = vld [vmem:[%s13005_s1 + $0xd0] ss:$8 sps:$4 sm:$0xff]  }
  0x17   :  { %493 = vmatpush1.bf16.msra.mxu1 %v9152_v25  ;;  %799 = vmatpush1.bf16.msra.mxu0 %v9155_v26  ;;  %v9187_v7 = vld [vmem:[%s13005_s1 + $0x114] ss:$8 sps:$4 sm:$0xff]   ;;  %v676_v11 = vpack.c.bf16 %v9690_v3, %v9685_v2  ;;  %v9715_v12 = vld [vmem:[%s13006_s0 + $0x41] sm:$0xff]  ;;  %v9185_v14 = vld [vmem:[%s13005_s1 + $0x110] ss:$8 sps:$4 sm:$0xff]   ;;  %v1596_v25 = vpack.c.bf16 %v9609_v45, %v9574_v36 }
  0x18   :  { %494 = vmatprep.subr.bf16.mxu1 %v9160_v27  ;;  %800 = vmatprep.subr.bf16.mxu0 %v9163_v28  ;;  %v1901_v15 = vpack.c.bf16 %v9715_v12, %v9675_v63  ;;  %v9190_v16 = vld [vmem:[%s13005_s1 + $0xc4] ss:$8 sps:$4 sm:$0xff]   ;;  %v9736_v18 = vld [vmem:[%s13006_s0 + $0x51] sm:$0xff]  ;;  %v9188_v23 = vld [vmem:[%s13005_s1 + $0xc0] ss:$8 sps:$4 sm:$0xff]  }
  0x19   :  { %v9193_v17 = vld [vmem:[%s13005_s1 + $0x104] ss:$8 sps:$4 sm:$0xff]   ;;  %v9748_v22 = vld [vmem:[%s13006_s0 + $0x52] sm:$0xff]  ;;  %v9191_v24 = vld [vmem:[%s13005_s1 + $0x100] ss:$8 sps:$4 sm:$0xff]   ;;  %v371_v28 = vpack.c.bf16 %v9736_v18, %v9715_v12 }
  0x1a   :  { %8213 = vmatmul.mubr.msk.bf16.gmra.mxu0 %vm151_vm0, %v64_v29  ;;  %8217 = vmatmul.mubr.msk.bf16.gmra.mxu1 %vm151_vm0, %v68_v30  ;;  %v9741_v21 = vld [vmem:[%s13006_s0 + $0x42] sm:$0xff]  ;;  %v9196_v26 = vld [vmem:[%s13005_s1 + $0x174] ss:$8 sps:$4 sm:$0xff]   ;;  %v9218_v53 = vld [vmem:[%s13005_s1 + $0x1f0] ss:$8 sps:$4 sm:$0xff]  }
  0x1b   :  { %228 = vmatprep.mubr.bf16.mxu0 %v13009_v1  ;;  %268 = vmatprep.mubr.bf16.mxu1 %v13009_v1  ;;  %v9199_v27 = vld [vmem:[%s13005_s1 + $0x1b4] ss:$8 sps:$4 sm:$0xff]   ;;  %v677_v29 = vpack.c.bf16 %v9748_v22, %v9741_v21  ;;  %v9771_v30 = vld [vmem:[%s13006_s0 + $0x61] sm:$0xff]  ;;  %v9230_v52 = vld [vmem:[%s13005_s1 + $0x1d0] ss:$8 sps:$4 sm:$0xff]  }
  0x1c   :  { %495 = vmatpush1.bf16.msra.mxu1 %v9158_v31  ;;  %801 = vmatpush1.bf16.msra.mxu0 %v9161_v32  ;;  %v9780_v32 = vld [vmem:[%s13006_s0 + $0x71] sm:$0xff]  ;;  %v9238_v60 = vld [vmem:[%s13005_s1 + $0x1c4] ss:$8 sps:$4 sm:$0xff]   ;;  %v9239_v20 = vld [vmem:[%s13005_s1 + $0x200] ss:$8 sps:$4 sm:$0xff]  }
  0x1d   :  { %496 = vmatprep.subr.bf16.mxu1 %v9166_v33  ;;  %802 = vmatprep.subr.bf16.mxu0 %v9169_v34  ;;  %v9787_v33 = vld [vmem:[%s13006_s0 + $0x62] sm:$0xff]  ;;  %v9792_v34 = vld [vmem:[%s13006_s0 + $0x72] sm:$0xff] }
  0x1e   :  { %v9221_v31 = vld [vmem:[%s13005_s1 + $0x230] ss:$8 sps:$4 sm:$0xff]   ;;  %v9232_v10 = vld [vmem:[%s13005_s1 + $0x1d4] ss:$8 sps:$4 sm:$0xff]   ;;  %v10210_v12 = vld [vmem:[%s13006_s0 + $0x80] sm:$0xff] }
  0x1f   :  { %v9235_v19 = vld [vmem:[%s13005_s1 + $0x214] ss:$8 sps:$4 sm:$0xff]   ;;  %13050 = vst [vmem:[#allocation4_spill] sm:$0xff] %v10210_v12  ;;  %v8363_v36 = vld [vmem:[%s13006_s0 + $0x81] sm:$0xff]  ;;  %v1597_v45 = vpack.c.bf16 %v10210_v12, %v9614_v46 }
  0x20   :  { %497 = vmatpush1.bf16.msra.mxu1 %v9164_v39  ;;  %803 = vmatpush1.bf16.msra.mxu0 %v9167_v40  ;;  %v372_v39 = vpack.c.bf16 %v9780_v32, %v9771_v30  ;;  %v678_v40 = vpack.c.bf16 %v9792_v34, %v9787_v33  ;;  %v9244_v35 = vld [vmem:[%s13005_s1 + $0x274] ss:$8 sps:$4 sm:$0xff]  }
  0x21   :  { %1102 = vmatprep.subr.bf16.mxu1 %v9172_v41  ;;  %1408 = vmatprep.subr.bf16.mxu0 %v9175_v42  ;;  %v361_v41 = vld [vmem:[%s13006_s0 + $0xc1] sm:$0xff]  ;;  %v9804_v42 = vld [vmem:[%s13006_s0 + $0xd1] sm:$0xff] }
  0x22   :  { %8214 = vmatmul.mubr.msk.bf16.gmra.mxu0 %vm151_vm0, %v65_v43  ;;  %8218 = vmatmul.mubr.msk.bf16.gmra.mxu1 %vm151_vm0, %v69_v44  ;;  %v667_v43 = vld [vmem:[%s13006_s0 + $0xc2] sm:$0xff]  ;;  %v9812_v44 = vld [vmem:[%s13006_s0 + $0xd2] sm:$0xff] }
  0x23   :  { %238 = vmatprep.mubr.bf16.mxu0 %v13009_v1  ;;  %278 = vmatprep.mubr.bf16.mxu1 %v13009_v1  ;;  %v679_v51 = vpack.c.bf16 %v9812_v44, %v667_v43  ;;  %v9247_v63 = vld [vmem:[%s13005_s1 + $0x2b4] ss:$8 sps:$4 sm:$0xff]  }
  0x2a   :  { %8215 = vmatmul.mubr.msk.bf16.gmra.mxu0 %vm151_vm0, %v66_v49  ;;  %8219 = vmatmul.mubr.msk.bf16.gmra.mxu1 %vm151_vm0, %v70_v50  ;;  %v9821_v49 = vld [vmem:[%s13006_s0 + $0xe1] sm:$0xff]  ;;  %v373_v50 = vpack.c.bf16 %v9804_v42, %v361_v41  ;;  %v9197_v41 = vld [vmem:[%s13005_s1 + $0x1b0] ss:$8 sps:$4 sm:$0xff]  }
  0x2b   :  { %514 = vmatprep.mubr.bf16.mxu1 %v13009_v1  ;;  %820 = vmatprep.mubr.bf16.mxu0 %v13009_v1 }
  0x32   :  { %8236 = vmatmul.mubr.msk.bf16.vlgmr.msra.gmra.mxu1 %vm151_vm0, %v369_v56  ;;  %8260 = vmatmul.mubr.msk.bf16.vlgmr.msra.gmra.mxu0 %vm151_vm0, %v675_v57  ;;  %v9830_v56 = vld [vmem:[%s13006_s0 + $0xf1] sm:$0xff]  ;;  %v9837_v57 = vld [vmem:[%s13006_s0 + $0xe2] sm:$0xff] }
  0x33   :  { %1103 = vmatpush1.bf16.msra.mxu1 %v9170_v58  ;;  %1409 = vmatpush1.bf16.msra.mxu0 %v9173_v59  ;;  %v9842_v58 = vld [vmem:[%s13006_s0 + $0xf2] sm:$0xff]  ;;  %v9849_v59 = vld [vmem:[%s13006_s0 + $0x101] sm:$0xff] }
  0x34   :  { %524 = vmatprep.mubr.bf16.mxu1 %v13009_v1  ;;  %830 = vmatprep.mubr.bf16.mxu0 %v13009_v1 }
  0x35   :  { %1104 = vmatprep.subr.bf16.mxu1 %v9178_v61  ;;  %1410 = vmatprep.subr.bf16.mxu0 %v9181_v0  ;;  %v374_v61 = vpack.c.bf16 %v9830_v56, %v9821_v49  ;;  %v680_v0 = vpack.c.bf16 %v9842_v58, %v9837_v57 }
  0x37   :  { %1105 = vmatpush1.bf16.msra.mxu1 %v9176_v4  ;;  %1411 = vmatpush1.bf16.msra.mxu0 %v9179_v5  ;;  %v9860_v5 = vld [vmem:[%s13006_s0 + $0x111] sm:$0xff] }
  0x38   :  { %1106 = vmatprep.subr.bf16.mxu1 %v9184_v6  ;;  %1412 = vmatprep.subr.bf16.mxu0 %v9187_v7  ;;  %v9865_v6 = vld [vmem:[%s13006_s0 + $0x102] sm:$0xff]  ;;  %v9870_v7 = vld [vmem:[%s13006_s0 + $0x112] sm:$0xff] }
  0x39   :  { %v10115_v4 = vld [vmem:[%s13006_s0 + $0x133] sm:$0xff] }
  0x3a   :  { %8237 = vmatmul.mubr.msk.bf16.gmra.mxu1 %vm151_vm0, %v370_v9  ;;  %8261 = vmatmul.mubr.msk.bf16.gmra.mxu0 %vm151_vm0, %v676_v11  ;;  %v9879_v9 = vld [vmem:[%s13006_s0 + $0x121] sm:$0xff]  ;;  %v375_v11 = vpack.c.bf16 %v9860_v5, %v9849_v59  ;;  %13048 = vst [vmem:[#allocation3_spill] sm:$0xff] %v10115_v4 }
  0x3b   :  { %534 = vmatprep.mubr.bf16.mxu1 %v13009_v1  ;;  %840 = vmatprep.mubr.bf16.mxu0 %v13009_v1 }
  0x3c   :  { %1107 = vmatpush1.bf16.msra.mxu1 %v9182_v13  ;;  %1413 = vmatpush1.bf16.msra.mxu0 %v9185_v14  ;;  %v681_v13 = vpack.c.bf16 %v9870_v7, %v9865_v6  ;;  %v10108_v14 = vld [vmem:[%s13006_s0 + $0x123] sm:$0xff] }
  0x3d   :  { %1108 = vmatprep.subr.bf16.mxu1 %v9190_v16  ;;  %1414 = vmatprep.subr.bf16.mxu0 %v9193_v17  ;;  %v9890_v16 = vld [vmem:[%s13006_s0 + $0x131] sm:$0xff]  ;;  %v9897_v17 = vld [vmem:[%s13006_s0 + $0x122] sm:$0xff] }
  0x40   :  { %1109 = vmatpush1.bf16.msra.mxu1 %v9188_v23  ;;  %1415 = vmatpush1.bf16.msra.mxu0 %v9191_v24  ;;  %v674_v23 = vld [vmem:[%s13006_s0 + $0x132] sm:$0xff]  ;;  %v376_v24 = vpack.c.bf16 %v9890_v16, %v9879_v9 }
  0x41   :  { %1715 = vmatprep.subr.bf16.mxu1 %v9196_v26  ;;  %2021 = vmatprep.subr.bf16.mxu0 %v9199_v27  ;;  %v682_v26 = vpack.c.bf16 %v674_v23, %v9897_v17  ;;  %v965_v27 = vld [vmem:[%s13006_s0 + $0x3] sm:$0xff]  ;;  %v1274_v23 = vld [vmem:[%s13006_s0 + $0x34] sm:$0xff] }
  0x42   :  { %8238 = vmatmul.mubr.msk.bf16.gmra.mxu1 %vm151_vm0, %v371_v28  ;;  %8262 = vmatmul.mubr.msk.bf16.gmra.mxu0 %vm151_vm0, %v677_v29  ;;  %v9913_v28 = vld [vmem:[%s13006_s0 + $0x13] sm:$0xff]  ;;  %v1271_v29 = vld [vmem:[%s13006_s0 + $0x4] sm:$0xff] }
  0x43   :  { %544 = vmatprep.mubr.bf16.mxu1 %v13009_v1  ;;  %850 = vmatprep.mubr.bf16.mxu0 %v13009_v1  ;;  %v981_v43 = vpack.c.bf16 %v9913_v28, %v965_v27  ;;  %v9208_v27 = vld [vmem:[%s13005_s1 + $0x154] ss:$8 sps:$4 sm:$0xff]  }
  0x4a   :  { %8239 = vmatmul.mubr.msk.bf16.gmra.mxu1 %vm151_vm0, %v372_v39  ;;  %8263 = vmatmul.mubr.msk.bf16.gmra.mxu0 %vm151_vm0, %v678_v40  ;;  %v1272_v39 = vld [vmem:[%s13006_s0 + $0x14] sm:$0xff] }
  0x4b   :  { %554 = vmatprep.mubr.bf16.mxu1 %v13009_v1  ;;  %860 = vmatprep.mubr.bf16.mxu0 %v13009_v1  ;;  %v9194_v40 = vld [vmem:[%s13005_s1 + $0x170] ss:$8 sps:$4 sm:$0xff]  }
  0x52   :  { %8240 = vmatmul.mubr.msk.bf16.gmra.mxu1 %vm151_vm0, %v373_v50  ;;  %8264 = vmatmul.mubr.msk.bf16.gmra.mxu0 %vm151_vm0, %v679_v51  ;;  %v1287_v50 = vpack.c.bf16 %v1272_v39, %v1271_v29  ;;  %v9202_v51 = vld [vmem:[%s13005_s1 + $0x164] ss:$8 sps:$4 sm:$0xff]   ;;  %v9211_v29 = vld [vmem:[%s13005_s1 + $0x194] ss:$8 sps:$4 sm:$0xff]  }
  0x53   :  { %564 = vmatprep.mubr.bf16.mxu1 %v13009_v1  ;;  %870 = vmatprep.mubr.bf16.mxu0 %v13009_v1 }
  0x5a   :  { %8241 = vmatmul.mubr.msk.bf16.gmra.mxu1 %vm151_vm0, %v374_v61  ;;  %8265 = vmatmul.mubr.msk.bf16.gmra.mxu0 %vm151_vm0, %v680_v0  ;;  %v9205_v61 = vld [vmem:[%s13005_s1 + $0x1a4] ss:$8 sps:$4 sm:$0xff]  }
  0x5b   :  { %574 = vmatprep.mubr.bf16.mxu1 %v13009_v1  ;;  %880 = vmatprep.mubr.bf16.mxu0 %v13009_v1  ;;  %v9941_v0 = vld [vmem:[%s13006_s0 + $0x23] sm:$0xff] }
  0x62   :  { %8242 = vmatmul.mubr.msk.bf16.gmra.mxu1 %vm151_vm0, %v375_v11  ;;  %8266 = vmatmul.mubr.msk.bf16.gmra.mxu0 %vm151_vm0, %v681_v13  ;;  %v9946_v11 = vld [vmem:[%s13006_s0 + $0x33] sm:$0xff]  ;;  %v1273_v13 = vld [vmem:[%s13006_s0 + $0x24] sm:$0xff] }
  0x63   :  { %584 = vmatprep.mubr.bf16.mxu1 %v13009_v1  ;;  %890 = vmatprep.mubr.bf16.mxu0 %v13009_v1  ;;  %v982_v39 = vpack.c.bf16 %v9946_v11, %v9941_v0 }
  0x6a   :  { %8243 = vmatmul.mubr.msk.bf16.gmra.mxu1 %vm151_vm0, %v376_v24  ;;  %8267 = vmatmul.mubr.msk.bf16.gmra.mxu0 %vm151_vm0, %v682_v26  ;;  %v9200_v24 = vld [vmem:[%s13005_s1 + $0x160] ss:$8 sps:$4 sm:$0xff]  }
  0x6b   :  { %1126 = vmatprep.mubr.bf16.mxu1 %v13009_v1  ;;  %1432 = vmatprep.mubr.bf16.mxu0 %v13009_v1  ;;  %v9203_v26 = vld [vmem:[%s13005_s1 + $0x1a0] ss:$8 sps:$4 sm:$0xff]  }
  0x72   :  { %8284 = vmatmul.mubr.msk.bf16.vlgmr.msra.gmra.mxu1 %vm151_vm0, %v981_v43  ;;  %8308 = vmatmul.mubr.msk.bf16.vlgmr.msra.gmra.mxu0 %vm151_vm0, %v1287_v50  ;;  %v1288_v43 = vpack.c.bf16 %v1274_v23, %v1273_v13  ;;  %v9206_v50 = vld [vmem:[%s13005_s1 + $0x150] ss:$8 sps:$4 sm:$0xff]   ;;  %v1275_v23 = vld [vmem:[%s13006_s0 + $0x44] sm:$0xff] }
  0x73   :  { %1716 = vmatpush1.bf16.msra.mxu1 %v9194_v40  ;;  %2022 = vmatpush1.bf16.msra.mxu0 %v9197_v41  ;;  %v9209_v40 = vld [vmem:[%s13005_s1 + $0x190] ss:$8 sps:$4 sm:$0xff]   ;;  %v9214_v41 = vld [vmem:[%s13005_s1 + $0x144] ss:$8 sps:$4 sm:$0xff]  }
  0x74   :  { %1136 = vmatprep.mubr.bf16.mxu1 %v13009_v1  ;;  %1442 = vmatprep.mubr.bf16.mxu0 %v13009_v1  ;;  %v9996_v13 = vld [vmem:[%s13006_s0 + $0x53] sm:$0xff] }
  0x75   :  { %1717 = vmatprep.subr.bf16.mxu1 %v9202_v51  ;;  %2023 = vmatprep.subr.bf16.mxu0 %v9205_v61  ;;  %v9217_v51 = vld [vmem:[%s13005_s1 + $0x184] ss:$8 sps:$4 sm:$0xff]  }
  0x76   :  { %v9989_v61 = vld [vmem:[%s13006_s0 + $0x43] sm:$0xff] }
  0x77   :  { %1718 = vmatpush1.bf16.msra.mxu1 %v9200_v24  ;;  %2024 = vmatpush1.bf16.msra.mxu0 %v9203_v26  ;;  %v1276_v24 = vld [vmem:[%s13006_s0 + $0x54] sm:$0xff]  ;;  %v9212_v26 = vld [vmem:[%s13005_s1 + $0x140] ss:$8 sps:$4 sm:$0xff]  }
  0x78   :  { %1719 = vmatprep.subr.bf16.mxu1 %v9208_v27  ;;  %2025 = vmatprep.subr.bf16.mxu0 %v9211_v29  ;;  %v9215_v27 = vld [vmem:[%s13005_s1 + $0x180] ss:$8 sps:$4 sm:$0xff]   ;;  %v9220_v29 = vld [vmem:[%s13005_s1 + $0x1f4] ss:$8 sps:$4 sm:$0xff]  }
  0x7a   :  { %8285 = vmatmul.mubr.msk.bf16.gmra.mxu1 %vm151_vm0, %v982_v39  ;;  %8309 = vmatmul.mubr.msk.bf16.gmra.mxu0 %vm151_vm0, %v1288_v43  ;;  %v9223_v39 = vld [vmem:[%s13005_s1 + $0x234] ss:$8 sps:$4 sm:$0xff]   ;;  %v983_v43 = vpack.c.bf16 %v9996_v13, %v9989_v61 }
  0x7b   :  { %1146 = vmatprep.mubr.bf16.mxu1 %v13009_v1  ;;  %1452 = vmatprep.mubr.bf16.mxu0 %v13009_v1 }
  0x7c   :  { %1720 = vmatpush1.bf16.msra.mxu1 %v9206_v50  ;;  %2026 = vmatpush1.bf16.msra.mxu0 %v9209_v40  ;;  %v1289_v50 = vpack.c.bf16 %v1276_v24, %v1275_v23  ;;  %v10023_v40 = vld [vmem:[%s13006_s0 + $0x63] sm:$0xff]  ;;  %v1278_v23 = vld [vmem:[%s13006_s0 + $0x74] sm:$0xff] }
  0x7d   :  { %1721 = vmatprep.subr.bf16.mxu1 %v9214_v41  ;;  %2027 = vmatprep.subr.bf16.mxu0 %v9217_v51  ;;  %v10030_v41 = vld [vmem:[%s13006_s0 + $0x73] sm:$0xff]  ;;  %v1277_v51 = vld [vmem:[%s13006_s0 + $0x64] sm:$0xff] }
  0x7e   :  { %v984_v24 = vpack.c.bf16 %v10030_v41, %v10023_v40 }
  0x80   :  { %1722 = vmatpush1.bf16.msra.mxu1 %v9212_v26  ;;  %2028 = vmatpush1.bf16.msra.mxu0 %v9215_v27  ;;  %v1290_v26 = vpack.c.bf16 %v1278_v23, %v1277_v51  ;;  %v973_v27 = vld [vmem:[%s13006_s0 + $0xc3] sm:$0xff] }
  0x81   :  { %2327 = vmatprep.subr.bf16.mxu1 %v9220_v29  ;;  %2633 = vmatprep.subr.bf16.mxu0 %v9223_v39  ;;  %v10050_v29 = vld [vmem:[%s13006_s0 + $0xd3] sm:$0xff]  ;;  %v1279_v39 = vld [vmem:[%s13006_s0 + $0xc4] sm:$0xff] }
  0x82   :  { %8286 = vmatmul.mubr.msk.bf16.gmra.mxu1 %vm151_vm0, %v983_v43  ;;  %8310 = vmatmul.mubr.msk.bf16.gmra.mxu0 %vm151_vm0, %v1289_v50  ;;  %v1280_v43 = vld [vmem:[%s13006_s0 + $0xd4] sm:$0xff]  ;;  %v985_v50 = vpack.c.bf16 %v10050_v29, %v973_v27  ;;  %v10064_v23 = vld [vmem:[%s13006_s0 + $0xe3] sm:$0xff] }
  0x83   :  { %1156 = vmatprep.mubr.bf16.mxu1 %v13009_v1  ;;  %1462 = vmatprep.mubr.bf16.mxu0 %v13009_v1  ;;  %v1291_v51 = vpack.c.bf16 %v1280_v43, %v1279_v39  ;;  %v1282_v27 = vld [vmem:[%s13006_s0 + $0xf4] sm:$0xff] }
  0x8a   :  { %8287 = vmatmul.mubr.msk.bf16.gmra.mxu1 %vm151_vm0, %v984_v24  ;;  %8311 = vmatmul.mubr.msk.bf16.gmra.mxu0 %vm151_vm0, %v1290_v26  ;;  %v10071_v24 = vld [vmem:[%s13006_s0 + $0xf3] sm:$0xff]  ;;  %v1281_v26 = vld [vmem:[%s13006_s0 + $0xe4] sm:$0xff] }
  0x8b   :  { %1166 = vmatprep.mubr.bf16.mxu1 %v13009_v1  ;;  %1472 = vmatprep.mubr.bf16.mxu0 %v13009_v1  ;;  %v986_v39 = vpack.c.bf16 %v10071_v24, %v10064_v23  ;;  %v1292_v43 = vpack.c.bf16 %v1282_v27, %v1281_v26  ;;  %v1283_v26 = vld [vmem:[%s13006_s0 + $0x104] sm:$0xff]  ;;  %v1284_v27 = vld [vmem:[%s13006_s0 + $0x114] sm:$0xff] }
  0x92   :  { %8288 = vmatmul.mubr.msk.bf16.gmra.mxu1 %vm151_vm0, %v985_v50  ;;  %8312 = vmatmul.mubr.msk.bf16.gmra.mxu0 %vm151_vm0, %v1291_v51  ;;  %v10086_v50 = vld [vmem:[%s13006_s0 + $0x103] sm:$0xff]  ;;  %v10093_v51 = vld [vmem:[%s13006_s0 + $0x113] sm:$0xff] }
  0x93   :  { %1176 = vmatprep.mubr.bf16.mxu1 %v13009_v1  ;;  %1482 = vmatprep.mubr.bf16.mxu0 %v13009_v1 }
  0x9a   :  { %8289 = vmatmul.mubr.msk.bf16.gmra.mxu1 %vm151_vm0, %v986_v39  ;;  %8313 = vmatmul.mubr.msk.bf16.gmra.mxu0 %vm151_vm0, %v1292_v43  ;;  %v987_v39 = vpack.c.bf16 %v10093_v51, %v10086_v50  ;;  %v1293_v43 = vpack.c.bf16 %v1284_v27, %v1283_v26  ;;  %v1285_v26 = vld [vmem:[%s13006_s0 + $0x124] sm:$0xff]  ;;  %v1286_v27 = vld [vmem:[%s13006_s0 + $0x134] sm:$0xff] }
  0x9b   :  { %1186 = vmatprep.mubr.bf16.mxu1 %v13009_v1  ;;  %1492 = vmatprep.mubr.bf16.mxu0 %v13009_v1 }
  0xa2   :  { %8290 = vmatmul.mubr.msk.bf16.gmra.mxu1 %vm151_vm0, %v987_v39  ;;  %8314 = vmatmul.mubr.msk.bf16.gmra.mxu0 %vm151_vm0, %v1293_v43  ;;  %v988_v39 = vpack.c.bf16 %v10115_v4, %v10108_v14  ;;  %v1294_v43 = vpack.c.bf16 %v1286_v27, %v1285_v26  ;;  %v9226_v26 = vld [vmem:[%s13005_s1 + $0x1e4] ss:$8 sps:$4 sm:$0xff]  }
  0xa3   :  { %1196 = vmatprep.mubr.bf16.mxu1 %v13009_v1  ;;  %1502 = vmatprep.mubr.bf16.mxu0 %v13009_v1  ;;  %v9229_v27 = vld [vmem:[%s13005_s1 + $0x224] ss:$8 sps:$4 sm:$0xff]  }
  0xaa   :  { %8291 = vmatmul.mubr.msk.bf16.gmra.mxu1 %vm151_vm0, %v988_v39  ;;  %8315 = vmatmul.mubr.msk.bf16.gmra.mxu0 %vm151_vm0, %v1294_v43  ;;  %v9224_v39 = vld [vmem:[%s13005_s1 + $0x1e0] ss:$8 sps:$4 sm:$0xff]  }
  0xab   :  { %1739 = vmatprep.mubr.bf16.mxu1 %v13009_v1  ;;  %2045 = vmatprep.mubr.bf16.mxu0 %v13009_v1  ;;  %v9227_v43 = vld [vmem:[%s13005_s1 + $0x220] ss:$8 sps:$4 sm:$0xff]  }
  0xb2   :  { %8348 = vmatmul.mubr.msk.bf16.vlgmr.msra.gmra.mxu1 %vm151_vm0, %v1594_v55  ;;  %8388 = vmatmul.mubr.msk.bf16.vlgmr.msra.gmra.mxu0 %vm151_vm0, %v1900_v62  ;;  %v9233_v55 = vld [vmem:[%s13005_s1 + $0x210] ss:$8 sps:$4 sm:$0xff]   ;;  %v9241_v62 = vld [vmem:[%s13005_s1 + $0x204] ss:$8 sps:$4 sm:$0xff]  }
  0xb3   :  { %2328 = vmatpush1.bf16.msra.mxu1 %v9218_v53  ;;  %2634 = vmatpush1.bf16.msra.mxu0 %v9221_v31  ;;  %v9236_v31 = vld [vmem:[%s13005_s1 + $0x1c0] ss:$8 sps:$4 sm:$0xff]   ;;  %v13051_v53 = vpack.c.bf16 %v9821_v49, %v9804_v42 }
  0xb4   :  { %1749 = vmatprep.mubr.bf16.mxu1 %v13009_v1  ;;  %2055 = vmatprep.mubr.bf16.mxu0 %v13009_v1 }
  0xb5   :  { %2329 = vmatprep.subr.bf16.mxu1 %v9226_v26  ;;  %2635 = vmatprep.subr.bf16.mxu0 %v9229_v27 }
  0xb7   :  { %2330 = vmatpush1.bf16.msra.mxu1 %v9224_v39  ;;  %2636 = vmatpush1.bf16.msra.mxu0 %v9227_v43 }
  0xb8   :  { %2331 = vmatprep.subr.bf16.mxu1 %v9232_v10  ;;  %2637 = vmatprep.subr.bf16.mxu0 %v9235_v19  ;;  %v9436_v10 = vld [vmem:[%s13006_s0 + $0xf0] sm:$0xff] }
  0xb9   :  { %v1599_v42 = vpack.c.bf16 %v9579_v37, %v9436_v10 }
  0xba   :  { %8349 = vmatmul.mubr.msk.bf16.gmra.mxu1 %vm151_vm0, %v1595_v8  ;;  %8389 = vmatmul.mubr.msk.bf16.gmra.mxu0 %vm151_vm0, %v1901_v15  ;;  %v13049_v8 = vpack.c.bf16 %v9771_v30, %v9736_v18  ;;  %v1903_v15 = vpack.c.bf16 %v8363_v36, %v9780_v32  ;;  %v9434_v18 = vld [vmem:[%s13006_s0 + $0xd0] sm:$0xff]  ;;  %v13053_v36 = vpack.c.bf16 %v9879_v9, %v9860_v5 }
  0xbb   :  { %1759 = vmatprep.mubr.bf16.mxu1 %v13009_v1  ;;  %2065 = vmatprep.mubr.bf16.mxu0 %v13009_v1 }
  0xbc   :  { %2332 = vmatpush1.bf16.msra.mxu1 %v9230_v52  ;;  %2638 = vmatpush1.bf16.msra.mxu0 %v9233_v55 }
  0xbd   :  { %2333 = vmatprep.subr.bf16.mxu1 %v9238_v60  ;;  %2639 = vmatprep.subr.bf16.mxu0 %v9241_v62  ;;  %v13052_v60 = vpack.c.bf16 %v9849_v59, %v9830_v56 }
  0xc0   :  { %2334 = vmatpush1.bf16.msra.mxu1 %v9236_v31  ;;  %2640 = vmatpush1.bf16.msra.mxu0 %v9239_v20 }
  0xc1   :  { %2939 = vmatprep.subr.bf16.mxu1 %v9244_v35  ;;  %3246 = vmatprep.subr.bf16.mxu0 %v9247_v63  ;;  %v1600_v35 = vpack.c.bf16 %v9621_v47, %v9586_v38  ;;  %v10294_v38 = vld [vmem:[%s13006_s0 + $0x140] sm:$0xff] }
  0xc2   :  { %8350 = vmatmul.mubr.msk.bf16.gmra.mxu1 %vm151_vm0, %v1596_v25  ;;  %8390 = vmatmul.mubr.msk.bf16.gmra.mxu0 %vm151_vm0, %v13049_v8  ;;  %v9435_v25 = vld [vmem:[%s13006_s0 + $0xe0] sm:$0xff]  ;;  %13054 = vst [vmem:[#allocation5_spill] sm:$0xff] %v10294_v38 }
  0xc3   :  { %1769 = vmatprep.mubr.bf16.mxu1 %v13009_v1  ;;  %2075 = vmatprep.mubr.bf16.mxu0 %v13009_v1  ;;  %v1598_v30 = vpack.c.bf16 %v9435_v25, %v9434_v18  ;;  %v8371_v47 = vld [vmem:[%s13006_s0 + $0x141] sm:$0xff]  ;;  %v1601_v18 = vpack.c.bf16 %v10294_v38, %v9626_v48 }
  0xc4   :  { %v1907_v25 = vpack.c.bf16 %v8371_v47, %v9890_v16  ;;  %v2512_v47 = vpack.c.bf16 %v9941_v0, %v9913_v28 }
  0xca   :  { %8351 = vmatmul.mubr.msk.bf16.gmra.mxu1 %vm151_vm0, %v1597_v45  ;;  %8391 = vmatmul.mubr.msk.bf16.gmra.mxu0 %vm151_vm0, %v1903_v15 }
  0xcb   :  { %1779 = vmatprep.mubr.bf16.mxu1 %v13009_v1  ;;  %2085 = vmatprep.mubr.bf16.mxu0 %v13009_v1 }
  0xd2   :  { %v10228_v46 = vpop.f32.mrf.mxu0  ;;  %v10230_v32 = vpop.f32.mrf.mxu1  ;;  %8352 = vmatmul.mubr.msk.bf16.gmra.mxu1 %vm151_vm0, %v1598_v30  ;;  %8392 = vmatmul.mubr.msk.bf16.gmra.mxu0 %vm151_vm0, %v13051_v53 }
  0xd3   :  { %1789 = vmatprep.mubr.bf16.mxu1 %v13009_v1  ;;  %2095 = vmatprep.mubr.bf16.mxu0 %v13009_v1 }
  0xd4   :  { %v10239_v26 = vpop.f32.mrf.mxu0  ;;  %v10241_v27 = vpop.f32.mrf.mxu1 }
  0xd6   :  { %v10243_v39 = vpop.f32.mrf.mxu0  ;;  %v10245_v43 = vpop.f32.mrf.mxu1 }
  0xd8   :  { %v10251_v49 = vpop.f32.mrf.mxu0  ;;  %v10253_v19 = vpop.f32.mrf.mxu1 }
  0xda   :  { %v10255_v52 = vpop.f32.mrf.mxu0  ;;  %v10257_v55 = vpop.f32.mrf.mxu1  ;;  %8353 = vmatmul.mubr.msk.bf16.gmra.mxu1 %vm151_vm0, %v1599_v42  ;;  %8393 = vmatmul.mubr.msk.bf16.gmra.mxu0 %vm151_vm0, %v13052_v60 }
  0xdb   :  { %1799 = vmatprep.mubr.bf16.mxu1 %v13009_v1  ;;  %2105 = vmatprep.mubr.bf16.mxu0 %v13009_v1 }
  0xdc   :  { %v10266_v37 = vpop.f32.mrf.mxu0  ;;  %v10268_v62 = vpop.f32.mrf.mxu1 }
  0xde   :  { %v10270_v31 = vpop.f32.mrf.mxu0  ;;  %v10272_v20 = vpop.f32.mrf.mxu1 }
  0xe0   :  { %v10276_v63 = vpop.f32.mrf.mxu0  ;;  %v10278_v56 = vpop.f32.mrf.mxu1 }
  0xe2   :  { %v10280_v59 = vpop.f32.mrf.mxu0  ;;  %v10282_v8 = vpop.f32.mrf.mxu1  ;;  %8354 = vmatmul.mubr.msk.bf16.gmra.mxu1 %vm151_vm0, %v1600_v35  ;;  %8394 = vmatmul.mubr.msk.bf16.gmra.mxu0 %vm151_vm0, %v13053_v36  ;;  %v2206_v36 = vpack.c.bf16 %v9685_v2, %v9650_v54  ;;  %v9253_v54 = vld [vmem:[%s13005_s1 + $0x2a4] ss:$8 sps:$4 sm:$0xff]  }
  0xe3   :  { %1809 = vmatprep.mubr.bf16.mxu1 %v13009_v1  ;;  %2115 = vmatprep.mubr.bf16.mxu0 %v13009_v1 }
  0xe4   :  { %v10299_v45 = vpop.f32.mrf.mxu0  ;;  %v10301_v15 = vpop.f32.mrf.mxu1 }
  0xe6   :  { %v10303_v5 = vpop.f32.mrf.mxu0  ;;  %v10305_v9 = vpop.f32.mrf.mxu1 }
  0xe7   :  { %13055 = vst [vmem:[#allocation6_spill] sm:$0xff] %v10305_v9 }
  0xe8   :  { %v10310_v30 = vpop.f32.mrf.mxu0  ;;  %v10312_v53 = vpop.f32.mrf.mxu1 }
  0xe9   :  { %13056 = vst [vmem:[#allocation7_spill] sm:$0xff] %v10312_v53  ;;  %v2513_v53 = vpack.c.bf16 %v9989_v61, %v9946_v11  ;;  %v9262_v61 = vld [vmem:[%s13005_s1 + $0x244] ss:$8 sps:$4 sm:$0xff]  }
  0xea   :  { %v10314_v10 = vpop.f32.mrf.mxu0  ;;  %v10316_v42 = vpop.f32.mrf.mxu1  ;;  %8355 = vmatmul.mubr.msk.bf16.gmra.mxu1 %vm151_vm0, %v1601_v18  ;;  %8395 = vmatmul.mubr.msk.bf16.gmra.mxu0 %vm151_vm0, %v1907_v25  ;;  %v9242_v18 = vld [vmem:[%s13005_s1 + $0x270] ss:$8 sps:$4 sm:$0xff]  }
  0xeb   :  { %13057 = vst [vmem:[#allocation8_spill] sm:$0xff] %v10316_v42  ;;  %2351 = vmatprep.mubr.bf16.mxu1 %v13009_v1  ;;  %2657 = vmatprep.mubr.bf16.mxu0 %v13009_v1  ;;  %v9245_v25 = vld [vmem:[%s13005_s1 + $0x2b0] ss:$8 sps:$4 sm:$0xff]   ;;  %v2207_v42 = vpack.c.bf16 %v9741_v21, %v9690_v3 }
  0xec   :  { %v10322_v60 = vpop.f32.mrf.mxu0  ;;  %v10324_v48 = vpop.f32.mrf.mxu1  ;;  %v9257_v3 = vld [vmem:[%s13005_s1 + $0x290] ss:$8 sps:$4 sm:$0xff]  }
  0xed   :  { %13058 = vst [vmem:[#allocation9_spill] sm:$0xff] %v10324_v48  ;;  %v13059_v48 = vmov 0  }
  0xee   :  { %v244_v16 = vpop.f32.mrf.mxu0  ;;  %v284_v35 = vpop.f32.mrf.mxu1 }
  0xef   :  { %v9250_v16 = vld [vmem:[%s13005_s1 + $0x264] ss:$8 sps:$4 sm:$0xff]  }
  0xf0   :  { %v246_v1 = vpop.f32.mrf.mxu0  ;;  %v286_v38 = vpop.f32.mrf.mxu1 }
  0xf1   :  { %v9248_v1 = vld [vmem:[%s13005_s1 + $0x260] ss:$8 sps:$4 sm:$0xff]  }
  0xf2   :  { %v516_v2 = vpop.f32.mrf.mxu1  ;;  %v822_v28 = vpop.f32.mrf.mxu0  ;;  %8428 = vmatmul.mubr.msk.bf16.vlgmr.msra.gmra.mxu1 %vm151_vm0, %v2206_v36  ;;  %8468 = vmatmul.mubr.msk.bf16.vlgmr.msra.gmra.mxu0 %vm151_vm0, %v2512_v47  ;;  %v9251_v38 = vld [vmem:[%s13005_s1 + $0x2a0] ss:$8 sps:$4 sm:$0xff]   ;;  %v9259_v36 = vld [vmem:[%s13005_s1 + $0x294] ss:$8 sps:$4 sm:$0xff]  }
  0xf3   :  { %v595_v0 = vadd.f32 %v516_v2, %v10228_v46  ;;  %2940 = vmatpush1.bf16.msra.mxu1 %v9242_v18  ;;  %3247 = vmatpush1.bf16.msra.mxu0 %v9245_v25  ;;  %v9256_v46 = vld [vmem:[%s13005_s1 + $0x254] ss:$8 sps:$4 sm:$0xff]  }
  0xf4   :  { %v518_v35 = vpop.f32.mrf.mxu1  ;;  %v824_v12 = vpop.f32.mrf.mxu0  ;;  %2361 = vmatprep.mubr.bf16.mxu1 %v13059_v48  ;;  %2667 = vmatprep.mubr.bf16.mxu0 %v13059_v48 }
  0xf5   :  { %v10359_v47 = vadd.f32 %v822_v28, %v595_v0  ;;  %v596_v18 = vadd.f32 %v518_v35, %v10239_v26  ;;  %2941 = vmatprep.subr.bf16.mxu1 %v9250_v16  ;;  %3248 = vmatprep.subr.bf16.mxu0 %v9253_v54  ;;  %v9254_v26 = vld [vmem:[%s13005_s1 + $0x250] ss:$8 sps:$4 sm:$0xff]   ;;  %v9268_v35 = vld [vmem:[%s13005_s1 + $0x2f4] ss:$8 sps:$4 sm:$0xff]  }
  0xf6   :  { %v520_v25 = vpop.f32.mrf.mxu1  ;;  %v826_v2 = vpop.f32.mrf.mxu0 }
  0xf7   :  { %v10366_v9 = vadd.f32 %v824_v12, %v596_v18  ;;  %v597_v4 = vadd.f32 %v520_v25, %v10243_v39  ;;  %2942 = vmatpush1.bf16.msra.mxu1 %v9248_v1  ;;  %3249 = vmatpush1.bf16.msra.mxu0 %v9251_v38  ;;  %v9265_v12 = vld [vmem:[%s13005_s1 + $0x284] ss:$8 sps:$4 sm:$0xff]   ;;  %v9260_v38 = vld [vmem:[%s13005_s1 + $0x240] ss:$8 sps:$4 sm:$0xff]   ;;  %v2208_v25 = vpack.c.bf16 %v9787_v33, %v9748_v22 }
  0xf8   :  { %v522_v28 = vpop.f32.mrf.mxu1  ;;  %v828_v0 = vpop.f32.mrf.mxu0  ;;  %2943 = vmatprep.subr.bf16.mxu1 %v9256_v46  ;;  %3250 = vmatprep.subr.bf16.mxu0 %v9259_v36  ;;  %v9271_v46 = vld [vmem:[%s13005_s1 + $0x334] ss:$8 sps:$4 sm:$0xff]  }
  0xf9   :  { %v10375_v21 = vadd.f32 %v826_v2, %v597_v4  ;;  %v598_v11 = vadd.f32 %v522_v28, %v10251_v49  ;;  %v2514_v2 = vpack.c.bf16 %v10023_v40, %v9996_v13  ;;  %v10426_v13 = vld [vmem:[%s13006_s0 + $0x82] sm:$0xff] }
  0xfa   :  { %v526_v39 = vpop.f32.mrf.mxu1  ;;  %v832_v16 = vpop.f32.mrf.mxu0  ;;  %8429 = vmatmul.mubr.msk.bf16.gmra.mxu1 %vm151_vm0, %v2207_v42  ;;  %8469 = vmatmul.mubr.msk.bf16.gmra.mxu0 %vm151_vm0, %v2513_v53  ;;  %v9263_v53 = vld [vmem:[%s13005_s1 + $0x280] ss:$8 sps:$4 sm:$0xff]  }
  0xfb   :  { %v10386_v54 = vadd.f32 %v828_v0, %v598_v11  ;;  %v599_v4 = vadd.f32 %v526_v39, %v10255_v52  ;;  %2371 = vmatprep.mubr.bf16.mxu1 %v13059_v48  ;;  %2677 = vmatprep.mubr.bf16.mxu0 %v13059_v48  ;;  %v8443_v40 = vld [vmem:[%s13006_s0 + $0x83] sm:$0xff] }
  0xfc   :  { %v528_v49 = vpop.f32.mrf.mxu1  ;;  %v834_v1 = vpop.f32.mrf.mxu0  ;;  %2944 = vmatpush1.bf16.msra.mxu1 %v9254_v26  ;;  %3251 = vmatpush1.bf16.msra.mxu0 %v9257_v3 }
  0xfd   :  { %v10397_v42 = vadd.f32 %v832_v16, %v599_v4  ;;  %v600_v52 = vadd.f32 %v528_v49, %v10266_v37  ;;  %2945 = vmatprep.subr.bf16.mxu1 %v9262_v61  ;;  %3252 = vmatprep.subr.bf16.mxu0 %v9265_v12  ;;  %v2209_v49 = vpack.c.bf16 %v10426_v13, %v9792_v34 }
  0xfe   :  { %v530_v36 = vpop.f32.mrf.mxu1  ;;  %v836_v18 = vpop.f32.mrf.mxu0 }
  0xff   :  { %v10410_v28 = vadd.f32 %v834_v1, %v600_v52  ;;  %v601_v37 = vadd.f32 %v530_v36, %v10270_v31  ;;  %v2515_v1 = vpack.c.bf16 %v8443_v40, %v10030_v41 }
 0x100   :  { %v532_v0 = vpop.f32.mrf.mxu1  ;;  %v838_v26 = vpop.f32.mrf.mxu0  ;;  %2946 = vmatpush1.bf16.msra.mxu1 %v9260_v38  ;;  %3253 = vmatpush1.bf16.msra.mxu0 %v9263_v53 }
 0x101   :  { %v10413_v3 = vadd.f32 %v836_v18, %v601_v37  ;;  %v602_v11 = vadd.f32 %v532_v0, %v10276_v63  ;;  %3552 = vmatprep.subr.bf16.mxu1 %v9268_v35  ;;  %3858 = vmatprep.subr.bf16.mxu0 %v9271_v46 }
 0x102   :  { %v536_v61 = vpop.f32.mrf.mxu1  ;;  %v842_v12 = vpop.f32.mrf.mxu0  ;;  %8430 = vmatmul.mubr.msk.bf16.gmra.mxu1 %vm151_vm0, %v2208_v25  ;;  %8470 = vmatmul.mubr.msk.bf16.gmra.mxu0 %vm151_vm0, %v2514_v2 }
 0x103   :  { %v10418_v22 = vadd.f32 %v838_v26, %v602_v11  ;;  %v603_v33 = vadd.f32 %v536_v61, %v10280_v59  ;;  %2381 = vmatprep.mubr.bf16.mxu1 %v13059_v48  ;;  %2687 = vmatprep.mubr.bf16.mxu0 %v13059_v48  ;;  %v2210_v26 = vpack.c.bf16 %v9837_v57, %v9812_v44 }
 0x104   :  { %v538_v31 = vpop.f32.mrf.mxu1  ;;  %v844_v63 = vpop.f32.mrf.mxu0  ;;  %v2516_v11 = vpack.c.bf16 %v10064_v23, %v10050_v29 }
 0x105   :  { %v10431_v39 = vadd.f32 %v842_v12, %v603_v33  ;;  %v604_v16 = vadd.f32 %v538_v31, %v10299_v45 }
 0x106   :  { %v540_v59 = vpop.f32.mrf.mxu1  ;;  %v846_v4 = vpop.f32.mrf.mxu0 }
 0x107   :  { %v10437_v38 = vadd.f32 %v844_v63, %v604_v16  ;;  %v605_v53 = vadd.f32 %v540_v59, %v10303_v5  ;;  %v2211_v16 = vpack.c.bf16 %v9865_v6, %v9842_v58  ;;  %v2517_v59 = vpack.c.bf16 %v10086_v50, %v10071_v24 }
 0x108   :  { %v542_v52 = vpop.f32.mrf.mxu1  ;;  %v848_v35 = vpop.f32.mrf.mxu0 }
 0x109   :  { %v10440_v46 = vadd.f32 %v846_v4, %v605_v53  ;;  %v606_v36 = vadd.f32 %v542_v52, %v10310_v30 }
 0x10a   :  { %v546_v18 = vpop.f32.mrf.mxu1  ;;  %v852_v25 = vpop.f32.mrf.mxu0  ;;  %8431 = vmatmul.mubr.msk.bf16.gmra.mxu1 %vm151_vm0, %v2209_v49  ;;  %8471 = vmatmul.mubr.msk.bf16.gmra.mxu0 %vm151_vm0, %v2515_v1 }
 0x10b   :  { %v10445_v45 = vadd.f32 %v848_v35, %v606_v36  ;;  %v607_v34 = vadd.f32 %v546_v18, %v10314_v10  ;;  %2391 = vmatprep.mubr.bf16.mxu1 %v13059_v48  ;;  %2697 = vmatprep.mubr.bf16.mxu0 %v13059_v48 }
 0x10c   :  { %v548_v41 = vpop.f32.mrf.mxu1  ;;  %v854_v5 = vpop.f32.mrf.mxu0 }
 0x10d   :  { %v10450_v2 = vadd.f32 %v852_v25, %v607_v34  ;;  %v608_v30 = vadd.f32 %v548_v41, %v10322_v60  ;;  %v2212_v25 = vpack.c.bf16 %v9897_v17, %v9870_v7  ;;  %v2518_v34 = vpack.c.bf16 %v10108_v14, %v10093_v51  ;;  %v10507_v17 = vld [vmem:[%s13006_s0 + $0x132] sm:$0xff]  ;;  %v10512_v51 = vld [vmem:[%s13006_s0 + $0x142] sm:$0xff] }
 0x10e   :  { %v550_v37 = vpop.f32.mrf.mxu1  ;;  %v856_v0 = vpop.f32.mrf.mxu0 }
 0x10f   :  { %v10457_v61 = vadd.f32 %v854_v5, %v608_v30 }
 0x110   :  { %v552_v10 = vpop.f32.mrf.mxu1  ;;  %v858_v12 = vpop.f32.mrf.mxu0 }
 0x112   :  { %v556_v33 = vpop.f32.mrf.mxu1  ;;  %v862_v40 = vpop.f32.mrf.mxu0  ;;  %8432 = vmatmul.mubr.msk.bf16.gmra.mxu1 %vm151_vm0, %v2210_v26  ;;  %8472 = vmatmul.mubr.msk.bf16.gmra.mxu0 %vm151_vm0, %v2516_v11 }
 0x113   :  { %v611_v60 = vadd.f32 %v556_v33, %v10230_v32  ;;  %2401 = vmatprep.mubr.bf16.mxu1 %v13059_v48  ;;  %2707 = vmatprep.mubr.bf16.mxu0 %v13059_v48 }
 0x114   :  { %v558_v44 = vpop.f32.mrf.mxu1  ;;  %v864_v57 = vpop.f32.mrf.mxu0 }
 0x115   :  { %v10464_v31 = vadd.f32 %v862_v40, %v611_v60  ;;  %v612_v29 = vadd.f32 %v558_v44, %v10241_v27  ;;  %v2213_v40 = vpack.c.bf16 %v10512_v51, %v10507_v17  ;;  %v13060_v60 = vld [vmem:[#allocation3_spill] sm:$0xff] }
 0x116   :  { %v560_v23 = vpop.f32.mrf.mxu1  ;;  %v866_v63 = vpop.f32.mrf.mxu0 }
 0x117   :  { %v10471_v4 = vadd.f32 %v864_v57, %v612_v29  ;;  %v613_v32 = vadd.f32 %v560_v23, %v10245_v43  ;;  %v13061_v29 = vld [vmem:[#allocation6_spill] sm:$0xff] }
 0x118   :  { %v562_v49 = vpop.f32.mrf.mxu1  ;;  %v868_v1 = vpop.f32.mrf.mxu0 }
 0x119   :  { %v10474_v53 = vadd.f32 %v866_v63, %v613_v32  ;;  %v614_v52 = vadd.f32 %v562_v49, %v10253_v19  ;;  %v13062_v32 = vld [vmem:[#allocation7_spill] sm:$0xff] }
 0x11a   :  { %v566_v35 = vpop.f32.mrf.mxu1  ;;  %v872_v27 = vpop.f32.mrf.mxu0  ;;  %8433 = vmatmul.mubr.msk.bf16.gmra.mxu1 %vm151_vm0, %v2211_v16  ;;  %8473 = vmatmul.mubr.msk.bf16.gmra.mxu0 %vm151_vm0, %v2517_v59 }
 0x11b   :  { %v10479_v58 = vadd.f32 %v868_v1, %v614_v52  ;;  %v615_v6 = vadd.f32 %v566_v35, %v10257_v55  ;;  %2411 = vmatprep.mubr.bf16.mxu1 %v13059_v48  ;;  %2717 = vmatprep.mubr.bf16.mxu0 %v13059_v48 }
 0x11c   :  { %v568_v24 = vpop.f32.mrf.mxu1  ;;  %v874_v50 = vpop.f32.mrf.mxu0 }
 0x11d   :  { %v10484_v43 = vadd.f32 %v872_v27, %v615_v6  ;;  %v616_v19 = vadd.f32 %v568_v24, %v10268_v62  ;;  %v13063_v27 = vld [vmem:[#allocation8_spill] sm:$0xff] }
 0x11e   :  { %v570_v36 = vpop.f32.mrf.mxu1  ;;  %v876_v18 = vpop.f32.mrf.mxu0  ;;  %v10542_v24 = vld [vmem:[%s13006_s0 + $0x24] sm:$0xff] }
 0x11f   :  { %v10491_v41 = vadd.f32 %v874_v50, %v616_v19  ;;  %v617_v55 = vadd.f32 %v570_v36, %v10272_v20  ;;  %v8451_v20 = vld [vmem:[%s13006_s0 + $0x143] sm:$0xff]  ;;  %v8517_v19 = vld [vmem:[%s13006_s0 + $0x30] sm:$0xff] }
 0x120   :  { %v572_v5 = vpop.f32.mrf.mxu1  ;;  %v878_v30 = vpop.f32.mrf.mxu0  ;;  %v2519_v44 = vpack.c.bf16 %v8451_v20, %v13060_v60  ;;  %v8516_v50 = vld [vmem:[%s13006_s0 + $0x20] sm:$0xff]  ;;  %v9269_v20 = vld [vmem:[%s13005_s1 + $0x330] ss:$8 sps:$4 sm:$0xff]  }
 0x121   :  { %v10494_v37 = vadd.f32 %v876_v18, %v617_v55  ;;  %v618_v0 = vadd.f32 %v572_v5, %v10278_v56  ;;  %v10573_v60 = vld [vmem:[%s13006_s0 + $0x34] sm:$0xff] }
 0x122   :  { %v576_v26 = vpop.f32.mrf.mxu1  ;;  %v882_v62 = vpop.f32.mrf.mxu0  ;;  %8434 = vmatmul.mubr.msk.bf16.gmra.mxu1 %vm151_vm0, %v2212_v25  ;;  %8474 = vmatmul.mubr.msk.bf16.gmra.mxu0 %vm151_vm0, %v2518_v34  ;;  %v13064_v34 = vld [vmem:[#allocation9_spill] sm:$0xff] }
 0x123   :  { %v10499_v7 = vadd.f32 %v878_v30, %v618_v0  ;;  %v619_v14 = vadd.f32 %v576_v26, %v10282_v8  ;;  %2421 = vmatprep.mubr.bf16.mxu1 %v13059_v48  ;;  %2727 = vmatprep.mubr.bf16.mxu0 %v13059_v48  ;;  %v3125_v26 = vpack.c.bf16 %v8517_v19, %v8516_v50 }
 0x124   :  { %v578_v56 = vpop.f32.mrf.mxu1  ;;  %v884_v8 = vpop.f32.mrf.mxu0 }
 0x125   :  { %v10517_v11 = vadd.f32 %v882_v62, %v619_v14  ;;  %v620_v10 = vadd.f32 %v578_v56, %v10301_v15  ;;  %v8476_v15 = vld [vmem:[%s13006_s0 + $0x14] sm:$0xff] }
 0x126   :  { %v580_v12 = vpop.f32.mrf.mxu1  ;;  %v886_v33 = vpop.f32.mrf.mxu0  ;;  %v2818_v0 = vpack.c.bf16 %v10542_v24, %v8476_v15  ;;  %v9266_v14 = vld [vmem:[%s13005_s1 + $0x2f0] ss:$8 sps:$4 sm:$0xff]  }
 0x127   :  { %v10523_v57 = vadd.f32 %v884_v8, %v620_v10  ;;  %v621_v23 = vadd.f32 %v580_v12, %v13061_v29  ;;  %v9274_v10 = vld [vmem:[%s13005_s1 + $0x2e4] ss:$8 sps:$4 sm:$0xff]  }
 0x128   :  { %v582_v63 = vpop.f32.mrf.mxu1  ;;  %v888_v16 = vpop.f32.mrf.mxu0  ;;  %v9277_v12 = vld [vmem:[%s13005_s1 + $0x324] ss:$8 sps:$4 sm:$0xff]  }
 0x129   :  { %v10526_v59 = vadd.f32 %v886_v33, %v621_v23  ;;  %v622_v49 = vadd.f32 %v582_v63, %v13062_v32  ;;  %v8518_v29 = vld [vmem:[%s13006_s0 + $0x40] sm:$0xff]  ;;  %v8519_v63 = vld [vmem:[%s13006_s0 + $0x50] sm:$0xff] }
 0x12a   :  { %v586_v1 = vpop.f32.mrf.mxu1  ;;  %v892_v52 = vpop.f32.mrf.mxu0  ;;  %8435 = vmatmul.mubr.msk.bf16.gmra.mxu1 %vm151_vm0, %v2213_v40  ;;  %8475 = vmatmul.mubr.msk.bf16.gmra.mxu0 %vm151_vm0, %v2519_v44  ;;  %v10578_v44 = vld [vmem:[%s13006_s0 + $0x44] sm:$0xff] }
 0x12b   :  { %v10534_v35 = vadd.f32 %v888_v16, %v622_v49  ;;  %v623_v6 = vadd.f32 %v586_v1, %v13063_v27  ;;  %2963 = vmatprep.mubr.bf16.mxu1 %v13059_v48  ;;  %3270 = vmatprep.mubr.bf16.mxu0 %v13059_v48  ;;  %v9272_v16 = vld [vmem:[%s13005_s1 + $0x2e0] ss:$8 sps:$4 sm:$0xff]   ;;  %v2819_v19 = vpack.c.bf16 %v10578_v44, %v10573_v60 }
 0x12c   :  { %v588_v36 = vpop.f32.mrf.mxu1  ;;  %v894_v18 = vpop.f32.mrf.mxu0  ;;  %v9275_v32 = vld [vmem:[%s13005_s1 + $0x320] ss:$8 sps:$4 sm:$0xff]  }
 0x12d   :  { %v10550_v25 = vadd.f32 %v892_v52, %v623_v6  ;;  %v624_v55 = vadd.f32 %v588_v36, %v13064_v34  ;;  %v9283_v52 = vld [vmem:[%s13005_s1 + $0x314] ss:$8 sps:$4 sm:$0xff]   ;;  %v3126_v36 = vpack.c.bf16 %v8519_v63, %v8518_v29  ;;  %v9287_v63 = vld [vmem:[%s13005_s1 + $0x300] ss:$8 sps:$4 sm:$0xff]  }
 0x12e   :  { %v590_v5 = vpop.f32.mrf.mxu1  ;;  %v896_v30 = vpop.f32.mrf.mxu0 }
 0x12f   :  { %v10554_v62 = vadd.f32 %v894_v18, %v624_v55  ;;  %v9281_v30 = vld [vmem:[%s13005_s1 + $0x310] ss:$8 sps:$4 sm:$0xff]  }
 0x130   :  { %v592_v56 = vpop.f32.mrf.mxu1  ;;  %v898_v8 = vpop.f32.mrf.mxu0 }
 0x131   :  { %v10629_v8 = vld [vmem:[%s13006_s0 + $0x54] sm:$0xff] }
 0x132   :  { %v1128_v33 = vpop.f32.mrf.mxu1  ;;  %v1434_v40 = vpop.f32.mrf.mxu0  ;;  %8508 = vmatmul.mubr.msk.bf16.vlgmr.msra.gmra.mxu1 %vm151_vm0, %v2818_v0  ;;  %8548 = vmatmul.mubr.msk.bf16.vlgmr.msra.gmra.mxu0 %vm151_vm0, %v3125_v26 }
 0x133   :  { %v1207_v23 = vadd.f32 %v1128_v33, %v10359_v47  ;;  %3553 = vmatpush1.bf16.msra.mxu1 %v9266_v14  ;;  %3859 = vmatpush1.bf16.msra.mxu0 %v9269_v20  ;;  %v9280_v47 = vld [vmem:[%s13005_s1 + $0x2d4] ss:$8 sps:$4 sm:$0xff]   ;;  %v9289_v14 = vld [vmem:[%s13005_s1 + $0x304] ss:$8 sps:$4 sm:$0xff]  }
 0x134   :  { %v1130_v49 = vpop.f32.mrf.mxu1  ;;  %v1436_v1 = vpop.f32.mrf.mxu0  ;;  %2973 = vmatprep.mubr.bf16.mxu1 %v13059_v48  ;;  %3280 = vmatprep.mubr.bf16.mxu0 %v13059_v48  ;;  %v8520_v33 = vld [vmem:[%s13006_s0 + $0x60] sm:$0xff] }
 0x135   :  { %v10601_v15 = vadd.f32 %v1434_v40, %v1207_v23  ;;  %v1208_v27 = vadd.f32 %v1130_v49, %v10366_v9  ;;  %3554 = vmatprep.subr.bf16.mxu1 %v9274_v10  ;;  %3860 = vmatprep.subr.bf16.mxu0 %v9277_v12  ;;  %v9278_v9 = vld [vmem:[%s13005_s1 + $0x2d0] ss:$8 sps:$4 sm:$0xff]   ;;  %v10639_v12 = vld [vmem:[%s13006_s0 + $0x64] sm:$0xff]  ;;  %v9292_v49 = vld [vmem:[%s13005_s1 + $0x374] ss:$8 sps:$4 sm:$0xff]  }
 0x136   :  { %v1132_v6 = vpop.f32.mrf.mxu1  ;;  %v1438_v50 = vpop.f32.mrf.mxu0  ;;  %v8521_v40 = vld [vmem:[%s13006_s0 + $0x70] sm:$0xff] }
 0x137   :  { %v10606_v18 = vadd.f32 %v1436_v1, %v1208_v27  ;;  %v1209_v34 = vadd.f32 %v1132_v6, %v10375_v21  ;;  %3555 = vmatpush1.bf16.msra.mxu1 %v9272_v16  ;;  %3861 = vmatpush1.bf16.msra.mxu0 %v9275_v32  ;;  %v9286_v21 = vld [vmem:[%s13005_s1 + $0x2c4] ss:$8 sps:$4 sm:$0xff]   ;;  %v9295_v1 = vld [vmem:[%s13005_s1 + $0x3b4] ss:$8 sps:$4 sm:$0xff]   ;;  %v2820_v27 = vpack.c.bf16 %v10639_v12, %v10629_v8 }
 0x138   :  { %v1134_v55 = vpop.f32.mrf.mxu1  ;;  %v1440_v5 = vpop.f32.mrf.mxu0  ;;  %3556 = vmatprep.subr.bf16.mxu1 %v9280_v47  ;;  %3862 = vmatprep.subr.bf16.mxu0 %v9283_v52  ;;  %v3127_v6 = vpack.c.bf16 %v8521_v40, %v8520_v33 }
 0x139   :  { %v10615_v0 = vadd.f32 %v1438_v50, %v1209_v34  ;;  %v1210_v26 = vadd.f32 %v1134_v55, %v10386_v54 }
 0x13a   :  { %v1138_v20 = vpop.f32.mrf.mxu1  ;;  %v1444_v56 = vpop.f32.mrf.mxu0  ;;  %8509 = vmatmul.mubr.msk.bf16.gmra.mxu1 %vm151_vm0, %v2819_v19  ;;  %8549 = vmatmul.mubr.msk.bf16.gmra.mxu0 %vm151_vm0, %v3126_v36 }
 0x13b   :  { %v10631_v54 = vadd.f32 %v1440_v5, %v1210_v26  ;;  %v1211_v10 = vadd.f32 %v1138_v20, %v10397_v42  ;;  %2983 = vmatprep.mubr.bf16.mxu1 %v13059_v48  ;;  %3290 = vmatprep.mubr.bf16.mxu0 %v13059_v48  ;;  %v9284_v42 = vld [vmem:[%s13005_s1 + $0x2c0] ss:$8 sps:$4 sm:$0xff]  }
 0x13c   :  { %v1140_v29 = vpop.f32.mrf.mxu1  ;;  %v1446_v23 = vpop.f32.mrf.mxu0  ;;  %3557 = vmatpush1.bf16.msra.mxu1 %v9278_v9  ;;  %3863 = vmatpush1.bf16.msra.mxu0 %v9281_v30  ;;  %v10685_v26 = vld [vmem:[%s13006_s0 + $0x84] sm:$0xff] }
 0x13d   :  { %v10653_v16 = vadd.f32 %v1444_v56, %v1211_v10  ;;  %v1212_v32 = vadd.f32 %v1140_v29, %v10410_v28  ;;  %3558 = vmatprep.subr.bf16.mxu1 %v9286_v21  ;;  %3864 = vmatprep.subr.bf16.mxu0 %v9289_v14  ;;  %v8523_v21 = vld [vmem:[%s13006_s0 + $0x90] sm:$0xff]  ;;  %v13065_v29 = vld [vmem:[#allocation4_spill] sm:$0xff] }
 0x13e   :  { %v1142_v47 = vpop.f32.mrf.mxu1  ;;  %v1448_v52 = vpop.f32.mrf.mxu0 }
 0x13f   :  { %v10664_v50 = vadd.f32 %v1446_v23, %v1212_v32  ;;  %v1213_v28 = vadd.f32 %v1142_v47, %v10413_v3  ;;  %v3128_v23 = vpack.c.bf16 %v8523_v21, %v13065_v29  ;;  %v10734_v29 = vld [vmem:[%s13006_s0 + $0xf4] sm:$0xff] }
 0x140   :  { %v1144_v19 = vpop.f32.mrf.mxu1  ;;  %v1450_v36 = vpop.f32.mrf.mxu0  ;;  %3559 = vmatpush1.bf16.msra.mxu1 %v9284_v42  ;;  %3865 = vmatpush1.bf16.msra.mxu0 %v9287_v63 }
 0x141   :  { %v10667_v34 = vadd.f32 %v1448_v52, %v1213_v28  ;;  %v1214_v55 = vadd.f32 %v1144_v19, %v10418_v22  ;;  %4164 = vmatprep.subr.bf16.mxu1 %v9292_v49  ;;  %4470 = vmatprep.subr.bf16.mxu0 %v9295_v1  ;;  %v10680_v22 = vld [vmem:[%s13006_s0 + $0x74] sm:$0xff]  ;;  %v8524_v28 = vld [vmem:[%s13006_s0 + $0xe0] sm:$0xff] }
 0x142   :  { %v1148_v5 = vpop.f32.mrf.mxu1  ;;  %v1454_v9 = vpop.f32.mrf.mxu0  ;;  %8510 = vmatmul.mubr.msk.bf16.gmra.mxu1 %vm151_vm0, %v2820_v27  ;;  %8550 = vmatmul.mubr.msk.bf16.gmra.mxu0 %vm151_vm0, %v3127_v6  ;;  %v2821_v40 = vpack.c.bf16 %v10685_v26, %v10680_v22  ;;  %v8525_v19 = vld [vmem:[%s13006_s0 + $0xf0] sm:$0xff] }
 0x143   :  { %v10672_v30 = vadd.f32 %v1450_v36, %v1214_v55  ;;  %v1215_v3 = vadd.f32 %v1148_v5, %v10431_v39  ;;  %2993 = vmatprep.mubr.bf16.mxu1 %v13059_v48  ;;  %3300 = vmatprep.mubr.bf16.mxu0 %v13059_v48 }
 0x144   :  { %v1150_v14 = vpop.f32.mrf.mxu1  ;;  %v1456_v39 = vpop.f32.mrf.mxu0 }
 0x145   :  { %v10690_v20 = vadd.f32 %v1454_v9, %v1215_v3  ;;  %v1216_v56 = vadd.f32 %v1150_v14, %v10437_v38  ;;  %v8484_v38 = vld [vmem:[%s13006_s0 + $0xd4] sm:$0xff]  ;;  %v3129_v14 = vpack.c.bf16 %v8525_v19, %v8524_v28 }
 0x146   :  { %v1152_v10 = vpop.f32.mrf.mxu1  ;;  %v1458_v33 = vpop.f32.mrf.mxu0 }
 0x147   :  { %v10696_v42 = vadd.f32 %v1456_v39, %v1216_v56  ;;  %v1217_v63 = vadd.f32 %v1152_v10, %v10440_v46 }
 0x148   :  { %v1154_v32 = vpop.f32.mrf.mxu1  ;;  %v1460_v49 = vpop.f32.mrf.mxu0 }
 0x149   :  { %v10699_v1 = vadd.f32 %v1458_v33, %v1217_v63  ;;  %v1218_v47 = vadd.f32 %v1154_v32, %v10445_v45  ;;  %v10715_v45 = vld [vmem:[%s13006_s0 + $0xe4] sm:$0xff]  ;;  %v8527_v32 = vld [vmem:[%s13006_s0 + $0x110] sm:$0xff] }
 0x14a   :  { %v1158_v52 = vpop.f32.mrf.mxu1  ;;  %v1464_v27 = vpop.f32.mrf.mxu0  ;;  %8511 = vmatmul.mubr.msk.bf16.gmra.mxu1 %vm151_vm0, %v2821_v40  ;;  %8551 = vmatmul.mubr.msk.bf16.gmra.mxu0 %vm151_vm0, %v3128_v23  ;;  %v2822_v21 = vpack.c.bf16 %v10715_v45, %v8484_v38  ;;  %v10742_v23 = vld [vmem:[%s13006_s0 + $0x104] sm:$0xff] }
 0x14b   :  { %v10707_v6 = vadd.f32 %v1460_v49, %v1218_v47  ;;  %v1219_v46 = vadd.f32 %v1158_v52, %v10450_v2  ;;  %3003 = vmatprep.mubr.bf16.mxu1 %v13059_v48  ;;  %3310 = vmatprep.mubr.bf16.mxu0 %v13059_v48  ;;  %13066 = vst [vmem:[#allocation3_spill] sm:$0xff] %v10742_v23  ;;  %v8526_v63 = vld [vmem:[%s13006_s0 + $0x100] sm:$0xff] }
 0x14c   :  { %v1160_v36 = vpop.f32.mrf.mxu1  ;;  %v1466_v55 = vpop.f32.mrf.mxu0  ;;  %v3130_v28 = vpack.c.bf16 %v8527_v32, %v8526_v63 }
 0x14d   :  { %v10723_v2 = vadd.f32 %v1464_v27, %v1219_v46  ;;  %v1220_v5 = vadd.f32 %v1160_v36, %v10457_v61  ;;  %v2823_v46 = vpack.c.bf16 %v10742_v23, %v10734_v29 }
 0x14e   :  { %v1162_v9 = vpop.f32.mrf.mxu1  ;;  %v1468_v3 = vpop.f32.mrf.mxu0 }
 0x14f   :  { %v10727_v39 = vadd.f32 %v1466_v55, %v1220_v5 }
 0x150   :  { %v1164_v56 = vpop.f32.mrf.mxu1  ;;  %v1470_v10 = vpop.f32.mrf.mxu0 }
 0x151   :  { %v8528_v10 = vld [vmem:[%s13006_s0 + $0x120] sm:$0xff] }
 0x152   :  { %v1168_v33 = vpop.f32.mrf.mxu1  ;;  %v1474_v40 = vpop.f32.mrf.mxu0  ;;  %8512 = vmatmul.mubr.msk.bf16.gmra.mxu1 %vm151_vm0, %v2822_v21  ;;  %8552 = vmatmul.mubr.msk.bf16.gmra.mxu0 %vm151_vm0, %v3129_v14 }
 0x153   :  { %v1223_v61 = vadd.f32 %v1168_v33, %v10464_v31  ;;  %3013 = vmatprep.mubr.bf16.mxu1 %v13059_v48  ;;  %3320 = vmatprep.mubr.bf16.mxu0 %v13059_v48  ;;  %v8529_v33 = vld [vmem:[%s13006_s0 + $0x130] sm:$0xff] }
 0x154   :  { %v1170_v49 = vpop.f32.mrf.mxu1  ;;  %v1476_v47 = vpop.f32.mrf.mxu0 }
 0x155   :  { %v10750_v31 = vadd.f32 %v1474_v40, %v1223_v61  ;;  %v1224_v52 = vadd.f32 %v1170_v49, %v10471_v4  ;;  %v10766_v4 = vld [vmem:[%s13006_s0 + $0x114] sm:$0xff] }
 0x156   :  { %v1172_v27 = vpop.f32.mrf.mxu1  ;;  %v1478_v38 = vpop.f32.mrf.mxu0  ;;  %13067 = vst [vmem:[#allocation6_spill] sm:$0xff] %v10766_v4 }
 0x157   :  { %v10755_v19 = vadd.f32 %v1476_v47, %v1224_v52  ;;  %v1225_v36 = vadd.f32 %v1172_v27, %v10474_v53  ;;  %v3131_v52 = vpack.c.bf16 %v8529_v33, %v8528_v10 }
 0x158   :  { %v1174_v55 = vpop.f32.mrf.mxu1  ;;  %v1480_v5 = vpop.f32.mrf.mxu0 }
 0x159   :  { %v10758_v9 = vadd.f32 %v1478_v38, %v1225_v36  ;;  %v1226_v3 = vadd.f32 %v1174_v55, %v10479_v58  ;;  %v10776_v58 = vld [vmem:[%s13006_s0 + $0x124] sm:$0xff] }
 0x15a   :  { %v1178_v21 = vpop.f32.mrf.mxu1  ;;  %v1484_v14 = vpop.f32.mrf.mxu0  ;;  %8513 = vmatmul.mubr.msk.bf16.gmra.mxu1 %vm151_vm0, %v2823_v46  ;;  %8553 = vmatmul.mubr.msk.bf16.gmra.mxu0 %vm151_vm0, %v3130_v28  ;;  %13068 = vst [vmem:[#allocation7_spill] sm:$0xff] %v10776_v58  ;;  %v2824_v47 = vpack.c.bf16 %v10776_v58, %v10766_v4 }
 0x15b   :  { %v10768_v56 = vadd.f32 %v1480_v5, %v1226_v3  ;;  %v1227_v53 = vadd.f32 %v1178_v21, %v10484_v43  ;;  %3023 = vmatprep.mubr.bf16.mxu1 %v13059_v48  ;;  %3330 = vmatprep.mubr.bf16.mxu0 %v13059_v48 }
 0x15c   :  { %v1180_v40 = vpop.f32.mrf.mxu1  ;;  %v1486_v61 = vpop.f32.mrf.mxu0 }
 0x15d   :  { %v10784_v43 = vadd.f32 %v1484_v14, %v1227_v53  ;;  %v1228_v63 = vadd.f32 %v1180_v40, %v10491_v41  ;;  %v8531_v14 = vld [vmem:[%s13006_s0 + $0x150] sm:$0xff] }
 0x15e   :  { %v1182_v32 = vpop.f32.mrf.mxu1  ;;  %v1488_v49 = vpop.f32.mrf.mxu0 }
 0x15f   :  { %v10789_v27 = vadd.f32 %v1486_v61, %v1228_v63  ;;  %v1229_v38 = vadd.f32 %v1182_v32, %v10494_v37  ;;  %v10805_v37 = vld [vmem:[%s13006_s0 + $0x134] sm:$0xff] }
 0x160   :  { %v1184_v46 = vpop.f32.mrf.mxu1  ;;  %v1490_v28 = vpop.f32.mrf.mxu0  ;;  %13069 = vst [vmem:[#allocation8_spill] sm:$0xff] %v10805_v37  ;;  %v13071_v32 = vld [vmem:[#allocation5_spill] sm:$0xff] }
 0x161   :  { %v10792_v36 = vadd.f32 %v1488_v49, %v1229_v38  ;;  %v1230_v55 = vadd.f32 %v1184_v46, %v10499_v7  ;;  %v10810_v7 = vld [vmem:[%s13006_s0 + $0x144] sm:$0xff]  ;;  %v3132_v49 = vpack.c.bf16 %v8531_v14, %v13071_v32 }
 0x162   :  { %v1188_v5 = vpop.f32.mrf.mxu1  ;;  %v1494_v3 = vpop.f32.mrf.mxu0  ;;  %8514 = vmatmul.mubr.msk.bf16.gmra.mxu1 %vm151_vm0, %v2824_v47  ;;  %8554 = vmatmul.mubr.msk.bf16.gmra.mxu0 %vm151_vm0, %v3131_v52  ;;  %13070 = vst [vmem:[#allocation9_spill] sm:$0xff] %v10810_v7  ;;  %v2825_v63 = vpack.c.bf16 %v10810_v7, %v10805_v37  ;;  %v8596_v14 = vld [vmem:[%s13006_s0 + $0x22] sm:$0xff] }
 0x163   :  { %v10797_v41 = vadd.f32 %v1490_v28, %v1230_v55  ;;  %v1231_v21 = vadd.f32 %v1188_v5, %v10517_v11  ;;  %3033 = vmatprep.mubr.bf16.mxu1 %v13059_v48  ;;  %3340 = vmatprep.mubr.bf16.mxu0 %v13059_v48 }
 0x164   :  { %v1190_v53 = vpop.f32.mrf.mxu1  ;;  %v1496_v11 = vpop.f32.mrf.mxu0 }
 0x165   :  { %v10815_v10 = vadd.f32 %v1494_v3, %v1231_v21  ;;  %v1232_v33 = vadd.f32 %v1190_v53, %v10523_v57  ;;  %v8556_v57 = vld [vmem:[%s13006_s0 + $0x21] sm:$0xff]  ;;  %v8597_v53 = vld [vmem:[%s13006_s0 + $0x32] sm:$0xff] }
 0x166   :  { %v1192_v40 = vpop.f32.mrf.mxu1  ;;  %v1498_v61 = vpop.f32.mrf.mxu0 }
 0x167   :  { %v10821_v47 = vadd.f32 %v1496_v11, %v1232_v33  ;;  %v1233_v52 = vadd.f32 %v1192_v40, %v10526_v59 }
 0x168   :  { %v1194_v38 = vpop.f32.mrf.mxu1  ;;  %v1500_v46 = vpop.f32.mrf.mxu0 }
 0x169   :  { %v10824_v28 = vadd.f32 %v1498_v61, %v1233_v52  ;;  %v1234_v55 = vadd.f32 %v1194_v38, %v10534_v35  ;;  %v10840_v35 = vld [vmem:[%s13006_s0 + $0x31] sm:$0xff] }
 0x16a   :  { %v1198_v5 = vpop.f32.mrf.mxu1  ;;  %v1504_v3 = vpop.f32.mrf.mxu0  ;;  %8515 = vmatmul.mubr.msk.bf16.gmra.mxu1 %vm151_vm0, %v2825_v63  ;;  %8555 = vmatmul.mubr.msk.bf16.gmra.mxu0 %vm151_vm0, %v3132_v49  ;;  %13072 = vst [vmem:[#allocation4_spill] sm:$0xff] %v10840_v35  ;;  %v3431_v32 = vpack.c.bf16 %v10840_v35, %v8556_v57  ;;  %v3737_v49 = vpack.c.bf16 %v8597_v53, %v8596_v14  ;;  %v9290_v38 = vld [vmem:[%s13005_s1 + $0x370] ss:$8 sps:$4 sm:$0xff]   ;;  %v10871_v14 = vld [vmem:[%s13006_s0 + $0x41] sm:$0xff] }
 0x16b   :  { %v10832_v21 = vadd.f32 %v1500_v46, %v1234_v55  ;;  %v1235_v59 = vadd.f32 %v1198_v5, %v10550_v25  ;;  %3576 = vmatprep.mubr.bf16.mxu1 %v13059_v48  ;;  %3882 = vmatprep.mubr.bf16.mxu0 %v13059_v48  ;;  %v9293_v46 = vld [vmem:[%s13005_s1 + $0x3b0] ss:$8 sps:$4 sm:$0xff]  }
 0x16c   :  { %v1200_v11 = vpop.f32.mrf.mxu1  ;;  %v1506_v33 = vpop.f32.mrf.mxu0  ;;  %v10876_v53 = vld [vmem:[%s13006_s0 + $0x51] sm:$0xff] }
 0x16d   :  { %v10848_v25 = vadd.f32 %v1504_v3, %v1235_v59  ;;  %v1236_v40 = vadd.f32 %v1200_v11, %v10554_v62  ;;  %v9298_v62 = vld [vmem:[%s13005_s1 + $0x364] ss:$8 sps:$4 sm:$0xff]   ;;  %v3432_v35 = vpack.c.bf16 %v10876_v53, %v10871_v14 }
 0x16e   :  { %v1202_v61 = vpop.f32.mrf.mxu1  ;;  %v1508_v63 = vpop.f32.mrf.mxu0  ;;  %v9301_v3 = vld [vmem:[%s13005_s1 + $0x3a4] ss:$8 sps:$4 sm:$0xff]  }
 0x16f   :  { %v10852_v52 = vadd.f32 %v1506_v33, %v1236_v40  ;;  %v8598_v11 = vld [vmem:[%s13006_s0 + $0x42] sm:$0xff]  ;;  %v8599_v40 = vld [vmem:[%s13006_s0 + $0x52] sm:$0xff] }
 0x170   :  { %v1204_v55 = vpop.f32.mrf.mxu1  ;;  %v1510_v5 = vpop.f32.mrf.mxu0  ;;  %v9296_v61 = vld [vmem:[%s13005_s1 + $0x360] ss:$8 sps:$4 sm:$0xff]   ;;  %v3738_v7 = vpack.c.bf16 %v8599_v40, %v8598_v11  ;;  %v9313_v11 = vld [vmem:[%s13005_s1 + $0x384] ss:$8 sps:$4 sm:$0xff]  }
 0x171   :  { %v9299_v63 = vld [vmem:[%s13005_s1 + $0x3a0] ss:$8 sps:$4 sm:$0xff]  }
 0x172   :  { %v1741_v57 = vpop.f32.mrf.mxu1  ;;  %v2047_v59 = vpop.f32.mrf.mxu0  ;;  %8588 = vmatmul.mubr.msk.bf16.vlgmr.msra.gmra.mxu1 %vm151_vm0, %v3431_v32  ;;  %8628 = vmatmul.mubr.msk.bf16.vlgmr.msra.gmra.mxu0 %vm151_vm0, %v3737_v49 }
 0x173   :  { %v1820_v33 = vadd.f32 %v1741_v57, %v10601_v15  ;;  %4165 = vmatpush1.bf16.msra.mxu1 %v9290_v38  ;;  %4471 = vmatpush1.bf16.msra.mxu0 %v9293_v46  ;;  %v9304_v15 = vld [vmem:[%s13005_s1 + $0x354] ss:$8 sps:$4 sm:$0xff]  }
 0x174   :  { %v1743_v32 = vpop.f32.mrf.mxu1  ;;  %v2049_v49 = vpop.f32.mrf.mxu0  ;;  %3586 = vmatprep.mubr.bf16.mxu1 %v13059_v48  ;;  %3892 = vmatprep.mubr.bf16.mxu0 %v13059_v48  ;;  %v9307_v38 = vld [vmem:[%s13005_s1 + $0x394] ss:$8 sps:$4 sm:$0xff]  }
 0x175   :  { %v10899_v46 = vadd.f32 %v2047_v59, %v1820_v33  ;;  %v1821_v55 = vadd.f32 %v1743_v32, %v10606_v18  ;;  %4166 = vmatprep.subr.bf16.mxu1 %v9298_v62  ;;  %4472 = vmatprep.subr.bf16.mxu0 %v9301_v3  ;;  %v9302_v18 = vld [vmem:[%s13005_s1 + $0x350] ss:$8 sps:$4 sm:$0xff]   ;;  %v9311_v32 = vld [vmem:[%s13005_s1 + $0x380] ss:$8 sps:$4 sm:$0xff]  }
 0x176   :  { %v1745_v5 = vpop.f32.mrf.mxu1  ;;  %v2051_v57 = vpop.f32.mrf.mxu0  ;;  %v9305_v62 = vld [vmem:[%s13005_s1 + $0x390] ss:$8 sps:$4 sm:$0xff]  }
 0x177   :  { %v10904_v37 = vadd.f32 %v2049_v49, %v1821_v55  ;;  %v1822_v58 = vadd.f32 %v1745_v5, %v10615_v0  ;;  %4167 = vmatpush1.bf16.msra.mxu1 %v9296_v61  ;;  %4473 = vmatpush1.bf16.msra.mxu0 %v9299_v63  ;;  %v9310_v0 = vld [vmem:[%s13005_s1 + $0x344] ss:$8 sps:$4 sm:$0xff]   ;;  %v10937_v61 = vld [vmem:[%s13006_s0 + $0x71] sm:$0xff] }
 0x178   :  { %v1747_v4 = vpop.f32.mrf.mxu1  ;;  %v2053_v23 = vpop.f32.mrf.mxu0  ;;  %4168 = vmatprep.subr.bf16.mxu1 %v9304_v15  ;;  %4474 = vmatprep.subr.bf16.mxu0 %v9307_v38  ;;  %v9316_v38 = vld [vmem:[%s13005_s1 + $0x3f4] ss:$8 sps:$4 sm:$0xff]  }
 0x179   :  { %v10913_v3 = vadd.f32 %v2051_v57, %v1822_v58  ;;  %v1823_v59 = vadd.f32 %v1747_v4, %v10631_v54  ;;  %v10927_v58 = vld [vmem:[%s13006_s0 + $0x61] sm:$0xff]  ;;  %v9319_v55 = vld [vmem:[%s13005_s1 + $0x434] ss:$8 sps:$4 sm:$0xff]  }
 0x17a   :  { %v1751_v33 = vpop.f32.mrf.mxu1  ;;  %v2057_v40 = vpop.f32.mrf.mxu0  ;;  %8589 = vmatmul.mubr.msk.bf16.gmra.mxu1 %vm151_vm0, %v3432_v35  ;;  %8629 = vmatmul.mubr.msk.bf16.gmra.mxu0 %vm151_vm0, %v3738_v7  ;;  %v8600_v7 = vld [vmem:[%s13006_s0 + $0x62] sm:$0xff] }
 0x17b   :  { %v10929_v54 = vadd.f32 %v2053_v23, %v1823_v59  ;;  %v1824_v4 = vadd.f32 %v1751_v33, %v10653_v16  ;;  %3596 = vmatprep.mubr.bf16.mxu1 %v13059_v48  ;;  %3902 = vmatprep.mubr.bf16.mxu0 %v13059_v48  ;;  %v8601_v23 = vld [vmem:[%s13006_s0 + $0x72] sm:$0xff]  ;;  %v9308_v16 = vld [vmem:[%s13005_s1 + $0x340] ss:$8 sps:$4 sm:$0xff]  }
 0x17c   :  { %v1753_v35 = vpop.f32.mrf.mxu1  ;;  %v2059_v63 = vpop.f32.mrf.mxu0  ;;  %4169 = vmatpush1.bf16.msra.mxu1 %v9302_v18  ;;  %4475 = vmatpush1.bf16.msra.mxu0 %v9305_v62  ;;  %v3433_v18 = vpack.c.bf16 %v10937_v61, %v10927_v58  ;;  %v3739_v62 = vpack.c.bf16 %v8601_v23, %v8600_v7  ;;  %v10983_v23 = vld [vmem:[%s13006_s0 + $0x91] sm:$0xff] }
 0x17d   :  { %v10951_v49 = vadd.f32 %v2057_v40, %v1824_v4  ;;  %v1825_v15 = vadd.f32 %v1753_v35, %v10664_v50  ;;  %4170 = vmatprep.subr.bf16.mxu1 %v9310_v0  ;;  %4476 = vmatprep.subr.bf16.mxu0 %v9313_v11  ;;  %13073 = vst [vmem:[#allocation5_spill] sm:$0xff] %v10983_v23 }
 0x17e   :  { %v1755_v5 = vpop.f32.mrf.mxu1  ;;  %v2061_v57 = vpop.f32.mrf.mxu0 }
 0x17f   :  { %v10962_v59 = vadd.f32 %v2059_v63, %v1825_v15  ;;  %v1826_v50 = vadd.f32 %v1755_v5, %v10667_v34  ;;  %v8603_v63 = vld [vmem:[%s13006_s0 + $0x92] sm:$0xff] }
 0x180   :  { %v1757_v0 = vpop.f32.mrf.mxu1  ;;  %v2063_v11 = vpop.f32.mrf.mxu0  ;;  %4171 = vmatpush1.bf16.msra.mxu1 %v9308_v16  ;;  %4477 = vmatpush1.bf16.msra.mxu0 %v9311_v32 }
 0x181   :  { %v10965_v33 = vadd.f32 %v2061_v57, %v1826_v50  ;;  %v1827_v40 = vadd.f32 %v1757_v0, %v10672_v30  ;;  %4777 = vmatprep.subr.bf16.mxu1 %v9316_v38  ;;  %5083 = vmatprep.subr.bf16.mxu0 %v9319_v55  ;;  %v10978_v30 = vld [vmem:[%s13006_s0 + $0x81] sm:$0xff]  ;;  %v3740_v57 = vpack.c.bf16 %v8603_v63, %v10426_v13  ;;  %v8605_v63 = vld [vmem:[%s13006_s0 + $0xf2] sm:$0xff] }
 0x182   :  { %v1761_v4 = vpop.f32.mrf.mxu1  ;;  %v2067_v35 = vpop.f32.mrf.mxu0  ;;  %8590 = vmatmul.mubr.msk.bf16.gmra.mxu1 %vm151_vm0, %v3433_v18  ;;  %8630 = vmatmul.mubr.msk.bf16.gmra.mxu0 %vm151_vm0, %v3739_v62  ;;  %v3434_v5 = vpack.c.bf16 %v10983_v23, %v10978_v30  ;;  %v8564_v13 = vld [vmem:[%s13006_s0 + $0xe1] sm:$0xff] }
 0x183   :  { %v10970_v7 = vadd.f32 %v2063_v11, %v1827_v40  ;;  %v1828_v34 = vadd.f32 %v1761_v4, %v10690_v20  ;;  %3606 = vmatprep.mubr.bf16.mxu1 %v13059_v48  ;;  %3912 = vmatprep.mubr.bf16.mxu0 %v13059_v48 }
 0x184   :  { %v1763_v16 = vpop.f32.mrf.mxu1  ;;  %v2069_v20 = vpop.f32.mrf.mxu0 }
 0x185   :  { %v10988_v32 = vadd.f32 %v2067_v35, %v1828_v34  ;;  %v1829_v15 = vadd.f32 %v1763_v16, %v10696_v42  ;;  %v8604_v34 = vld [vmem:[%s13006_s0 + $0xe2] sm:$0xff] }
 0x186   :  { %v1765_v38 = vpop.f32.mrf.mxu1  ;;  %v2071_v55 = vpop.f32.mrf.mxu0 }
 0x187   :  { %v10994_v18 = vadd.f32 %v2069_v20, %v1829_v15  ;;  %v1830_v62 = vadd.f32 %v1765_v38, %v10699_v1 }
 0x188   :  { %v1767_v50 = vpop.f32.mrf.mxu1  ;;  %v2073_v0 = vpop.f32.mrf.mxu0 }
 0x189   :  { %v10997_v11 = vadd.f32 %v2071_v55, %v1830_v62  ;;  %v1831_v40 = vadd.f32 %v1767_v50, %v10707_v6  ;;  %v11013_v6 = vld [vmem:[%s13006_s0 + $0xf1] sm:$0xff] }
 0x18a   :  { %v1771_v4 = vpop.f32.mrf.mxu1  ;;  %v2077_v35 = vpop.f32.mrf.mxu0  ;;  %8591 = vmatmul.mubr.msk.bf16.gmra.mxu1 %vm151_vm0, %v3434_v5  ;;  %8631 = vmatmul.mubr.msk.bf16.gmra.mxu0 %vm151_vm0, %v3740_v57  ;;  %13074 = vst [vmem:[#allocation10_spill] sm:$0xff] %v11013_v6  ;;  %v3435_v5 = vpack.c.bf16 %v11013_v6, %v8564_v13  ;;  %v3741_v57 = vpack.c.bf16 %v8605_v63, %v8604_v34  ;;  %v11040_v13 = vld [vmem:[%s13006_s0 + $0x111] sm:$0xff] }
 0x18b   :  { %v11005_v42 = vadd.f32 %v2073_v0, %v1831_v40  ;;  %v1832_v1 = vadd.f32 %v1771_v4, %v10723_v2  ;;  %3616 = vmatprep.mubr.bf16.mxu1 %v13059_v48  ;;  %3922 = vmatprep.mubr.bf16.mxu0 %v13059_v48  ;;  %13075 = vst [vmem:[#allocation11_spill] sm:$0xff] %v11040_v13  ;;  %v8607_v34 = vld [vmem:[%s13006_s0 + $0x112] sm:$0xff] }
 0x18c   :  { %v1773_v16 = vpop.f32.mrf.mxu1  ;;  %v2079_v20 = vpop.f32.mrf.mxu0 }
 0x18d   :  { %v11021_v2 = vadd.f32 %v2077_v35, %v1832_v1  ;;  %v1833_v15 = vadd.f32 %v1773_v16, %v10727_v39  ;;  %v11032_v35 = vld [vmem:[%s13006_s0 + $0x101] sm:$0xff] }
 0x18e   :  { %v1775_v38 = vpop.f32.mrf.mxu1  ;;  %v2081_v55 = vpop.f32.mrf.mxu0  ;;  %v8606_v1 = vld [vmem:[%s13006_s0 + $0x102] sm:$0xff] }
 0x18f   :  { %v11025_v62 = vadd.f32 %v2079_v20, %v1833_v15  ;;  %v3436_v55 = vpack.c.bf16 %v11040_v13, %v11032_v35 }
 0x190   :  { %v1777_v50 = vpop.f32.mrf.mxu1  ;;  %v2083_v0 = vpop.f32.mrf.mxu0 }
 0x192   :  { %v1781_v40 = vpop.f32.mrf.mxu1  ;;  %v2087_v4 = vpop.f32.mrf.mxu0  ;;  %8592 = vmatmul.mubr.msk.bf16.gmra.mxu1 %vm151_vm0, %v3435_v5  ;;  %8632 = vmatmul.mubr.msk.bf16.gmra.mxu0 %vm151_vm0, %v3741_v57  ;;  %v3742_v5 = vpack.c.bf16 %v8607_v34, %v8606_v1 }
 0x193   :  { %v1836_v39 = vadd.f32 %v1781_v40, %v10750_v31  ;;  %3626 = vmatprep.mubr.bf16.mxu1 %v13059_v48  ;;  %3932 = vmatprep.mubr.bf16.mxu0 %v13059_v48 }
 0x194   :  { %v1783_v63 = vpop.f32.mrf.mxu1  ;;  %v2089_v16 = vpop.f32.mrf.mxu0 }
 0x195   :  { %v11048_v31 = vadd.f32 %v2087_v4, %v1836_v39  ;;  %v1837_v20 = vadd.f32 %v1783_v63, %v10755_v19 }
 0x196   :  { %v1785_v15 = vpop.f32.mrf.mxu1  ;;  %v2091_v38 = vpop.f32.mrf.mxu0 }
 0x197   :  { %v11053_v57 = vadd.f32 %v2089_v16, %v1837_v20  ;;  %v1838_v50 = vadd.f32 %v1785_v15, %v10758_v9  ;;  %v11069_v9 = vld [vmem:[%s13006_s0 + $0x121] sm:$0xff] }
 0x198   :  { %v1787_v0 = vpop.f32.mrf.mxu1  ;;  %v2093_v40 = vpop.f32.mrf.mxu0 }
 0x199   :  { %v11056_v6 = vadd.f32 %v2091_v38, %v1838_v50  ;;  %v1839_v23 = vadd.f32 %v1787_v0, %v10768_v56  ;;  %v11074_v56 = vld [vmem:[%s13006_s0 + $0x131] sm:$0xff] }
 0x19a   :  { %v1791_v4 = vpop.f32.mrf.mxu1  ;;  %v2097_v39 = vpop.f32.mrf.mxu0  ;;  %8593 = vmatmul.mubr.msk.bf16.gmra.mxu1 %vm151_vm0, %v3436_v55  ;;  %8633 = vmatmul.mubr.msk.bf16.gmra.mxu0 %vm151_vm0, %v3742_v5  ;;  %13076 = vst [vmem:[#allocation12_spill] sm:$0xff] %v11074_v56  ;;  %v3437_v38 = vpack.c.bf16 %v11074_v56, %v11069_v9 }
 0x19b   :  { %v11061_v19 = vadd.f32 %v2093_v40, %v1839_v23  ;;  %v1840_v1 = vadd.f32 %v1791_v4, %v10784_v43  ;;  %3636 = vmatprep.mubr.bf16.mxu1 %v13059_v48  ;;  %3942 = vmatprep.mubr.bf16.mxu0 %v13059_v48  ;;  %v8608_v23 = vld [vmem:[%s13006_s0 + $0x122] sm:$0xff] }
 0x19c   :  { %v1793_v34 = vpop.f32.mrf.mxu1  ;;  %v2099_v43 = vpop.f32.mrf.mxu0  ;;  %v3743_v55 = vpack.c.bf16 %v10507_v17, %v8608_v23  ;;  %v8611_v23 = vld [vmem:[%s13006_s0 + $0x152] sm:$0xff] }
 0x19d   :  { %v11079_v63 = vadd.f32 %v2097_v39, %v1840_v1  ;;  %v1841_v16 = vadd.f32 %v1793_v34, %v10789_v27 }
 0x19e   :  { %v1795_v20 = vpop.f32.mrf.mxu1  ;;  %v2101_v15 = vpop.f32.mrf.mxu0 }
 0x19f   :  { %v11085_v5 = vadd.f32 %v2099_v43, %v1841_v16  ;;  %v1842_v50 = vadd.f32 %v1795_v20, %v10792_v36  ;;  %v11101_v36 = vld [vmem:[%s13006_s0 + $0x141] sm:$0xff] }
 0x1a0   :  { %v1797_v0 = vpop.f32.mrf.mxu1  ;;  %v2103_v40 = vpop.f32.mrf.mxu0 }
 0x1a1   :  { %v11088_v4 = vadd.f32 %v2101_v15, %v1842_v50  ;;  %v1843_v39 = vadd.f32 %v1797_v0, %v10797_v41  ;;  %v11106_v41 = vld [vmem:[%s13006_s0 + $0x151] sm:$0xff] }
 0x1a2   :  { %v1801_v1 = vpop.f32.mrf.mxu1  ;;  %v2107_v13 = vpop.f32.mrf.mxu0  ;;  %8594 = vmatmul.mubr.msk.bf16.gmra.mxu1 %vm151_vm0, %v3437_v38  ;;  %8634 = vmatmul.mubr.msk.bf16.gmra.mxu0 %vm151_vm0, %v3743_v55  ;;  %v3438_v38 = vpack.c.bf16 %v11106_v41, %v11101_v36  ;;  %v3744_v55 = vpack.c.bf16 %v8611_v23, %v10512_v51 }
 0x1a3   :  { %v11093_v27 = vadd.f32 %v2103_v40, %v1843_v39  ;;  %v1844_v17 = vadd.f32 %v1801_v1, %v10815_v10  ;;  %3646 = vmatprep.mubr.bf16.mxu1 %v13059_v48  ;;  %3952 = vmatprep.mubr.bf16.mxu0 %v13059_v48 }
 0x1a4   :  { %v1803_v34 = vpop.f32.mrf.mxu1  ;;  %v2109_v10 = vpop.f32.mrf.mxu0 }
 0x1a5   :  { %v11111_v43 = vadd.f32 %v2107_v13, %v1844_v17  ;;  %v1845_v16 = vadd.f32 %v1803_v34, %v10821_v47 }
 0x1a6   :  { %v1805_v20 = vpop.f32.mrf.mxu1  ;;  %v2111_v15 = vpop.f32.mrf.mxu0 }
 0x1a7   :  { %v11117_v50 = vadd.f32 %v2109_v10, %v1845_v16  ;;  %v1846_v0 = vadd.f32 %v1805_v20, %v10824_v28  ;;  %v8636_v28 = vld [vmem:[%s13006_s0 + $0x23] sm:$0xff] }
 0x1a8   :  { %v1807_v40 = vpop.f32.mrf.mxu1  ;;  %v2113_v39 = vpop.f32.mrf.mxu0 }
 0x1a9   :  { %v11120_v1 = vadd.f32 %v2111_v15, %v1846_v0  ;;  %v1847_v13 = vadd.f32 %v1807_v40, %v10832_v21  ;;  %v11136_v21 = vld [vmem:[%s13006_s0 + $0x33] sm:$0xff] }
 0x1aa   :  { %v1811_v17 = vpop.f32.mrf.mxu1  ;;  %v2117_v56 = vpop.f32.mrf.mxu0  ;;  %8595 = vmatmul.mubr.msk.bf16.gmra.mxu1 %vm151_vm0, %v3438_v38  ;;  %8635 = vmatmul.mubr.msk.bf16.gmra.mxu0 %vm151_vm0, %v3744_v55  ;;  %13077 = vst [vmem:[#allocation13_spill] sm:$0xff] %v11136_v21  ;;  %v4043_v15 = vpack.c.bf16 %v11136_v21, %v8636_v28  ;;  %v4349_v38 = vpack.c.bf16 %v10573_v60, %v10542_v24  ;;  %v9314_v0 = vld [vmem:[%s13005_s1 + $0x3f0] ss:$8 sps:$4 sm:$0xff]   ;;  %v9325_v24 = vld [vmem:[%s13005_s1 + $0x424] ss:$8 sps:$4 sm:$0xff]  }
 0x1ab   :  { %v11125_v47 = vadd.f32 %v2113_v39, %v1847_v13  ;;  %v1848_v51 = vadd.f32 %v1811_v17, %v10848_v25  ;;  %4188 = vmatprep.mubr.bf16.mxu1 %v13059_v48  ;;  %4494 = vmatprep.mubr.bf16.mxu0 %v13059_v48  ;;  %v11163_v17 = vld [vmem:[%s13006_s0 + $0x43] sm:$0xff]  ;;  %v11169_v28 = vld [vmem:[%s13006_s0 + $0x53] sm:$0xff] }
 0x1ac   :  { %v1813_v23 = vpop.f32.mrf.mxu1  ;;  %v2119_v34 = vpop.f32.mrf.mxu0 }
 0x1ad   :  { %v11138_v10 = vadd.f32 %v2117_v56, %v1848_v51  ;;  %v1849_v16 = vadd.f32 %v1813_v23, %v10852_v52  ;;  %v9317_v56 = vld [vmem:[%s13005_s1 + $0x430] ss:$8 sps:$4 sm:$0xff]   ;;  %v9322_v52 = vld [vmem:[%s13005_s1 + $0x3e4] ss:$8 sps:$4 sm:$0xff]   ;;  %v9320_v23 = vld [vmem:[%s13005_s1 + $0x3e0] ss:$8 sps:$4 sm:$0xff]  }
 0x1ae   :  { %v1815_v25 = vpop.f32.mrf.mxu1  ;;  %v2121_v20 = vpop.f32.mrf.mxu0 }
 0x1af   :  { %v11144_v55 = vadd.f32 %v2119_v34, %v1849_v16  ;;  %v9323_v34 = vld [vmem:[%s13005_s1 + $0x420] ss:$8 sps:$4 sm:$0xff]   ;;  %v9331_v20 = vld [vmem:[%s13005_s1 + $0x414] ss:$8 sps:$4 sm:$0xff]  }
 0x1b0   :  { %v1817_v40 = vpop.f32.mrf.mxu1  ;;  %v2123_v39 = vpop.f32.mrf.mxu0 }
 0x1b1   :  { %v4044_v40 = vpack.c.bf16 %v11169_v28, %v11163_v17  ;;  %v4350_v39 = vpack.c.bf16 %v10629_v8, %v10578_v44  ;;  %v9334_v8 = vld [vmem:[%s13005_s1 + $0x3c4] ss:$8 sps:$4 sm:$0xff]  }
 0x1b2   :  { %v2353_v60 = vpop.f32.mrf.mxu1  ;;  %v2659_v13 = vpop.f32.mrf.mxu0  ;;  %8668 = vmatmul.mubr.msk.bf16.vlgmr.msra.gmra.mxu1 %vm151_vm0, %v4043_v15  ;;  %8708 = vmatmul.mubr.msk.bf16.vlgmr.msra.gmra.mxu0 %vm151_vm0, %v4349_v38 }
 0x1b3   :  { %v2432_v51 = vadd.f32 %v2353_v60, %v10899_v46  ;;  %4778 = vmatpush1.bf16.msra.mxu1 %v9314_v0  ;;  %5084 = vmatpush1.bf16.msra.mxu0 %v9317_v56  ;;  %v9328_v46 = vld [vmem:[%s13005_s1 + $0x3d4] ss:$8 sps:$4 sm:$0xff]  }
 0x1b4   :  { %v2355_v16 = vpop.f32.mrf.mxu1  ;;  %v2661_v25 = vpop.f32.mrf.mxu0  ;;  %4198 = vmatprep.mubr.bf16.mxu1 %v13059_v48  ;;  %4504 = vmatprep.mubr.bf16.mxu0 %v13059_v48 }
 0x1b5   :  { %v11185_v15 = vadd.f32 %v2659_v13, %v2432_v51  ;;  %v2433_v38 = vadd.f32 %v2355_v16, %v10904_v37  ;;  %4779 = vmatprep.subr.bf16.mxu1 %v9322_v52  ;;  %5085 = vmatprep.subr.bf16.mxu0 %v9325_v24  ;;  %v9326_v37 = vld [vmem:[%s13005_s1 + $0x3d0] ss:$8 sps:$4 sm:$0xff]  }
 0x1b6   :  { %v2357_v0 = vpop.f32.mrf.mxu1  ;;  %v2663_v56 = vpop.f32.mrf.mxu0  ;;  %v9329_v52 = vld [vmem:[%s13005_s1 + $0x410] ss:$8 sps:$4 sm:$0xff]  }
 0x1b7   :  { %v11192_v60 = vadd.f32 %v2661_v25, %v2433_v38  ;;  %v2434_v21 = vadd.f32 %v2357_v0, %v10913_v3  ;;  %4780 = vmatpush1.bf16.msra.mxu1 %v9320_v23  ;;  %5086 = vmatpush1.bf16.msra.mxu0 %v9323_v34  ;;  %v9337_v3 = vld [vmem:[%s13005_s1 + $0x404] ss:$8 sps:$4 sm:$0xff]   ;;  %v11225_v25 = vld [vmem:[%s13006_s0 + $0x73] sm:$0xff]  ;;  %v9335_v38 = vld [vmem:[%s13005_s1 + $0x400] ss:$8 sps:$4 sm:$0xff]  }
 0x1b8   :  { %v2359_v13 = vpop.f32.mrf.mxu1  ;;  %v2665_v51 = vpop.f32.mrf.mxu0  ;;  %4781 = vmatprep.subr.bf16.mxu1 %v9328_v46  ;;  %5087 = vmatprep.subr.bf16.mxu0 %v9331_v20 }
 0x1b9   :  { %v11201_v24 = vadd.f32 %v2663_v56, %v2434_v21  ;;  %v2435_v44 = vadd.f32 %v2359_v13, %v10929_v54  ;;  %v11220_v54 = vld [vmem:[%s13006_s0 + $0x63] sm:$0xff] }
 0x1ba   :  { %v2363_v23 = vpop.f32.mrf.mxu1  ;;  %v2669_v34 = vpop.f32.mrf.mxu0  ;;  %8669 = vmatmul.mubr.msk.bf16.gmra.mxu1 %vm151_vm0, %v4044_v40  ;;  %8709 = vmatmul.mubr.msk.bf16.gmra.mxu0 %vm151_vm0, %v4350_v39  ;;  %v9340_v40 = vld [vmem:[%s13005_s1 + $0x474] ss:$8 sps:$4 sm:$0xff]  }
 0x1bb   :  { %v11212_v16 = vadd.f32 %v2665_v51, %v2435_v44  ;;  %v2436_v21 = vadd.f32 %v2363_v23, %v10951_v49  ;;  %4208 = vmatprep.mubr.bf16.mxu1 %v13059_v48  ;;  %4514 = vmatprep.mubr.bf16.mxu0 %v13059_v48  ;;  %v9332_v49 = vld [vmem:[%s13005_s1 + $0x3c0] ss:$8 sps:$4 sm:$0xff]   ;;  %v9343_v39 = vld [vmem:[%s13005_s1 + $0x4b4] ss:$8 sps:$4 sm:$0xff]  }
 0x1bc   :  { %v2365_v46 = vpop.f32.mrf.mxu1  ;;  %v2671_v20 = vpop.f32.mrf.mxu0  ;;  %4782 = vmatpush1.bf16.msra.mxu1 %v9326_v37  ;;  %5088 = vmatpush1.bf16.msra.mxu0 %v9329_v52  ;;  %v4045_v37 = vpack.c.bf16 %v11225_v25, %v11220_v54  ;;  %v4351_v52 = vpack.c.bf16 %v10680_v22, %v10639_v12 }
 0x1bd   :  { %v11233_v0 = vadd.f32 %v2669_v34, %v2436_v21  ;;  %v2437_v56 = vadd.f32 %v2365_v46, %v10962_v59  ;;  %4783 = vmatprep.subr.bf16.mxu1 %v9334_v8  ;;  %5089 = vmatprep.subr.bf16.mxu0 %v9337_v3 }
 0x1be   :  { %v2367_v13 = vpop.f32.mrf.mxu1  ;;  %v2673_v51 = vpop.f32.mrf.mxu0 }
 0x1bf   :  { %v11246_v44 = vadd.f32 %v2671_v20, %v2437_v56  ;;  %v2438_v59 = vadd.f32 %v2367_v13, %v10965_v33  ;;  %v11262_v33 = vld [vmem:[%s13006_s0 + $0x83] sm:$0xff]  ;;  %v8683_v20 = vld [vmem:[%s13006_s0 + $0x94] sm:$0xff] }
 0x1c0   :  { %v2369_v8 = vpop.f32.mrf.mxu1  ;;  %v2675_v3 = vpop.f32.mrf.mxu0  ;;  %4784 = vmatpush1.bf16.msra.mxu1 %v9332_v49  ;;  %5090 = vmatpush1.bf16.msra.mxu0 %v9335_v38 }
 0x1c1   :  { %v11249_v23 = vadd.f32 %v2673_v51, %v2438_v59  ;;  %v2439_v34 = vadd.f32 %v2369_v8, %v10970_v7  ;;  %5389 = vmatprep.subr.bf16.mxu1 %v9340_v40  ;;  %5695 = vmatprep.subr.bf16.mxu0 %v9343_v39  ;;  %v11267_v7 = vld [vmem:[%s13006_s0 + $0x93] sm:$0xff]  ;;  %v4352_v51 = vpack.c.bf16 %v8683_v20, %v10685_v26 }
 0x1c2   :  { %v2373_v21 = vpop.f32.mrf.mxu1  ;;  %v2679_v46 = vpop.f32.mrf.mxu0  ;;  %8670 = vmatmul.mubr.msk.bf16.gmra.mxu1 %vm151_vm0, %v4045_v37  ;;  %8710 = vmatmul.mubr.msk.bf16.gmra.mxu0 %vm151_vm0, %v4351_v52  ;;  %v4046_v13 = vpack.c.bf16 %v11267_v7, %v11262_v33 }
 0x1c3   :  { %v11254_v12 = vadd.f32 %v2675_v3, %v2439_v34  ;;  %v2440_v22 = vadd.f32 %v2373_v21, %v10988_v32  ;;  %4218 = vmatprep.mubr.bf16.mxu1 %v13059_v48  ;;  %4524 = vmatprep.mubr.bf16.mxu0 %v13059_v48 }
 0x1c4   :  { %v2375_v49 = vpop.f32.mrf.mxu1  ;;  %v2681_v32 = vpop.f32.mrf.mxu0 }
 0x1c5   :  { %v11272_v38 = vadd.f32 %v2679_v46, %v2440_v22  ;;  %v2441_v56 = vadd.f32 %v2375_v49, %v10994_v18 }
 0x1c6   :  { %v2377_v40 = vpop.f32.mrf.mxu1  ;;  %v2683_v39 = vpop.f32.mrf.mxu0 }
 0x1c7   :  { %v11278_v37 = vadd.f32 %v2681_v32, %v2441_v56  ;;  %v2442_v52 = vadd.f32 %v2377_v40, %v10997_v11  ;;  %v8644_v11 = vld [vmem:[%s13006_s0 + $0xe3] sm:$0xff] }
 0x1c8   :  { %v2379_v59 = vpop.f32.mrf.mxu1  ;;  %v2685_v8 = vpop.f32.mrf.mxu0 }
 0x1c9   :  { %v11281_v3 = vadd.f32 %v2683_v39, %v2442_v52  ;;  %v2443_v34 = vadd.f32 %v2379_v59, %v11005_v42  ;;  %v11297_v42 = vld [vmem:[%s13006_s0 + $0xf3] sm:$0xff]  ;;  %v4353_v39 = vpack.c.bf16 %v10734_v29, %v10715_v45  ;;  %v11315_v45 = vld [vmem:[%s13006_s0 + $0x103] sm:$0xff] }
 0x1ca   :  { %v2383_v21 = vpop.f32.mrf.mxu1  ;;  %v2689_v46 = vpop.f32.mrf.mxu0  ;;  %8671 = vmatmul.mubr.msk.bf16.gmra.mxu1 %vm151_vm0, %v4046_v13  ;;  %8711 = vmatmul.mubr.msk.bf16.gmra.mxu0 %vm151_vm0, %v4352_v51  ;;  %v4047_v40 = vpack.c.bf16 %v11297_v42, %v8644_v11  ;;  %13078 = vst [vmem:[#allocation14_spill] sm:$0xff] %v11315_v45  ;;  %v11320_v29 = vld [vmem:[%s13006_s0 + $0x113] sm:$0xff] }
 0x1cb   :  { %v11286_v18 = vadd.f32 %v2685_v8, %v2443_v34  ;;  %v2444_v26 = vadd.f32 %v2383_v21, %v11021_v2  ;;  %4228 = vmatprep.mubr.bf16.mxu1 %v13059_v48  ;;  %4534 = vmatprep.mubr.bf16.mxu0 %v13059_v48  ;;  %13079 = vst [vmem:[#allocation15_spill] sm:$0xff] %v11320_v29 }
 0x1cc   :  { %v2385_v22 = vpop.f32.mrf.mxu1  ;;  %v2691_v20 = vpop.f32.mrf.mxu0 }
 0x1cd   :  { %v11299_v49 = vadd.f32 %v2689_v46, %v2444_v26  ;;  %v2445_v32 = vadd.f32 %v2385_v22, %v11025_v62  ;;  %v4048_v22 = vpack.c.bf16 %v11320_v29, %v11315_v45 }
 0x1ce   :  { %v2387_v2 = vpop.f32.mrf.mxu1  ;;  %v2693_v56 = vpop.f32.mrf.mxu0 }
 0x1cf   :  { %v11305_v13 = vadd.f32 %v2691_v20, %v2445_v32  ;;  %v13080_v20 = vld [vmem:[#allocation3_spill] sm:$0xff]  ;;  %v13081_v32 = vld [vmem:[#allocation6_spill] sm:$0xff] }
 0x1d0   :  { %v2389_v51 = vpop.f32.mrf.mxu1  ;;  %v2695_v52 = vpop.f32.mrf.mxu0  ;;  %v4354_v2 = vpack.c.bf16 %v13081_v32, %v13080_v20  ;;  %v13084_v32 = vld [vmem:[#allocation7_spill] sm:$0xff] }
 0x1d2   :  { %v2393_v59 = vpop.f32.mrf.mxu1  ;;  %v2699_v8 = vpop.f32.mrf.mxu0  ;;  %8672 = vmatmul.mubr.msk.bf16.gmra.mxu1 %vm151_vm0, %v4047_v40  ;;  %8712 = vmatmul.mubr.msk.bf16.gmra.mxu0 %vm151_vm0, %v4353_v39 }
 0x1d3   :  { %v2448_v34 = vadd.f32 %v2393_v59, %v11048_v31  ;;  %4238 = vmatprep.mubr.bf16.mxu1 %v13059_v48  ;;  %4544 = vmatprep.mubr.bf16.mxu0 %v13059_v48 }
 0x1d4   :  { %v2395_v62 = vpop.f32.mrf.mxu1  ;;  %v2701_v21 = vpop.f32.mrf.mxu0 }
 0x1d5   :  { %v11322_v46 = vadd.f32 %v2699_v8, %v2448_v34  ;;  %v2449_v31 = vadd.f32 %v2395_v62, %v11053_v57 }
 0x1d6   :  { %v2397_v26 = vpop.f32.mrf.mxu1  ;;  %v2703_v11 = vpop.f32.mrf.mxu0 }
 0x1d7   :  { %v11329_v56 = vadd.f32 %v2701_v21, %v2449_v31  ;;  %v2450_v40 = vadd.f32 %v2397_v26, %v11056_v6  ;;  %v11345_v6 = vld [vmem:[%s13006_s0 + $0x123] sm:$0xff] }
 0x1d8   :  { %v2399_v39 = vpop.f32.mrf.mxu1  ;;  %v2705_v51 = vpop.f32.mrf.mxu0  ;;  %13082 = vst [vmem:[#allocation3_spill] sm:$0xff] %v11345_v6 }
 0x1d9   :  { %v11332_v52 = vadd.f32 %v2703_v11, %v2450_v40  ;;  %v2451_v59 = vadd.f32 %v2399_v39, %v11061_v19  ;;  %v11350_v19 = vld [vmem:[%s13006_s0 + $0x133] sm:$0xff] }
 0x1da   :  { %v2403_v8 = vpop.f32.mrf.mxu1  ;;  %v2709_v57 = vpop.f32.mrf.mxu0  ;;  %8673 = vmatmul.mubr.msk.bf16.gmra.mxu1 %vm151_vm0, %v4048_v22  ;;  %8713 = vmatmul.mubr.msk.bf16.gmra.mxu0 %vm151_vm0, %v4354_v2  ;;  %13083 = vst [vmem:[#allocation6_spill] sm:$0xff] %v11350_v19  ;;  %v4049_v20 = vpack.c.bf16 %v11350_v19, %v11345_v6  ;;  %v13085_v2 = vld [vmem:[#allocation8_spill] sm:$0xff] }
 0x1db   :  { %v11337_v34 = vadd.f32 %v2705_v51, %v2451_v59  ;;  %v2452_v62 = vadd.f32 %v2403_v8, %v11079_v63  ;;  %4248 = vmatprep.mubr.bf16.mxu1 %v13059_v48  ;;  %4554 = vmatprep.mubr.bf16.mxu0 %v13059_v48  ;;  %v4355_v40 = vpack.c.bf16 %v13085_v2, %v13084_v32 }
 0x1dc   :  { %v2405_v21 = vpop.f32.mrf.mxu1  ;;  %v2711_v31 = vpop.f32.mrf.mxu0 }
 0x1dd   :  { %v11352_v26 = vadd.f32 %v2709_v57, %v2452_v62  ;;  %v2453_v63 = vadd.f32 %v2405_v21, %v11085_v5 }
 0x1de   :  { %v2407_v11 = vpop.f32.mrf.mxu1  ;;  %v2713_v22 = vpop.f32.mrf.mxu0 }
 0x1df   :  { %v11359_v39 = vadd.f32 %v2711_v31, %v2453_v63  ;;  %v2454_v51 = vadd.f32 %v2407_v11, %v11088_v4  ;;  %v11375_v4 = vld [vmem:[%s13006_s0 + $0x143] sm:$0xff]  ;;  %v8691_v31 = vld [vmem:[%s13006_s0 + $0x154] sm:$0xff] }
 0x1e0   :  { %v2409_v59 = vpop.f32.mrf.mxu1  ;;  %v2715_v8 = vpop.f32.mrf.mxu0 }
 0x1e1   :  { %v11362_v29 = vadd.f32 %v2713_v22, %v2454_v51  ;;  %v2455_v57 = vadd.f32 %v2409_v59, %v11093_v27  ;;  %v11380_v27 = vld [vmem:[%s13006_s0 + $0x153] sm:$0xff] }
 0x1e2   :  { %v2413_v62 = vpop.f32.mrf.mxu1  ;;  %v2719_v5 = vpop.f32.mrf.mxu0  ;;  %8674 = vmatmul.mubr.msk.bf16.gmra.mxu1 %vm151_vm0, %v4049_v20  ;;  %8714 = vmatmul.mubr.msk.bf16.gmra.mxu0 %vm151_vm0, %v4355_v40  ;;  %13086 = vst [vmem:[#allocation7_spill] sm:$0xff] %v11380_v27  ;;  %v4050_v40 = vpack.c.bf16 %v11380_v27, %v11375_v4  ;;  %v13087_v51 = vld [vmem:[#allocation9_spill] sm:$0xff] }
 0x1e3   :  { %v11367_v21 = vadd.f32 %v2715_v8, %v2455_v57  ;;  %v2456_v32 = vadd.f32 %v2413_v62, %v11111_v43  ;;  %4258 = vmatprep.mubr.bf16.mxu1 %v13059_v48  ;;  %4564 = vmatprep.mubr.bf16.mxu0 %v13059_v48  ;;  %v4356_v59 = vpack.c.bf16 %v8691_v31, %v13087_v51 }
 0x1e4   :  { %v2415_v63 = vpop.f32.mrf.mxu1  ;;  %v2721_v43 = vpop.f32.mrf.mxu0 }
 0x1e5   :  { %v11385_v11 = vadd.f32 %v2719_v5, %v2456_v32  ;;  %v2457_v22 = vadd.f32 %v2415_v63, %v11117_v50 }
 0x1e6   :  { %v2417_v20 = vpop.f32.mrf.mxu1  ;;  %v2723_v2 = vpop.f32.mrf.mxu0 }
 0x1e7   :  { %v11391_v8 = vadd.f32 %v2721_v43, %v2457_v22  ;;  %v2458_v57 = vadd.f32 %v2417_v20, %v11120_v1  ;;  %v8716_v1 = vld [vmem:[%s13006_s0 + $0x30] sm:$0xff] }
 0x1e8   :  { %v2419_v62 = vpop.f32.mrf.mxu1  ;;  %v2725_v19 = vpop.f32.mrf.mxu0 }
 0x1e9   :  { %v11394_v6 = vadd.f32 %v2723_v2, %v2458_v57  ;;  %v2459_v5 = vadd.f32 %v2419_v62, %v11125_v47  ;;  %v11410_v47 = vld [vmem:[%s13006_s0 + $0x40] sm:$0xff]  ;;  %v9338_v57 = vld [vmem:[%s13005_s1 + $0x470] ss:$8 sps:$4 sm:$0xff]  }
 0x1ea   :  { %v2423_v32 = vpop.f32.mrf.mxu1  ;;  %v2729_v45 = vpop.f32.mrf.mxu0  ;;  %8675 = vmatmul.mubr.msk.bf16.gmra.mxu1 %vm151_vm0, %v4050_v40  ;;  %8715 = vmatmul.mubr.msk.bf16.gmra.mxu0 %vm151_vm0, %v4356_v59  ;;  %13088 = vst [vmem:[#allocation8_spill] sm:$0xff] %v11410_v47  ;;  %v4656_v2 = vpack.c.bf16 %v11410_v47, %v8716_v1  ;;  %v13089_v40 = vld [vmem:[#allocation4_spill] sm:$0xff]  ;;  %v11437_v1 = vld [vmem:[%s13006_s0 + $0x50] sm:$0xff] }
 0x1eb   :  { %v11399_v50 = vadd.f32 %v2725_v19, %v2459_v5  ;;  %v2460_v31 = vadd.f32 %v2423_v32, %v11138_v10  ;;  %4801 = vmatprep.mubr.bf16.mxu1 %v13059_v48  ;;  %5107 = vmatprep.mubr.bf16.mxu0 %v13059_v48  ;;  %v4962_v51 = vpack.c.bf16 %v10871_v14, %v13089_v40  ;;  %v9349_v14 = vld [vmem:[%s13005_s1 + $0x4a4] ss:$8 sps:$4 sm:$0xff]   ;;  %v9355_v40 = vld [vmem:[%s13005_s1 + $0x494] ss:$8 sps:$4 sm:$0xff]  }
 0x1ec   :  { %v2425_v63 = vpop.f32.mrf.mxu1  ;;  %v2731_v43 = vpop.f32.mrf.mxu0 }
 0x1ed   :  { %v11412_v22 = vadd.f32 %v2729_v45, %v2460_v31  ;;  %v2461_v19 = vadd.f32 %v2425_v63, %v11144_v55  ;;  %v9341_v45 = vld [vmem:[%s13005_s1 + $0x4b0] ss:$8 sps:$4 sm:$0xff]   ;;  %v9346_v55 = vld [vmem:[%s13005_s1 + $0x464] ss:$8 sps:$4 sm:$0xff]  }
 0x1ee   :  { %v2427_v10 = vpop.f32.mrf.mxu1  ;;  %v2733_v20 = vpop.f32.mrf.mxu0 }
 0x1ef   :  { %v11418_v59 = vadd.f32 %v2731_v43, %v2461_v19  ;;  %v11443_v43 = vld [vmem:[%s13006_s0 + $0x60] sm:$0xff] }
 0x1f0   :  { %v2429_v62 = vpop.f32.mrf.mxu1  ;;  %v2735_v5 = vpop.f32.mrf.mxu0  ;;  %v9344_v19 = vld [vmem:[%s13005_s1 + $0x460] ss:$8 sps:$4 sm:$0xff]  }
 0x1f1   :  { %v9347_v10 = vld [vmem:[%s13005_s1 + $0x4a0] ss:$8 sps:$4 sm:$0xff]   ;;  %v4657_v5 = vpack.c.bf16 %v11443_v43, %v11437_v1 }
 0x1f2   :  { %v2965_v32 = vpop.f32.mrf.mxu1  ;;  %v3272_v31 = vpop.f32.mrf.mxu0  ;;  %8748 = vmatmul.mubr.msk.bf16.vlgmr.msra.gmra.mxu1 %vm151_vm0, %v4656_v2  ;;  %8788 = vmatmul.mubr.msk.bf16.vlgmr.msra.gmra.mxu0 %vm151_vm0, %v4962_v51 }
 0x1f3   :  { %v3044_v63 = vadd.f32 %v2965_v32, %v11185_v15  ;;  %5390 = vmatpush1.bf16.msra.mxu1 %v9338_v57  ;;  %5696 = vmatpush1.bf16.msra.mxu0 %v9341_v45  ;;  %v9352_v15 = vld [vmem:[%s13005_s1 + $0x454] ss:$8 sps:$4 sm:$0xff]   ;;  %v4963_v32 = vpack.c.bf16 %v10927_v58, %v10876_v53  ;;  %v9358_v58 = vld [vmem:[%s13005_s1 + $0x444] ss:$8 sps:$4 sm:$0xff]  }
 0x1f4   :  { %v2967_v20 = vpop.f32.mrf.mxu1  ;;  %v3274_v2 = vpop.f32.mrf.mxu0  ;;  %4811 = vmatprep.mubr.bf16.mxu1 %v13059_v48  ;;  %5117 = vmatprep.mubr.bf16.mxu0 %v13059_v48 }
 0x1f5   :  { %v11459_v51 = vadd.f32 %v3272_v31, %v3044_v63  ;;  %v3045_v57 = vadd.f32 %v2967_v20, %v11192_v60  ;;  %5391 = vmatprep.subr.bf16.mxu1 %v9346_v55  ;;  %5697 = vmatprep.subr.bf16.mxu0 %v9349_v14  ;;  %v9350_v60 = vld [vmem:[%s13005_s1 + $0x450] ss:$8 sps:$4 sm:$0xff]  }
 0x1f6   :  { %v2969_v45 = vpop.f32.mrf.mxu1  ;;  %v3276_v62 = vpop.f32.mrf.mxu0  ;;  %v9353_v55 = vld [vmem:[%s13005_s1 + $0x490] ss:$8 sps:$4 sm:$0xff]  }
 0x1f7   :  { %v11466_v47 = vadd.f32 %v3274_v2, %v3045_v57  ;;  %v3046_v27 = vadd.f32 %v2969_v45, %v11201_v24  ;;  %5392 = vmatpush1.bf16.msra.mxu1 %v9344_v19  ;;  %5698 = vmatpush1.bf16.msra.mxu0 %v9347_v10  ;;  %v9361_v24 = vld [vmem:[%s13005_s1 + $0x484] ss:$8 sps:$4 sm:$0xff]   ;;  %v9359_v57 = vld [vmem:[%s13005_s1 + $0x480] ss:$8 sps:$4 sm:$0xff]  }
 0x1f8   :  { %v2971_v31 = vpop.f32.mrf.mxu1  ;;  %v3278_v63 = vpop.f32.mrf.mxu0  ;;  %5393 = vmatprep.subr.bf16.mxu1 %v9352_v15  ;;  %5699 = vmatprep.subr.bf16.mxu0 %v9355_v40  ;;  %v11499_v2 = vld [vmem:[%s13006_s0 + $0x80] sm:$0xff] }
 0x1f9   :  { %v11475_v14 = vadd.f32 %v3276_v62, %v3046_v27  ;;  %v3047_v53 = vadd.f32 %v2971_v31, %v11212_v16  ;;  %v11494_v16 = vld [vmem:[%s13006_s0 + $0x70] sm:$0xff] }
 0x1fa   :  { %v2975_v19 = vpop.f32.mrf.mxu1  ;;  %v3282_v10 = vpop.f32.mrf.mxu0  ;;  %8749 = vmatmul.mubr.msk.bf16.gmra.mxu1 %vm151_vm0, %v4657_v5  ;;  %8789 = vmatmul.mubr.msk.bf16.gmra.mxu0 %vm151_vm0, %v4963_v32  ;;  %v9364_v5 = vld [vmem:[%s13005_s1 + $0x4f4] ss:$8 sps:$4 sm:$0xff]  }
 0x1fb   :  { %v11486_v20 = vadd.f32 %v3278_v63, %v3047_v53  ;;  %v3048_v27 = vadd.f32 %v2975_v19, %v11233_v0  ;;  %4821 = vmatprep.mubr.bf16.mxu1 %v13059_v48  ;;  %5127 = vmatprep.mubr.bf16.mxu0 %v13059_v48  ;;  %v9356_v0 = vld [vmem:[%s13005_s1 + $0x440] ss:$8 sps:$4 sm:$0xff]   ;;  %v9367_v32 = vld [vmem:[%s13005_s1 + $0x534] ss:$8 sps:$4 sm:$0xff]  }
 0x1fc   :  { %v2977_v15 = vpop.f32.mrf.mxu1  ;;  %v3284_v40 = vpop.f32.mrf.mxu0  ;;  %5394 = vmatpush1.bf16.msra.mxu1 %v9350_v60  ;;  %5700 = vmatpush1.bf16.msra.mxu0 %v9353_v55  ;;  %v4658_v60 = vpack.c.bf16 %v11499_v2, %v11494_v16  ;;  %v4964_v55 = vpack.c.bf16 %v10978_v30, %v10937_v61 }
 0x1fd   :  { %v11507_v45 = vadd.f32 %v3282_v10, %v3048_v27  ;;  %v3049_v62 = vadd.f32 %v2977_v15, %v11246_v44  ;;  %5395 = vmatprep.subr.bf16.mxu1 %v9358_v58  ;;  %5701 = vmatprep.subr.bf16.mxu0 %v9361_v24 }
 0x1fe   :  { %v2979_v31 = vpop.f32.mrf.mxu1  ;;  %v3286_v63 = vpop.f32.mrf.mxu0 }
 0x1ff   :  { %v11520_v53 = vadd.f32 %v3284_v40, %v3049_v62  ;;  %v3050_v44 = vadd.f32 %v2979_v31, %v11249_v23  ;;  %v11536_v23 = vld [vmem:[%s13006_s0 + $0x90] sm:$0xff]  ;;  %v8763_v40 = vld [vmem:[%s13006_s0 + $0xa1] sm:$0xff] }
 0x200   :  { %v2981_v58 = vpop.f32.mrf.mxu1  ;;  %v3288_v24 = vpop.f32.mrf.mxu0  ;;  %5396 = vmatpush1.bf16.msra.mxu1 %v9356_v0  ;;  %5702 = vmatpush1.bf16.msra.mxu0 %v9359_v57 }
 0x201   :  { %v11523_v19 = vadd.f32 %v3286_v63, %v3050_v44  ;;  %v3051_v10 = vadd.f32 %v2981_v58, %v11254_v12  ;;  %6001 = vmatprep.subr.bf16.mxu1 %v9364_v5  ;;  %6308 = vmatprep.subr.bf16.mxu0 %v9367_v32  ;;  %v11541_v12 = vld [vmem:[%s13006_s0 + $0xa0] sm:$0xff]  ;;  %v13090_v63 = vld [vmem:[#allocation5_spill] sm:$0xff] }
 0x202   :  { %v2985_v27 = vpop.f32.mrf.mxu1  ;;  %v3292_v15 = vpop.f32.mrf.mxu0  ;;  %8750 = vmatmul.mubr.msk.bf16.gmra.mxu1 %vm151_vm0, %v4658_v60  ;;  %8790 = vmatmul.mubr.msk.bf16.gmra.mxu0 %vm151_vm0, %v4964_v55  ;;  %v4659_v31 = vpack.c.bf16 %v11541_v12, %v11536_v23  ;;  %v4965_v60 = vpack.c.bf16 %v8763_v40, %v13090_v63  ;;  %v13091_v63 = vld [vmem:[#allocation10_spill] sm:$0xff] }
 0x203   :  { %v11528_v61 = vadd.f32 %v3288_v24, %v3051_v10  ;;  %v3052_v30 = vadd.f32 %v2985_v27, %v11272_v38  ;;  %4831 = vmatprep.mubr.bf16.mxu1 %v13059_v48  ;;  %5137 = vmatprep.mubr.bf16.mxu0 %v13059_v48 }
 0x204   :  { %v2987_v0 = vpop.f32.mrf.mxu1  ;;  %v3294_v38 = vpop.f32.mrf.mxu0 }
 0x205   :  { %v11546_v57 = vadd.f32 %v3292_v15, %v3052_v30  ;;  %v3053_v62 = vadd.f32 %v2987_v0, %v11278_v37 }
 0x206   :  { %v2989_v5 = vpop.f32.mrf.mxu1  ;;  %v3296_v32 = vpop.f32.mrf.mxu0 }
 0x207   :  { %v11552_v55 = vadd.f32 %v3294_v38, %v3053_v62  ;;  %v3054_v44 = vadd.f32 %v2989_v5, %v11281_v3  ;;  %v8724_v3 = vld [vmem:[%s13006_s0 + $0xf0] sm:$0xff] }
 0x208   :  { %v2991_v58 = vpop.f32.mrf.mxu1  ;;  %v3298_v24 = vpop.f32.mrf.mxu0 }
 0x209   :  { %v11555_v10 = vadd.f32 %v3296_v32, %v3054_v44  ;;  %v3055_v27 = vadd.f32 %v2991_v58, %v11286_v18  ;;  %v11571_v18 = vld [vmem:[%s13006_s0 + $0x100] sm:$0xff] }
 0x20a   :  { %v2995_v15 = vpop.f32.mrf.mxu1  ;;  %v3302_v30 = vpop.f32.mrf.mxu0  ;;  %8751 = vmatmul.mubr.msk.bf16.gmra.mxu1 %vm151_vm0, %v4659_v31  ;;  %8791 = vmatmul.mubr.msk.bf16.gmra.mxu0 %vm151_vm0, %v4965_v60  ;;  %v4660_v31 = vpack.c.bf16 %v11571_v18, %v8724_v3  ;;  %v4966_v60 = vpack.c.bf16 %v11032_v35, %v13091_v63  ;;  %v11589_v35 = vld [vmem:[%s13006_s0 + $0x110] sm:$0xff] }
 0x20b   :  { %v11560_v37 = vadd.f32 %v3298_v24, %v3055_v27  ;;  %v3056_v40 = vadd.f32 %v2995_v15, %v11299_v49  ;;  %4841 = vmatprep.mubr.bf16.mxu1 %v13059_v48  ;;  %5147 = vmatprep.mubr.bf16.mxu0 %v13059_v48 }
 0x20c   :  { %v2997_v0 = vpop.f32.mrf.mxu1  ;;  %v3304_v38 = vpop.f32.mrf.mxu0 }
 0x20d   :  { %v11573_v62 = vadd.f32 %v3302_v30, %v3056_v40  ;;  %v3057_v5 = vadd.f32 %v2997_v0, %v11305_v13  ;;  %v11594_v13 = vld [vmem:[%s13006_s0 + $0x120] sm:$0xff] }
 0x20e   :  { %v2999_v49 = vpop.f32.mrf.mxu1  ;;  %v3306_v32 = vpop.f32.mrf.mxu0  ;;  %13092 = vst [vmem:[#allocation9_spill] sm:$0xff] %v11594_v13 }
 0x20f   :  { %v11579_v44 = vadd.f32 %v3304_v38, %v3057_v5  ;;  %v4661_v49 = vpack.c.bf16 %v11594_v13, %v11589_v35  ;;  %v13093_v32 = vld [vmem:[#allocation11_spill] sm:$0xff] }
 0x210   :  { %v3001_v58 = vpop.f32.mrf.mxu1  ;;  %v3308_v24 = vpop.f32.mrf.mxu0 }
 0x212   :  { %v3005_v27 = vpop.f32.mrf.mxu1  ;;  %v3312_v15 = vpop.f32.mrf.mxu0  ;;  %8752 = vmatmul.mubr.msk.bf16.gmra.mxu1 %vm151_vm0, %v4660_v31  ;;  %8792 = vmatmul.mubr.msk.bf16.gmra.mxu0 %vm151_vm0, %v4966_v60  ;;  %v4967_v31 = vpack.c.bf16 %v11069_v9, %v13093_v32 }
 0x213   :  { %v3060_v30 = vadd.f32 %v3005_v27, %v11322_v46  ;;  %4851 = vmatprep.mubr.bf16.mxu1 %v13059_v48  ;;  %5157 = vmatprep.mubr.bf16.mxu0 %v13059_v48 }
 0x214   :  { %v3007_v40 = vpop.f32.mrf.mxu1  ;;  %v3314_v3 = vpop.f32.mrf.mxu0 }
 0x215   :  { %v11596_v0 = vadd.f32 %v3312_v15, %v3060_v30  ;;  %v3061_v46 = vadd.f32 %v3007_v40, %v11329_v56 }
 0x216   :  { %v3009_v38 = vpop.f32.mrf.mxu1  ;;  %v3316_v5 = vpop.f32.mrf.mxu0 }
 0x217   :  { %v11603_v63 = vadd.f32 %v3314_v3, %v3061_v46  ;;  %v3062_v60 = vadd.f32 %v3009_v38, %v11332_v52  ;;  %v11619_v52 = vld [vmem:[%s13006_s0 + $0x130] sm:$0xff] }
 0x218   :  { %v3011_v58 = vpop.f32.mrf.mxu1  ;;  %v3318_v24 = vpop.f32.mrf.mxu0  ;;  %13094 = vst [vmem:[#allocation4_spill] sm:$0xff] %v11619_v52 }
 0x219   :  { %v11606_v27 = vadd.f32 %v3316_v5, %v3062_v60  ;;  %v3063_v15 = vadd.f32 %v3011_v58, %v11337_v34  ;;  %v11624_v34 = vld [vmem:[%s13006_s0 + $0x140] sm:$0xff] }
 0x21a   :  { %v3015_v30 = vpop.f32.mrf.mxu1  ;;  %v3322_v56 = vpop.f32.mrf.mxu0  ;;  %8753 = vmatmul.mubr.msk.bf16.gmra.mxu1 %vm151_vm0, %v4661_v49  ;;  %8793 = vmatmul.mubr.msk.bf16.gmra.mxu0 %vm151_vm0, %v4967_v31  ;;  %13095 = vst [vmem:[#allocation5_spill] sm:$0xff] %v11624_v34  ;;  %v4662_v32 = vpack.c.bf16 %v11624_v34, %v11619_v52  ;;  %v13096_v31 = vld [vmem:[#allocation12_spill] sm:$0xff] }
 0x21b   :  { %v11611_v40 = vadd.f32 %v3318_v24, %v3063_v15  ;;  %v3064_v9 = vadd.f32 %v3015_v30, %v11352_v26  ;;  %4861 = vmatprep.mubr.bf16.mxu1 %v13059_v48  ;;  %5167 = vmatprep.mubr.bf16.mxu0 %v13059_v48  ;;  %v4968_v60 = vpack.c.bf16 %v11101_v36, %v13096_v31 }
 0x21c   :  { %v3017_v3 = vpop.f32.mrf.mxu1  ;;  %v3324_v46 = vpop.f32.mrf.mxu0 }
 0x21d   :  { %v11626_v38 = vadd.f32 %v3322_v56, %v3064_v9  ;;  %v3065_v26 = vadd.f32 %v3017_v3, %v11359_v39 }
 0x21e   :  { %v3019_v5 = vpop.f32.mrf.mxu1  ;;  %v3326_v49 = vpop.f32.mrf.mxu0 }
 0x21f   :  { %v11633_v58 = vadd.f32 %v3324_v46, %v3065_v26  ;;  %v3066_v24 = vadd.f32 %v3019_v5, %v11362_v29  ;;  %v11649_v29 = vld [vmem:[%s13006_s0 + $0x150] sm:$0xff]  ;;  %v8771_v46 = vld [vmem:[%s13006_s0 + $0x161] sm:$0xff] }
 0x220   :  { %v3021_v15 = vpop.f32.mrf.mxu1  ;;  %v3328_v30 = vpop.f32.mrf.mxu0 }
 0x221   :  { %v11636_v13 = vadd.f32 %v3326_v49, %v3066_v24  ;;  %v3067_v56 = vadd.f32 %v3021_v15, %v11367_v21  ;;  %v11654_v21 = vld [vmem:[%s13006_s0 + $0x160] sm:$0xff]  ;;  %v4969_v24 = vpack.c.bf16 %v8771_v46, %v11106_v41 }
 0x222   :  { %v3025_v9 = vpop.f32.mrf.mxu1  ;;  %v3332_v39 = vpop.f32.mrf.mxu0  ;;  %8754 = vmatmul.mubr.msk.bf16.gmra.mxu1 %vm151_vm0, %v4662_v32  ;;  %8794 = vmatmul.mubr.msk.bf16.gmra.mxu0 %vm151_vm0, %v4968_v60  ;;  %13097 = vst [vmem:[#allocation10_spill] sm:$0xff] %v11654_v21  ;;  %v4663_v60 = vpack.c.bf16 %v11654_v21, %v11649_v29 }
 0x223   :  { %v11641_v3 = vadd.f32 %v3328_v30, %v3067_v56  ;;  %v3068_v36 = vadd.f32 %v3025_v9, %v11385_v11  ;;  %4871 = vmatprep.mubr.bf16.mxu1 %v13059_v48  ;;  %5177 = vmatprep.mubr.bf16.mxu0 %v13059_v48 }
 0x224   :  { %v3027_v26 = vpop.f32.mrf.mxu1  ;;  %v3334_v11 = vpop.f32.mrf.mxu0 }
 0x225   :  { %v11659_v5 = vadd.f32 %v3332_v39, %v3068_v36  ;;  %v3069_v49 = vadd.f32 %v3027_v26, %v11391_v8 }
 0x226   :  { %v3029_v32 = vpop.f32.mrf.mxu1  ;;  %v3336_v31 = vpop.f32.mrf.mxu0 }
 0x227   :  { %v11665_v15 = vadd.f32 %v3334_v11, %v3069_v49  ;;  %v3070_v30 = vadd.f32 %v3029_v32, %v11394_v6  ;;  %v8796_v6 = vld [vmem:[%s13006_s0 + $0x32] sm:$0xff] }
 0x228   :  { %v3031_v56 = vpop.f32.mrf.mxu1  ;;  %v3338_v9 = vpop.f32.mrf.mxu0 }
 0x229   :  { %v11668_v34 = vadd.f32 %v3336_v31, %v3070_v30  ;;  %v3071_v39 = vadd.f32 %v3031_v56, %v11399_v50  ;;  %v11684_v50 = vld [vmem:[%s13006_s0 + $0x42] sm:$0xff]  ;;  %v9362_v56 = vld [vmem:[%s13005_s1 + $0x4f0] ss:$8 sps:$4 sm:$0xff]  }
 0x22a   :  { %v3035_v36 = vpop.f32.mrf.mxu1  ;;  %v3342_v52 = vpop.f32.mrf.mxu0  ;;  %8755 = vmatmul.mubr.msk.bf16.gmra.mxu1 %vm151_vm0, %v4663_v60  ;;  %8795 = vmatmul.mubr.msk.bf16.gmra.mxu0 %vm151_vm0, %v4969_v24  ;;  %13098 = vst [vmem:[#allocation11_spill] sm:$0xff] %v11684_v50  ;;  %v5268_v31 = vpack.c.bf16 %v11684_v50, %v8796_v6  ;;  %v13099_v60 = vld [vmem:[#allocation13_spill] sm:$0xff] }
 0x22b   :  { %v11673_v8 = vadd.f32 %v3338_v9, %v3071_v39  ;;  %v3072_v41 = vadd.f32 %v3035_v36, %v11412_v22  ;;  %5413 = vmatprep.mubr.bf16.mxu1 %v13059_v48  ;;  %5719 = vmatprep.mubr.bf16.mxu0 %v13059_v48  ;;  %v5574_v24 = vpack.c.bf16 %v11163_v17, %v13099_v60  ;;  %v9373_v17 = vld [vmem:[%s13005_s1 + $0x524] ss:$8 sps:$4 sm:$0xff]   ;;  %v11711_v6 = vld [vmem:[%s13006_s0 + $0x52] sm:$0xff] }
 0x22c   :  { %v3037_v46 = vpop.f32.mrf.mxu1  ;;  %v3344_v26 = vpop.f32.mrf.mxu0  ;;  %v9379_v60 = vld [vmem:[%s13005_s1 + $0x514] ss:$8 sps:$4 sm:$0xff]  }
 0x22d   :  { %v11686_v11 = vadd.f32 %v3342_v52, %v3072_v41  ;;  %v3073_v49 = vadd.f32 %v3037_v46, %v11418_v59  ;;  %v9365_v52 = vld [vmem:[%s13005_s1 + $0x530] ss:$8 sps:$4 sm:$0xff]   ;;  %v9370_v59 = vld [vmem:[%s13005_s1 + $0x4e4] ss:$8 sps:$4 sm:$0xff]  }
 0x22e   :  { %v3039_v22 = vpop.f32.mrf.mxu1  ;;  %v3346_v32 = vpop.f32.mrf.mxu0 }
 0x22f   :  { %v11692_v30 = vadd.f32 %v3344_v26, %v3073_v49  ;;  %v11717_v26 = vld [vmem:[%s13006_s0 + $0x62] sm:$0xff] }
 0x230   :  { %v3041_v9 = vpop.f32.mrf.mxu1  ;;  %v3348_v39 = vpop.f32.mrf.mxu0  ;;  %v9368_v49 = vld [vmem:[%s13005_s1 + $0x4e0] ss:$8 sps:$4 sm:$0xff]  }
 0x231   :  { %v9371_v22 = vld [vmem:[%s13005_s1 + $0x520] ss:$8 sps:$4 sm:$0xff]   ;;  %v5269_v39 = vpack.c.bf16 %v11717_v26, %v11711_v6 }
 0x232   :  { %v3578_v36 = vpop.f32.mrf.mxu1  ;;  %v3884_v41 = vpop.f32.mrf.mxu0  ;;  %8828 = vmatmul.mubr.msk.bf16.vlgmr.msra.gmra.mxu1 %vm151_vm0, %v5268_v31  ;;  %8868 = vmatmul.mubr.msk.bf16.vlgmr.msra.gmra.mxu0 %vm151_vm0, %v5574_v24 }
 0x233   :  { %v3657_v46 = vadd.f32 %v3578_v36, %v11459_v51  ;;  %6002 = vmatpush1.bf16.msra.mxu1 %v9362_v56  ;;  %6309 = vmatpush1.bf16.msra.mxu0 %v9365_v52  ;;  %v9376_v51 = vld [vmem:[%s13005_s1 + $0x4d4] ss:$8 sps:$4 sm:$0xff]   ;;  %v5575_v36 = vpack.c.bf16 %v11220_v54, %v11169_v28  ;;  %v9382_v54 = vld [vmem:[%s13005_s1 + $0x4c4] ss:$8 sps:$4 sm:$0xff]  }
 0x234   :  { %v3580_v32 = vpop.f32.mrf.mxu1  ;;  %v3886_v31 = vpop.f32.mrf.mxu0  ;;  %5423 = vmatprep.mubr.bf16.mxu1 %v13059_v48  ;;  %5729 = vmatprep.mubr.bf16.mxu0 %v13059_v48 }
 0x235   :  { %v11733_v24 = vadd.f32 %v3884_v41, %v3657_v46  ;;  %v3658_v56 = vadd.f32 %v3580_v32, %v11466_v47  ;;  %6003 = vmatprep.subr.bf16.mxu1 %v9370_v59  ;;  %6310 = vmatprep.subr.bf16.mxu0 %v9373_v17  ;;  %v9374_v47 = vld [vmem:[%s13005_s1 + $0x4d0] ss:$8 sps:$4 sm:$0xff]  }
 0x236   :  { %v3582_v52 = vpop.f32.mrf.mxu1  ;;  %v3888_v9 = vpop.f32.mrf.mxu0  ;;  %v9377_v59 = vld [vmem:[%s13005_s1 + $0x510] ss:$8 sps:$4 sm:$0xff]  }
 0x237   :  { %v11740_v50 = vadd.f32 %v3886_v31, %v3658_v56  ;;  %v3659_v21 = vadd.f32 %v3582_v52, %v11475_v14  ;;  %6004 = vmatpush1.bf16.msra.mxu1 %v9368_v49  ;;  %6311 = vmatpush1.bf16.msra.mxu0 %v9371_v22  ;;  %v9385_v14 = vld [vmem:[%s13005_s1 + $0x504] ss:$8 sps:$4 sm:$0xff]   ;;  %v9383_v56 = vld [vmem:[%s13005_s1 + $0x500] ss:$8 sps:$4 sm:$0xff]  }
 0x238   :  { %v3584_v41 = vpop.f32.mrf.mxu1  ;;  %v3890_v46 = vpop.f32.mrf.mxu0  ;;  %6005 = vmatprep.subr.bf16.mxu1 %v9376_v51  ;;  %6312 = vmatprep.subr.bf16.mxu0 %v9379_v60  ;;  %v11773_v31 = vld [vmem:[%s13006_s0 + $0x82] sm:$0xff] }
 0x239   :  { %v11749_v17 = vadd.f32 %v3888_v9, %v3659_v21  ;;  %v3660_v28 = vadd.f32 %v3584_v41, %v11486_v20  ;;  %v11768_v20 = vld [vmem:[%s13006_s0 + $0x72] sm:$0xff] }
 0x23a   :  { %v3588_v49 = vpop.f32.mrf.mxu1  ;;  %v3894_v22 = vpop.f32.mrf.mxu0  ;;  %8829 = vmatmul.mubr.msk.bf16.gmra.mxu1 %vm151_vm0, %v5269_v39  ;;  %8869 = vmatmul.mubr.msk.bf16.gmra.mxu0 %vm151_vm0, %v5575_v36  ;;  %v9388_v39 = vld [vmem:[%s13005_s1 + $0x574] ss:$8 sps:$4 sm:$0xff]  }
 0x23b   :  { %v11760_v32 = vadd.f32 %v3890_v46, %v3660_v28  ;;  %v3661_v21 = vadd.f32 %v3588_v49, %v11507_v45  ;;  %5433 = vmatprep.mubr.bf16.mxu1 %v13059_v48  ;;  %5739 = vmatprep.mubr.bf16.mxu0 %v13059_v48  ;;  %v9380_v45 = vld [vmem:[%s13005_s1 + $0x4c0] ss:$8 sps:$4 sm:$0xff]   ;;  %v9391_v36 = vld [vmem:[%s13005_s1 + $0x5b4] ss:$8 sps:$4 sm:$0xff]  }
 0x23c   :  { %v3590_v51 = vpop.f32.mrf.mxu1  ;;  %v3896_v60 = vpop.f32.mrf.mxu0  ;;  %6006 = vmatpush1.bf16.msra.mxu1 %v9374_v47  ;;  %6313 = vmatpush1.bf16.msra.mxu0 %v9377_v59  ;;  %v5270_v47 = vpack.c.bf16 %v11773_v31, %v11768_v20  ;;  %v5576_v59 = vpack.c.bf16 %v11262_v33, %v11225_v25 }
 0x23d   :  { %v11781_v52 = vadd.f32 %v3894_v22, %v3661_v21  ;;  %v3662_v9 = vadd.f32 %v3590_v51, %v11520_v53  ;;  %6007 = vmatprep.subr.bf16.mxu1 %v9382_v54  ;;  %6314 = vmatprep.subr.bf16.mxu0 %v9385_v14 }
 0x23e   :  { %v3592_v41 = vpop.f32.mrf.mxu1  ;;  %v3898_v46 = vpop.f32.mrf.mxu0 }
 0x23f   :  { %v11794_v28 = vadd.f32 %v3896_v60, %v3662_v9  ;;  %v3663_v53 = vadd.f32 %v3592_v41, %v11523_v19  ;;  %v11810_v19 = vld [vmem:[%s13006_s0 + $0x92] sm:$0xff]  ;;  %v8843_v60 = vld [vmem:[%s13006_s0 + $0xa3] sm:$0xff] }
 0x240   :  { %v3594_v54 = vpop.f32.mrf.mxu1  ;;  %v3900_v14 = vpop.f32.mrf.mxu0  ;;  %6008 = vmatpush1.bf16.msra.mxu1 %v9380_v45  ;;  %6315 = vmatpush1.bf16.msra.mxu0 %v9383_v56 }
 0x241   :  { %v11797_v49 = vadd.f32 %v3898_v46, %v3663_v53  ;;  %v3664_v22 = vadd.f32 %v3594_v54, %v11528_v61  ;;  %6614 = vmatprep.subr.bf16.mxu1 %v9388_v39  ;;  %6920 = vmatprep.subr.bf16.mxu0 %v9391_v36  ;;  %v11815_v61 = vld [vmem:[%s13006_s0 + $0xa2] sm:$0xff]  ;;  %v5577_v46 = vpack.c.bf16 %v8843_v60, %v11267_v7 }
 0x242   :  { %v3598_v21 = vpop.f32.mrf.mxu1  ;;  %v3904_v51 = vpop.f32.mrf.mxu0  ;;  %8830 = vmatmul.mubr.msk.bf16.gmra.mxu1 %vm151_vm0, %v5270_v47  ;;  %8870 = vmatmul.mubr.msk.bf16.gmra.mxu0 %vm151_vm0, %v5576_v59  ;;  %v5271_v41 = vpack.c.bf16 %v11815_v61, %v11810_v19 }
 0x243   :  { %v11802_v25 = vadd.f32 %v3900_v14, %v3664_v22  ;;  %v3665_v33 = vadd.f32 %v3598_v21, %v11546_v57  ;;  %5443 = vmatprep.mubr.bf16.mxu1 %v13059_v48  ;;  %5749 = vmatprep.mubr.bf16.mxu0 %v13059_v48 }
 0x244   :  { %v3600_v45 = vpop.f32.mrf.mxu1  ;;  %v3906_v57 = vpop.f32.mrf.mxu0 }
 0x245   :  { %v11820_v56 = vadd.f32 %v3904_v51, %v3665_v33  ;;  %v3666_v9 = vadd.f32 %v3600_v45, %v11552_v55 }
 0x246   :  { %v3602_v39 = vpop.f32.mrf.mxu1  ;;  %v3908_v36 = vpop.f32.mrf.mxu0 }
 0x247   :  { %v11826_v47 = vadd.f32 %v3906_v57, %v3666_v9  ;;  %v3667_v59 = vadd.f32 %v3602_v39, %v11555_v10  ;;  %v8804_v10 = vld [vmem:[%s13006_s0 + $0xf2] sm:$0xff] }
 0x248   :  { %v3604_v53 = vpop.f32.mrf.mxu1  ;;  %v3910_v54 = vpop.f32.mrf.mxu0 }
 0x249   :  { %v11829_v14 = vadd.f32 %v3908_v36, %v3667_v59  ;;  %v3668_v22 = vadd.f32 %v3604_v53, %v11560_v37  ;;  %v11845_v37 = vld [vmem:[%s13006_s0 + $0x102] sm:$0xff]  ;;  %v13100_v36 = vld [vmem:[#allocation14_spill] sm:$0xff] }
 0x24a   :  { %v3608_v21 = vpop.f32.mrf.mxu1  ;;  %v3914_v51 = vpop.f32.mrf.mxu0  ;;  %8831 = vmatmul.mubr.msk.bf16.gmra.mxu1 %vm151_vm0, %v5271_v41  ;;  %8871 = vmatmul.mubr.msk.bf16.gmra.mxu0 %vm151_vm0, %v5577_v46  ;;  %v5272_v39 = vpack.c.bf16 %v11845_v37, %v8804_v10  ;;  %v5578_v41 = vpack.c.bf16 %v13100_v36, %v11297_v42  ;;  %v11863_v42 = vld [vmem:[%s13006_s0 + $0x112] sm:$0xff] }
 0x24b   :  { %v11834_v55 = vadd.f32 %v3910_v54, %v3668_v22  ;;  %v3669_v7 = vadd.f32 %v3608_v21, %v11573_v62  ;;  %5453 = vmatprep.mubr.bf16.mxu1 %v13059_v48  ;;  %5759 = vmatprep.mubr.bf16.mxu0 %v13059_v48  ;;  %13101 = vst [vmem:[#allocation12_spill] sm:$0xff] %v11863_v42 }
 0x24c   :  { %v3610_v33 = vpop.f32.mrf.mxu1  ;;  %v3916_v60 = vpop.f32.mrf.mxu0 }
 0x24d   :  { %v11847_v45 = vadd.f32 %v3914_v51, %v3669_v7  ;;  %v3670_v57 = vadd.f32 %v3610_v33, %v11579_v44  ;;  %v11868_v44 = vld [vmem:[%s13006_s0 + $0x122] sm:$0xff] }
 0x24e   :  { %v3612_v62 = vpop.f32.mrf.mxu1  ;;  %v3918_v9 = vpop.f32.mrf.mxu0  ;;  %13102 = vst [vmem:[#allocation13_spill] sm:$0xff] %v11868_v44 }
 0x24f   :  { %v11853_v46 = vadd.f32 %v3916_v60, %v3670_v57  ;;  %v5273_v57 = vpack.c.bf16 %v11868_v44, %v11863_v42  ;;  %v13103_v62 = vld [vmem:[#allocation15_spill] sm:$0xff] }
 0x250   :  { %v3614_v59 = vpop.f32.mrf.mxu1  ;;  %v3920_v53 = vpop.f32.mrf.mxu0  ;;  %v13104_v9 = vld [vmem:[#allocation3_spill] sm:$0xff] }
 0x252   :  { %v3618_v54 = vpop.f32.mrf.mxu1  ;;  %v3924_v22 = vpop.f32.mrf.mxu0  ;;  %8832 = vmatmul.mubr.msk.bf16.gmra.mxu1 %vm151_vm0, %v5272_v39  ;;  %8872 = vmatmul.mubr.msk.bf16.gmra.mxu0 %vm151_vm0, %v5578_v41  ;;  %v5579_v39 = vpack.c.bf16 %v13104_v9, %v13103_v62 }
 0x253   :  { %v3673_v21 = vadd.f32 %v3618_v54, %v11596_v0  ;;  %5463 = vmatprep.mubr.bf16.mxu1 %v13059_v48  ;;  %5769 = vmatprep.mubr.bf16.mxu0 %v13059_v48 }
 0x254   :  { %v3620_v51 = vpop.f32.mrf.mxu1  ;;  %v3926_v7 = vpop.f32.mrf.mxu0 }
 0x255   :  { %v11870_v10 = vadd.f32 %v3924_v22, %v3673_v21  ;;  %v3674_v0 = vadd.f32 %v3620_v51, %v11603_v63 }
 0x256   :  { %v3622_v33 = vpop.f32.mrf.mxu1  ;;  %v3928_v60 = vpop.f32.mrf.mxu0 }
 0x257   :  { %v11877_v36 = vadd.f32 %v3926_v7, %v3674_v0  ;;  %v3675_v41 = vadd.f32 %v3622_v33, %v11606_v27  ;;  %v11893_v27 = vld [vmem:[%s13006_s0 + $0x132] sm:$0xff] }
 0x258   :  { %v3624_v59 = vpop.f32.mrf.mxu1  ;;  %v3930_v53 = vpop.f32.mrf.mxu0  ;;  %13105 = vst [vmem:[#allocation14_spill] sm:$0xff] %v11893_v27 }
 0x259   :  { %v11880_v54 = vadd.f32 %v3928_v60, %v3675_v41  ;;  %v3676_v22 = vadd.f32 %v3624_v59, %v11611_v40  ;;  %v11898_v40 = vld [vmem:[%s13006_s0 + $0x142] sm:$0xff] }
 0x25a   :  { %v3628_v21 = vpop.f32.mrf.mxu1  ;;  %v3934_v63 = vpop.f32.mrf.mxu0  ;;  %8833 = vmatmul.mubr.msk.bf16.gmra.mxu1 %vm151_vm0, %v5273_v57  ;;  %8873 = vmatmul.mubr.msk.bf16.gmra.mxu0 %vm151_vm0, %v5579_v39  ;;  %13106 = vst [vmem:[#allocation15_spill] sm:$0xff] %v11898_v40  ;;  %v5274_v9 = vpack.c.bf16 %v11898_v40, %v11893_v27  ;;  %v13107_v39 = vld [vmem:[#allocation6_spill] sm:$0xff] }
 0x25b   :  { %v11885_v51 = vadd.f32 %v3930_v53, %v3676_v22  ;;  %v3677_v62 = vadd.f32 %v3628_v21, %v11626_v38  ;;  %5473 = vmatprep.mubr.bf16.mxu1 %v13059_v48  ;;  %5779 = vmatprep.mubr.bf16.mxu0 %v13059_v48  ;;  %v5580_v41 = vpack.c.bf16 %v11375_v4, %v13107_v39 }
 0x25c   :  { %v3630_v7 = vpop.f32.mrf.mxu1  ;;  %v3936_v0 = vpop.f32.mrf.mxu0 }
 0x25d   :  { %v11900_v33 = vadd.f32 %v3934_v63, %v3677_v62  ;;  %v3678_v38 = vadd.f32 %v3630_v7, %v11633_v58 }
 0x25e   :  { %v3632_v60 = vpop.f32.mrf.mxu1  ;;  %v3938_v57 = vpop.f32.mrf.mxu0 }
 0x25f   :  { %v11907_v59 = vadd.f32 %v3936_v0, %v3678_v38  ;;  %v3679_v53 = vadd.f32 %v3632_v60, %v11636_v13  ;;  %v11923_v13 = vld [vmem:[%s13006_s0 + $0x152] sm:$0xff]  ;;  %v8851_v0 = vld [vmem:[%s13006_s0 + $0x163] sm:$0xff] }
 0x260   :  { %v3634_v22 = vpop.f32.mrf.mxu1  ;;  %v3940_v21 = vpop.f32.mrf.mxu0 }
 0x261   :  { %v11910_v44 = vadd.f32 %v3938_v57, %v3679_v53  ;;  %v3680_v63 = vadd.f32 %v3634_v22, %v11641_v3  ;;  %v11928_v3 = vld [vmem:[%s13006_s0 + $0x162] sm:$0xff] }
 0x262   :  { %v3638_v62 = vpop.f32.mrf.mxu1  ;;  %v3944_v58 = vpop.f32.mrf.mxu0  ;;  %8834 = vmatmul.mubr.msk.bf16.gmra.mxu1 %vm151_vm0, %v5274_v9  ;;  %8874 = vmatmul.mubr.msk.bf16.gmra.mxu0 %vm151_vm0, %v5580_v41  ;;  %13108 = vst [vmem:[#allocation3_spill] sm:$0xff] %v11928_v3  ;;  %v5275_v41 = vpack.c.bf16 %v11928_v3, %v11923_v13  ;;  %v13109_v53 = vld [vmem:[#allocation7_spill] sm:$0xff] }
 0x263   :  { %v11915_v7 = vadd.f32 %v3940_v21, %v3680_v63  ;;  %v3681_v4 = vadd.f32 %v3638_v62, %v11659_v5  ;;  %5483 = vmatprep.mubr.bf16.mxu1 %v13059_v48  ;;  %5789 = vmatprep.mubr.bf16.mxu0 %v13059_v48  ;;  %v5581_v22 = vpack.c.bf16 %v8851_v0, %v13109_v53 }
 0x264   :  { %v3640_v38 = vpop.f32.mrf.mxu1  ;;  %v3946_v5 = vpop.f32.mrf.mxu0 }
 0x265   :  { %v11933_v60 = vadd.f32 %v3944_v58, %v3681_v4  ;;  %v3682_v57 = vadd.f32 %v3640_v38, %v11665_v15 }
 0x266   :  { %v3642_v9 = vpop.f32.mrf.mxu1  ;;  %v3948_v39 = vpop.f32.mrf.mxu0 }
 0x267   :  { %v11939_v21 = vadd.f32 %v3946_v5, %v3682_v57  ;;  %v3683_v63 = vadd.f32 %v3642_v9, %v11668_v34  ;;  %v8876_v34 = vld [vmem:[%s13006_s0 + $0x34] sm:$0xff] }
 0x268   :  { %v3644_v62 = vpop.f32.mrf.mxu1  ;;  %v3950_v40 = vpop.f32.mrf.mxu0 }
 0x269   :  { %v11942_v27 = vadd.f32 %v3948_v39, %v3683_v63  ;;  %v3684_v58 = vadd.f32 %v3644_v62, %v11673_v8  ;;  %v11958_v8 = vld [vmem:[%s13006_s0 + $0x44] sm:$0xff]  ;;  %v9386_v63 = vld [vmem:[%s13005_s1 + $0x570] ss:$8 sps:$4 sm:$0xff]  }
 0x26a   :  { %v3648_v4 = vpop.f32.mrf.mxu1  ;;  %v3954_v42 = vpop.f32.mrf.mxu0  ;;  %8835 = vmatmul.mubr.msk.bf16.gmra.mxu1 %vm151_vm0, %v5275_v41  ;;  %8875 = vmatmul.mubr.msk.bf16.gmra.mxu0 %vm151_vm0, %v5581_v22  ;;  %13110 = vst [vmem:[#allocation6_spill] sm:$0xff] %v11958_v8  ;;  %v5880_v39 = vpack.c.bf16 %v11958_v8, %v8876_v34  ;;  %v13111_v41 = vld [vmem:[#allocation8_spill] sm:$0xff]  ;;  %v11985_v34 = vld [vmem:[%s13006_s0 + $0x54] sm:$0xff] }
 0x26b   :  { %v11947_v15 = vadd.f32 %v3950_v40, %v3684_v58  ;;  %v3685_v0 = vadd.f32 %v3648_v4, %v11686_v11  ;;  %6025 = vmatprep.mubr.bf16.mxu1 %v13059_v48  ;;  %6332 = vmatprep.mubr.bf16.mxu0 %v13059_v48  ;;  %v6187_v53 = vpack.c.bf16 %v11437_v1, %v13111_v41  ;;  %v9397_v1 = vld [vmem:[%s13005_s1 + $0x5a4] ss:$8 sps:$4 sm:$0xff]   ;;  %v9403_v41 = vld [vmem:[%s13005_s1 + $0x594] ss:$8 sps:$4 sm:$0xff]  }
 0x26c   :  { %v3650_v38 = vpop.f32.mrf.mxu1  ;;  %v3956_v5 = vpop.f32.mrf.mxu0 }
 0x26d   :  { %v11960_v57 = vadd.f32 %v3954_v42, %v3685_v0  ;;  %v3686_v40 = vadd.f32 %v3650_v38, %v11692_v30  ;;  %v9389_v42 = vld [vmem:[%s13005_s1 + $0x5b0] ss:$8 sps:$4 sm:$0xff]   ;;  %v9394_v30 = vld [vmem:[%s13005_s1 + $0x564] ss:$8 sps:$4 sm:$0xff]  }
 0x26e   :  { %v3652_v11 = vpop.f32.mrf.mxu1  ;;  %v3958_v9 = vpop.f32.mrf.mxu0 }
 0x26f   :  { %v11966_v22 = vadd.f32 %v3956_v5, %v3686_v40  ;;  %v11991_v5 = vld [vmem:[%s13006_s0 + $0x64] sm:$0xff] }
 0x270   :  { %v3654_v62 = vpop.f32.mrf.mxu1  ;;  %v3960_v58 = vpop.f32.mrf.mxu0  ;;  %v9392_v40 = vld [vmem:[%s13005_s1 + $0x560] ss:$8 sps:$4 sm:$0xff]  }
 0x271   :  { %v9395_v11 = vld [vmem:[%s13005_s1 + $0x5a0] ss:$8 sps:$4 sm:$0xff]   ;;  %v5881_v58 = vpack.c.bf16 %v11991_v5, %v11985_v34 }
 0x272   :  { %v4190_v4 = vpop.f32.mrf.mxu1  ;;  %v4496_v0 = vpop.f32.mrf.mxu0  ;;  %8908 = vmatmul.mubr.msk.bf16.vlgmr.msra.gmra.mxu1 %vm151_vm0, %v5880_v39  ;;  %8948 = vmatmul.mubr.msk.bf16.vlgmr.msra.gmra.mxu0 %vm151_vm0, %v6187_v53 }
 0x273   :  { %v4269_v38 = vadd.f32 %v4190_v4, %v11733_v24  ;;  %6615 = vmatpush1.bf16.msra.mxu1 %v9386_v63  ;;  %6921 = vmatpush1.bf16.msra.mxu0 %v9389_v42  ;;  %v9400_v24 = vld [vmem:[%s13005_s1 + $0x554] ss:$8 sps:$4 sm:$0xff]   ;;  %v6188_v4 = vpack.c.bf16 %v11494_v16, %v11443_v43  ;;  %v9406_v16 = vld [vmem:[%s13005_s1 + $0x544] ss:$8 sps:$4 sm:$0xff]  }
 0x274   :  { %v4192_v9 = vpop.f32.mrf.mxu1  ;;  %v4498_v39 = vpop.f32.mrf.mxu0  ;;  %6035 = vmatprep.mubr.bf16.mxu1 %v13059_v48  ;;  %6342 = vmatprep.mubr.bf16.mxu0 %v13059_v48 }
 0x275   :  { %v12007_v53 = vadd.f32 %v4496_v0, %v4269_v38  ;;  %v4270_v63 = vadd.f32 %v4192_v9, %v11740_v50  ;;  %6616 = vmatprep.subr.bf16.mxu1 %v9394_v30  ;;  %6922 = vmatprep.subr.bf16.mxu0 %v9397_v1  ;;  %v9398_v50 = vld [vmem:[%s13005_s1 + $0x550] ss:$8 sps:$4 sm:$0xff]  }
 0x276   :  { %v4194_v42 = vpop.f32.mrf.mxu1  ;;  %v4500_v62 = vpop.f32.mrf.mxu0  ;;  %v9401_v30 = vld [vmem:[%s13005_s1 + $0x590] ss:$8 sps:$4 sm:$0xff]  }
 0x277   :  { %v12014_v8 = vadd.f32 %v4498_v39, %v4270_v63  ;;  %v4271_v3 = vadd.f32 %v4194_v42, %v11749_v17  ;;  %6617 = vmatpush1.bf16.msra.mxu1 %v9392_v40  ;;  %6923 = vmatpush1.bf16.msra.mxu0 %v9395_v11  ;;  %v9409_v17 = vld [vmem:[%s13005_s1 + $0x584] ss:$8 sps:$4 sm:$0xff]   ;;  %v9407_v63 = vld [vmem:[%s13005_s1 + $0x580] ss:$8 sps:$4 sm:$0xff]  }
 0x278   :  { %v4196_v0 = vpop.f32.mrf.mxu1  ;;  %v4502_v38 = vpop.f32.mrf.mxu0  ;;  %6618 = vmatprep.subr.bf16.mxu1 %v9400_v24  ;;  %6924 = vmatprep.subr.bf16.mxu0 %v9403_v41  ;;  %v12047_v39 = vld [vmem:[%s13006_s0 + $0x84] sm:$0xff] }
 0x279   :  { %v12023_v1 = vadd.f32 %v4500_v62, %v4271_v3  ;;  %v4272_v43 = vadd.f32 %v4196_v0, %v11760_v32  ;;  %v12042_v32 = vld [vmem:[%s13006_s0 + $0x74] sm:$0xff] }
 0x27a   :  { %v4200_v40 = vpop.f32.mrf.mxu1  ;;  %v4506_v11 = vpop.f32.mrf.mxu0  ;;  %8909 = vmatmul.mubr.msk.bf16.gmra.mxu1 %vm151_vm0, %v5881_v58  ;;  %8949 = vmatmul.mubr.msk.bf16.gmra.mxu0 %vm151_vm0, %v6188_v4  ;;  %v9412_v58 = vld [vmem:[%s13005_s1 + $0x5f4] ss:$8 sps:$4 sm:$0xff]  }
 0x27b   :  { %v12034_v9 = vadd.f32 %v4502_v38, %v4272_v43  ;;  %v4273_v3 = vadd.f32 %v4200_v40, %v11781_v52  ;;  %6045 = vmatprep.mubr.bf16.mxu1 %v13059_v48  ;;  %6352 = vmatprep.mubr.bf16.mxu0 %v13059_v48  ;;  %v9404_v52 = vld [vmem:[%s13005_s1 + $0x540] ss:$8 sps:$4 sm:$0xff]   ;;  %v9415_v4 = vld [vmem:[%s13005_s1 + $0x634] ss:$8 sps:$4 sm:$0xff]  }
 0x27c   :  { %v4202_v24 = vpop.f32.mrf.mxu1  ;;  %v4508_v41 = vpop.f32.mrf.mxu0  ;;  %6619 = vmatpush1.bf16.msra.mxu1 %v9398_v50  ;;  %6925 = vmatpush1.bf16.msra.mxu0 %v9401_v30  ;;  %v5882_v50 = vpack.c.bf16 %v12047_v39, %v12042_v32  ;;  %v6189_v30 = vpack.c.bf16 %v11536_v23, %v11499_v2 }
 0x27d   :  { %v12055_v42 = vadd.f32 %v4506_v11, %v4273_v3  ;;  %v4274_v62 = vadd.f32 %v4202_v24, %v11794_v28  ;;  %6620 = vmatprep.subr.bf16.mxu1 %v9406_v16  ;;  %6926 = vmatprep.subr.bf16.mxu0 %v9409_v17 }
 0x27e   :  { %v4204_v0 = vpop.f32.mrf.mxu1  ;;  %v4510_v38 = vpop.f32.mrf.mxu0 }
 0x27f   :  { %v12068_v43 = vadd.f32 %v4508_v41, %v4274_v62  ;;  %v4275_v28 = vadd.f32 %v4204_v0, %v11797_v49  ;;  %v12084_v49 = vld [vmem:[%s13006_s0 + $0x94] sm:$0xff] }
 0x280   :  { %v4206_v16 = vpop.f32.mrf.mxu1  ;;  %v4512_v17 = vpop.f32.mrf.mxu0  ;;  %6621 = vmatpush1.bf16.msra.mxu1 %v9404_v52  ;;  %6927 = vmatpush1.bf16.msra.mxu0 %v9407_v63  ;;  %v8923_v41 = vld [vmem:[%s13006_s0 + $0xb0] sm:$0xff] }
 0x281   :  { %v12071_v40 = vadd.f32 %v4510_v38, %v4275_v28  ;;  %v4276_v11 = vadd.f32 %v4206_v16, %v11802_v25  ;;  %7226 = vmatprep.subr.bf16.mxu1 %v9412_v58  ;;  %7532 = vmatprep.subr.bf16.mxu0 %v9415_v4  ;;  %v12089_v25 = vld [vmem:[%s13006_s0 + $0xa4] sm:$0xff]  ;;  %v6190_v38 = vpack.c.bf16 %v8923_v41, %v11541_v12 }
 0x282   :  { %v4210_v3 = vpop.f32.mrf.mxu1  ;;  %v4516_v24 = vpop.f32.mrf.mxu0  ;;  %8910 = vmatmul.mubr.msk.bf16.gmra.mxu1 %vm151_vm0, %v5882_v50  ;;  %8950 = vmatmul.mubr.msk.bf16.gmra.mxu0 %vm151_vm0, %v6189_v30  ;;  %v5883_v0 = vpack.c.bf16 %v12089_v25, %v12084_v49 }
 0x283   :  { %v12076_v2 = vadd.f32 %v4512_v17, %v4276_v11  ;;  %v4277_v23 = vadd.f32 %v4210_v3, %v11820_v56  ;;  %6055 = vmatprep.mubr.bf16.mxu1 %v13059_v48  ;;  %6362 = vmatprep.mubr.bf16.mxu0 %v13059_v48 }
 0x284   :  { %v4212_v52 = vpop.f32.mrf.mxu1  ;;  %v4518_v56 = vpop.f32.mrf.mxu0 }
 0x285   :  { %v12094_v63 = vadd.f32 %v4516_v24, %v4277_v23  ;;  %v4278_v62 = vadd.f32 %v4212_v52, %v11826_v47 }
 0x286   :  { %v4214_v58 = vpop.f32.mrf.mxu1  ;;  %v4520_v4 = vpop.f32.mrf.mxu0 }
 0x287   :  { %v12100_v50 = vadd.f32 %v4518_v56, %v4278_v62  ;;  %v4279_v30 = vadd.f32 %v4214_v58, %v11829_v14  ;;  %v8884_v14 = vld [vmem:[%s13006_s0 + $0xf4] sm:$0xff] }
 0x288   :  { %v4216_v28 = vpop.f32.mrf.mxu1  ;;  %v4522_v16 = vpop.f32.mrf.mxu0 }
 0x289   :  { %v12103_v17 = vadd.f32 %v4520_v4, %v4279_v30  ;;  %v4280_v11 = vadd.f32 %v4216_v28, %v11834_v55  ;;  %v12119_v55 = vld [vmem:[%s13006_s0 + $0x104] sm:$0xff]  ;;  %v6191_v4 = vpack.c.bf16 %v11589_v35, %v11571_v18  ;;  %v12137_v18 = vld [vmem:[%s13006_s0 + $0x114] sm:$0xff] }
 0x28a   :  { %v4220_v3 = vpop.f32.mrf.mxu1  ;;  %v4526_v24 = vpop.f32.mrf.mxu0  ;;  %8911 = vmatmul.mubr.msk.bf16.gmra.mxu1 %vm151_vm0, %v5883_v0  ;;  %8951 = vmatmul.mubr.msk.bf16.gmra.mxu0 %vm151_vm0, %v6190_v38  ;;  %v5884_v58 = vpack.c.bf16 %v12119_v55, %v8884_v14  ;;  %13112 = vst [vmem:[#allocation7_spill] sm:$0xff] %v12137_v18  ;;  %v12142_v35 = vld [vmem:[%s13006_s0 + $0x124] sm:$0xff] }
 0x28b   :  { %v12108_v47 = vadd.f32 %v4522_v16, %v4280_v11  ;;  %v4281_v12 = vadd.f32 %v4220_v3, %v11847_v45  ;;  %6065 = vmatprep.mubr.bf16.mxu1 %v13059_v48  ;;  %6372 = vmatprep.mubr.bf16.mxu0 %v13059_v48  ;;  %13113 = vst [vmem:[#allocation8_spill] sm:$0xff] %v12142_v35 }
 0x28c   :  { %v4222_v23 = vpop.f32.mrf.mxu1  ;;  %v4528_v41 = vpop.f32.mrf.mxu0 }
 0x28d   :  { %v12121_v52 = vadd.f32 %v4526_v24, %v4281_v12  ;;  %v4282_v56 = vadd.f32 %v4222_v23, %v11853_v46  ;;  %v5885_v23 = vpack.c.bf16 %v12142_v35, %v12137_v18 }
 0x28e   :  { %v4224_v45 = vpop.f32.mrf.mxu1  ;;  %v4530_v62 = vpop.f32.mrf.mxu0 }
 0x28f   :  { %v12127_v0 = vadd.f32 %v4528_v41, %v4282_v56  ;;  %v13114_v41 = vld [vmem:[#allocation9_spill] sm:$0xff]  ;;  %v13115_v56 = vld [vmem:[#allocation4_spill] sm:$0xff] }
 0x290   :  { %v4226_v38 = vpop.f32.mrf.mxu1  ;;  %v4532_v30 = vpop.f32.mrf.mxu0  ;;  %v6192_v45 = vpack.c.bf16 %v13115_v56, %v13114_v41  ;;  %v13118_v56 = vld [vmem:[#allocation5_spill] sm:$0xff] }
 0x292   :  { %v4230_v28 = vpop.f32.mrf.mxu1  ;;  %v4536_v16 = vpop.f32.mrf.mxu0  ;;  %8912 = vmatmul.mubr.msk.bf16.gmra.mxu1 %vm151_vm0, %v5884_v58  ;;  %8952 = vmatmul.mubr.msk.bf16.gmra.mxu0 %vm151_vm0, %v6191_v4 }
 0x293   :  { %v4285_v11 = vadd.f32 %v4230_v28, %v11870_v10  ;;  %6075 = vmatprep.mubr.bf16.mxu1 %v13059_v48  ;;  %6382 = vmatprep.mubr.bf16.mxu0 %v13059_v48 }
 0x294   :  { %v4232_v46 = vpop.f32.mrf.mxu1  ;;  %v4538_v3 = vpop.f32.mrf.mxu0 }
 0x295   :  { %v12144_v24 = vadd.f32 %v4536_v16, %v4285_v11  ;;  %v4286_v10 = vadd.f32 %v4232_v46, %v11877_v36 }
 0x296   :  { %v4234_v12 = vpop.f32.mrf.mxu1  ;;  %v4540_v14 = vpop.f32.mrf.mxu0 }
 0x297   :  { %v12151_v62 = vadd.f32 %v4538_v3, %v4286_v10  ;;  %v4287_v58 = vadd.f32 %v4234_v12, %v11880_v54  ;;  %v12167_v54 = vld [vmem:[%s13006_s0 + $0x134] sm:$0xff] }
 0x298   :  { %v4236_v4 = vpop.f32.mrf.mxu1  ;;  %v4542_v38 = vpop.f32.mrf.mxu0  ;;  %13116 = vst [vmem:[#allocation9_spill] sm:$0xff] %v12167_v54 }
 0x299   :  { %v12154_v30 = vadd.f32 %v4540_v14, %v4287_v58  ;;  %v4288_v28 = vadd.f32 %v4236_v4, %v11885_v51  ;;  %v12172_v51 = vld [vmem:[%s13006_s0 + $0x144] sm:$0xff] }
 0x29a   :  { %v4240_v16 = vpop.f32.mrf.mxu1  ;;  %v4546_v36 = vpop.f32.mrf.mxu0  ;;  %8913 = vmatmul.mubr.msk.bf16.gmra.mxu1 %vm151_vm0, %v5885_v23  ;;  %8953 = vmatmul.mubr.msk.bf16.gmra.mxu0 %vm151_vm0, %v6192_v45  ;;  %13117 = vst [vmem:[#allocation4_spill] sm:$0xff] %v12172_v51  ;;  %v5886_v41 = vpack.c.bf16 %v12172_v51, %v12167_v54  ;;  %v6193_v45 = vpack.c.bf16 %v11649_v29, %v13118_v56 }
 0x29b   :  { %v12159_v11 = vadd.f32 %v4542_v38, %v4288_v28  ;;  %v4289_v46 = vadd.f32 %v4240_v16, %v11900_v33  ;;  %6085 = vmatprep.mubr.bf16.mxu1 %v13059_v48  ;;  %6392 = vmatprep.mubr.bf16.mxu0 %v13059_v48 }
 0x29c   :  { %v4242_v3 = vpop.f32.mrf.mxu1  ;;  %v4548_v10 = vpop.f32.mrf.mxu0 }
 0x29d   :  { %v12174_v12 = vadd.f32 %v4546_v36, %v4289_v46  ;;  %v4290_v33 = vadd.f32 %v4242_v3, %v11907_v59 }
 0x29e   :  { %v4244_v14 = vpop.f32.mrf.mxu1  ;;  %v4550_v23 = vpop.f32.mrf.mxu0 }
 0x29f   :  { %v12181_v58 = vadd.f32 %v4548_v10, %v4290_v33  ;;  %v4291_v4 = vadd.f32 %v4244_v14, %v11910_v44  ;;  %v12197_v44 = vld [vmem:[%s13006_s0 + $0x154] sm:$0xff] }
 0x2a0   :  { %v4246_v38 = vpop.f32.mrf.mxu1  ;;  %v4552_v28 = vpop.f32.mrf.mxu0  ;;  %13119 = vst [vmem:[#allocation5_spill] sm:$0xff] %v12197_v44  ;;  %v8931_v10 = vld [vmem:[%s13006_s0 + $0x170] sm:$0xff] }
 0x2a1   :  { %v12184_v16 = vadd.f32 %v4550_v23, %v4291_v4  ;;  %v4292_v36 = vadd.f32 %v4246_v38, %v11915_v7  ;;  %v12202_v7 = vld [vmem:[%s13006_s0 + $0x164] sm:$0xff]  ;;  %v13121_v4 = vld [vmem:[#allocation10_spill] sm:$0xff] }
 0x2a2   :  { %v4250_v46 = vpop.f32.mrf.mxu1  ;;  %v4556_v59 = vpop.f32.mrf.mxu0  ;;  %8914 = vmatmul.mubr.msk.bf16.gmra.mxu1 %vm151_vm0, %v5886_v41  ;;  %8954 = vmatmul.mubr.msk.bf16.gmra.mxu0 %vm151_vm0, %v6193_v45  ;;  %13120 = vst [vmem:[#allocation16_spill] sm:$0xff] %v12202_v7  ;;  %v5887_v45 = vpack.c.bf16 %v12202_v7, %v12197_v44  ;;  %v6194_v38 = vpack.c.bf16 %v8931_v10, %v13121_v4 }
 0x2a3   :  { %v12189_v3 = vadd.f32 %v4552_v28, %v4292_v36  ;;  %v4293_v29 = vadd.f32 %v4250_v46, %v11933_v60  ;;  %6095 = vmatprep.mubr.bf16.mxu1 %v13059_v48  ;;  %6402 = vmatprep.mubr.bf16.mxu0 %v13059_v48 }
 0x2a4   :  { %v4252_v33 = vpop.f32.mrf.mxu1  ;;  %v4558_v60 = vpop.f32.mrf.mxu0 }
 0x2a5   :  { %v12207_v14 = vadd.f32 %v4556_v59, %v4293_v29  ;;  %v4294_v23 = vadd.f32 %v4252_v33, %v11939_v21 }
 0x2a6   :  { %v4254_v41 = vpop.f32.mrf.mxu1  ;;  %v4560_v56 = vpop.f32.mrf.mxu0 }
 0x2a7   :  { %v12213_v28 = vadd.f32 %v4558_v60, %v4294_v23  ;;  %v4295_v36 = vadd.f32 %v4254_v41, %v11942_v27  ;;  %v8956_v27 = vld [vmem:[%s13006_s0 + $0x41] sm:$0xff] }
 0x2a8   :  { %v4256_v46 = vpop.f32.mrf.mxu1  ;;  %v4562_v51 = vpop.f32.mrf.mxu0 }
 0x2a9   :  { %v12216_v54 = vadd.f32 %v4560_v56, %v4295_v36  ;;  %v4296_v59 = vadd.f32 %v4256_v46, %v11947_v15  ;;  %v8957_v15 = vld [vmem:[%s13006_s0 + $0x51] sm:$0xff] }
 0x2aa   :  { %v4260_v29 = vpop.f32.mrf.mxu1  ;;  %v4566_v35 = vpop.f32.mrf.mxu0  ;;  %8915 = vmatmul.mubr.msk.bf16.gmra.mxu1 %vm151_vm0, %v5887_v45  ;;  %8955 = vmatmul.mubr.msk.bf16.gmra.mxu0 %vm151_vm0, %v6194_v38  ;;  %v6493_v56 = vpack.c.bf16 %v8957_v15, %v8956_v27  ;;  %v13122_v45 = vld [vmem:[#allocation11_spill] sm:$0xff]  ;;  %v9410_v36 = vld [vmem:[%s13005_s1 + $0x5f0] ss:$8 sps:$4 sm:$0xff]  }
 0x2ab   :  { %v12221_v21 = vadd.f32 %v4562_v51, %v4296_v59  ;;  %v4297_v10 = vadd.f32 %v4260_v29, %v11960_v57  ;;  %6638 = vmatprep.mubr.bf16.mxu1 %v13059_v48  ;;  %6944 = vmatprep.mubr.bf16.mxu0 %v13059_v48  ;;  %v6799_v4 = vpack.c.bf16 %v11711_v6, %v13122_v45  ;;  %v9413_v46 = vld [vmem:[%s13005_s1 + $0x630] ss:$8 sps:$4 sm:$0xff]   ;;  %v9421_v6 = vld [vmem:[%s13005_s1 + $0x624] ss:$8 sps:$4 sm:$0xff]  }
 0x2ac   :  { %v4262_v33 = vpop.f32.mrf.mxu1  ;;  %v4568_v60 = vpop.f32.mrf.mxu0  ;;  %v8958_v27 = vld [vmem:[%s13006_s0 + $0x61] sm:$0xff] }
 0x2ad   :  { %v12232_v23 = vadd.f32 %v4566_v35, %v4297_v10  ;;  %v4298_v51 = vadd.f32 %v4262_v33, %v11966_v22  ;;  %v9418_v22 = vld [vmem:[%s13005_s1 + $0x5e4] ss:$8 sps:$4 sm:$0xff]   ;;  %v8959_v33 = vld [vmem:[%s13006_s0 + $0x71] sm:$0xff] }
 0x2ae   :  { %v4264_v41 = vpop.f32.mrf.mxu1  ;;  %v4570_v57 = vpop.f32.mrf.mxu0 }
 0x2af   :  { %v12237_v38 = vadd.f32 %v4568_v60, %v4298_v51  ;;  %v9416_v60 = vld [vmem:[%s13005_s1 + $0x5e0] ss:$8 sps:$4 sm:$0xff]  }
 0x2b0   :  { %v4266_v35 = vpop.f32.mrf.mxu1  ;;  %v4572_v59 = vpop.f32.mrf.mxu0  ;;  %v9419_v51 = vld [vmem:[%s13005_s1 + $0x620] ss:$8 sps:$4 sm:$0xff]  }
 0x2b1   :  { %v6494_v35 = vpack.c.bf16 %v8959_v33, %v8958_v27  ;;  %v6800_v59 = vpack.c.bf16 %v11768_v20, %v11717_v26  ;;  %v9430_v20 = vld [vmem:[%s13005_s1 + $0x5c4] ss:$8 sps:$4 sm:$0xff]  }
 0x2b2   :  { %v4803_v29 = vpop.f32.mrf.mxu1  ;;  %v5109_v10 = vpop.f32.mrf.mxu0  ;;  %8988 = vmatmul.mubr.msk.bf16.vlgmr.msra.gmra.mxu1 %vm151_vm0, %v6493_v56  ;;  %9028 = vmatmul.mubr.msk.bf16.vlgmr.msra.gmra.mxu0 %vm151_vm0, %v6799_v4  ;;  %v9427_v56 = vld [vmem:[%s13005_s1 + $0x614] ss:$8 sps:$4 sm:$0xff]  }
 0x2b3   :  { %v4882_v15 = vadd.f32 %v4803_v29, %v12007_v53  ;;  %7227 = vmatpush1.bf16.msra.mxu1 %v9410_v36  ;;  %7533 = vmatpush1.bf16.msra.mxu0 %v9413_v46  ;;  %v9424_v53 = vld [vmem:[%s13005_s1 + $0x5d4] ss:$8 sps:$4 sm:$0xff]  }
 0x2b4   :  { %v4805_v41 = vpop.f32.mrf.mxu1  ;;  %v5111_v57 = vpop.f32.mrf.mxu0  ;;  %6648 = vmatprep.mubr.bf16.mxu1 %v13059_v48  ;;  %6954 = vmatprep.mubr.bf16.mxu0 %v13059_v48 }
 0x2b5   :  { %v12274_v45 = vadd.f32 %v5109_v10, %v4882_v15  ;;  %v4883_v4 = vadd.f32 %v4805_v41, %v12014_v8  ;;  %7228 = vmatprep.subr.bf16.mxu1 %v9418_v22  ;;  %7534 = vmatprep.subr.bf16.mxu0 %v9421_v6  ;;  %v9422_v8 = vld [vmem:[%s13005_s1 + $0x5d0] ss:$8 sps:$4 sm:$0xff]  }
 0x2b6   :  { %v4807_v36 = vpop.f32.mrf.mxu1  ;;  %v5113_v46 = vpop.f32.mrf.mxu0  ;;  %v9425_v22 = vld [vmem:[%s13005_s1 + $0x610] ss:$8 sps:$4 sm:$0xff]  }
 0x2b7   :  { %v12279_v29 = vadd.f32 %v5111_v57, %v4883_v4  ;;  %v4884_v7 = vadd.f32 %v4807_v36, %v12023_v1  ;;  %7229 = vmatpush1.bf16.msra.mxu1 %v9416_v60  ;;  %7535 = vmatpush1.bf16.msra.mxu0 %v9419_v51  ;;  %v9433_v1 = vld [vmem:[%s13005_s1 + $0x604] ss:$8 sps:$4 sm:$0xff]   ;;  %v6801_v4 = vpack.c.bf16 %v11810_v19, %v11773_v31 }
 0x2b8   :  { %v4809_v44 = vpop.f32.mrf.mxu1  ;;  %v5115_v18 = vpop.f32.mrf.mxu0  ;;  %7230 = vmatprep.subr.bf16.mxu1 %v9424_v53  ;;  %7536 = vmatprep.subr.bf16.mxu0 %v9427_v56  ;;  %v8962_v19 = vld [vmem:[%s13006_s0 + $0xa1] sm:$0xff] }
 0x2b9   :  { %v12288_v6 = vadd.f32 %v5113_v46, %v4884_v7  ;;  %v4885_v26 = vadd.f32 %v4809_v44, %v12034_v9  ;;  %v8960_v9 = vld [vmem:[%s13006_s0 + $0x81] sm:$0xff]  ;;  %v8961_v44 = vld [vmem:[%s13006_s0 + $0x91] sm:$0xff] }
 0x2ba   :  { %v4813_v10 = vpop.f32.mrf.mxu1  ;;  %v5119_v27 = vpop.f32.mrf.mxu0  ;;  %8989 = vmatmul.mubr.msk.bf16.gmra.mxu1 %vm151_vm0, %v6494_v35  ;;  %9029 = vmatmul.mubr.msk.bf16.gmra.mxu0 %vm151_vm0, %v6800_v59  ;;  %v6495_v56 = vpack.c.bf16 %v8961_v44, %v8960_v9 }
 0x2bb   :  { %v12299_v15 = vadd.f32 %v5115_v18, %v4885_v26  ;;  %v4886_v7 = vadd.f32 %v4813_v10, %v12055_v42  ;;  %6658 = vmatprep.mubr.bf16.mxu1 %v13059_v48  ;;  %6964 = vmatprep.mubr.bf16.mxu0 %v13059_v48  ;;  %v9428_v42 = vld [vmem:[%s13005_s1 + $0x5c0] ss:$8 sps:$4 sm:$0xff]  }
 0x2bc   :  { %v4815_v33 = vpop.f32.mrf.mxu1  ;;  %v5121_v60 = vpop.f32.mrf.mxu0  ;;  %7231 = vmatpush1.bf16.msra.mxu1 %v9422_v8  ;;  %7537 = vmatpush1.bf16.msra.mxu0 %v9425_v22  ;;  %v9431_v18 = vld [vmem:[%s13005_s1 + $0x600] ss:$8 sps:$4 sm:$0xff]  }
 0x2bd   :  { %v12316_v51 = vadd.f32 %v5119_v27, %v4886_v7  ;;  %v4887_v41 = vadd.f32 %v4815_v33, %v12068_v43  ;;  %7232 = vmatprep.subr.bf16.mxu1 %v9430_v20  ;;  %7538 = vmatprep.subr.bf16.mxu0 %v9433_v1 }
 0x2be   :  { %v4817_v57 = vpop.f32.mrf.mxu1  ;;  %v5123_v53 = vpop.f32.mrf.mxu0 }
 0x2bf   :  { %v12321_v36 = vadd.f32 %v5121_v60, %v4887_v41  ;;  %v4888_v46 = vadd.f32 %v4817_v57, %v12071_v40  ;;  %v8963_v40 = vld [vmem:[%s13006_s0 + $0xb1] sm:$0xff] }
 0x2c0   :  { %v4819_v35 = vpop.f32.mrf.mxu1  ;;  %v5125_v59 = vpop.f32.mrf.mxu0  ;;  %7233 = vmatpush1.bf16.msra.mxu1 %v9428_v42  ;;  %7539 = vmatpush1.bf16.msra.mxu0 %v9431_v18  ;;  %v6496_v44 = vpack.c.bf16 %v8963_v40, %v8962_v19 }
 0x2c1   :  { %v12324_v8 = vadd.f32 %v5123_v53, %v4888_v46  ;;  %v4889_v43 = vadd.f32 %v4819_v35, %v12076_v2  ;;  %v9003_v2 = vld [vmem:[%s13006_s0 + $0xb2] sm:$0xff] }
 0x2c2   :  { %v4823_v22 = vpop.f32.mrf.mxu1  ;;  %v5129_v26 = vpop.f32.mrf.mxu0  ;;  %8990 = vmatmul.mubr.msk.bf16.gmra.mxu1 %vm151_vm0, %v6495_v56  ;;  %9030 = vmatmul.mubr.msk.bf16.gmra.mxu0 %vm151_vm0, %v6801_v4  ;;  %v6802_v33 = vpack.c.bf16 %v9003_v2, %v11815_v61 }
 0x2c3   :  { %v12329_v20 = vadd.f32 %v5125_v59, %v4889_v43  ;;  %v4890_v31 = vadd.f32 %v4823_v22, %v12094_v63  ;;  %6668 = vmatprep.mubr.bf16.mxu1 %v13059_v48  ;;  %6974 = vmatprep.mubr.bf16.mxu0 %v13059_v48 }
 0x2c4   :  { %v4825_v1 = vpop.f32.mrf.mxu1  ;;  %v5131_v10 = vpop.f32.mrf.mxu0 }
 0x2c5   :  { %v12343_v27 = vadd.f32 %v5129_v26, %v4890_v31  ;;  %v4891_v63 = vadd.f32 %v4825_v1, %v12100_v50  ;;  %v13123_v31 = vld [vmem:[#allocation12_spill] sm:$0xff] }
 0x2c6   :  { %v4827_v7 = vpop.f32.mrf.mxu1  ;;  %v5133_v9 = vpop.f32.mrf.mxu0  ;;  %v6803_v19 = vpack.c.bf16 %v13123_v31, %v11845_v37  ;;  %v8966_v37 = vld [vmem:[%s13006_s0 + $0x121] sm:$0xff] }
 0x2c7   :  { %v12347_v60 = vadd.f32 %v5131_v10, %v4891_v63  ;;  %v4892_v42 = vadd.f32 %v4827_v7, %v12103_v17  ;;  %v8964_v17 = vld [vmem:[%s13006_s0 + $0x101] sm:$0xff] }
 0x2c8   :  { %v4829_v18 = vpop.f32.mrf.mxu1  ;;  %v5135_v41 = vpop.f32.mrf.mxu0 }
 0x2c9   :  { %v12350_v57 = vadd.f32 %v5133_v9, %v4892_v42  ;;  %v4893_v53 = vadd.f32 %v4829_v18, %v12108_v47  ;;  %v8965_v47 = vld [vmem:[%s13006_s0 + $0x111] sm:$0xff] }
 0x2ca   :  { %v4833_v56 = vpop.f32.mrf.mxu1  ;;  %v5139_v4 = vpop.f32.mrf.mxu0  ;;  %8991 = vmatmul.mubr.msk.bf16.gmra.mxu1 %vm151_vm0, %v6496_v44  ;;  %9031 = vmatmul.mubr.msk.bf16.gmra.mxu0 %vm151_vm0, %v6802_v33  ;;  %v6497_v26 = vpack.c.bf16 %v8965_v47, %v8964_v17 }
 0x2cb   :  { %v12355_v50 = vadd.f32 %v5135_v41, %v4893_v53  ;;  %v4894_v61 = vadd.f32 %v4833_v56, %v12121_v52  ;;  %6678 = vmatprep.mubr.bf16.mxu1 %v13059_v48  ;;  %6984 = vmatprep.mubr.bf16.mxu0 %v13059_v48  ;;  %v13124_v53 = vld [vmem:[#allocation13_spill] sm:$0xff]  ;;  %v13125_v56 = vld [vmem:[#allocation14_spill] sm:$0xff] }
 0x2cc   :  { %v4835_v46 = vpop.f32.mrf.mxu1  ;;  %v5141_v35 = vpop.f32.mrf.mxu0 }
 0x2cd   :  { %v12366_v59 = vadd.f32 %v5139_v4, %v4894_v61  ;;  %v4895_v43 = vadd.f32 %v4835_v46, %v12127_v0  ;;  %v8967_v0 = vld [vmem:[%s13006_s0 + $0x131] sm:$0xff]  ;;  %v6804_v4 = vpack.c.bf16 %v13125_v56, %v13124_v53 }
 0x2ce   :  { %v4837_v22 = vpop.f32.mrf.mxu1  ;;  %v5143_v52 = vpop.f32.mrf.mxu0  ;;  %v6498_v41 = vpack.c.bf16 %v8967_v0, %v8966_v37  ;;  %v9011_v56 = vld [vmem:[%s13006_s0 + $0x172] sm:$0xff] }
 0x2cf   :  { %v12371_v40 = vadd.f32 %v5141_v35, %v4895_v43 }
 0x2d0   :  { %v4839_v2 = vpop.f32.mrf.mxu1  ;;  %v5145_v1 = vpop.f32.mrf.mxu0 }
 0x2d2   :  { %v4843_v10 = vpop.f32.mrf.mxu1  ;;  %v5149_v63 = vpop.f32.mrf.mxu0  ;;  %8992 = vmatmul.mubr.msk.bf16.gmra.mxu1 %vm151_vm0, %v6497_v26  ;;  %9032 = vmatmul.mubr.msk.bf16.gmra.mxu0 %vm151_vm0, %v6803_v19 }
 0x2d3   :  { %v4898_v7 = vadd.f32 %v4843_v10, %v12144_v24  ;;  %6688 = vmatprep.mubr.bf16.mxu1 %v13059_v48  ;;  %6994 = vmatprep.mubr.bf16.mxu0 %v13059_v48 }
 0x2d4   :  { %v4845_v9 = vpop.f32.mrf.mxu1  ;;  %v5151_v44 = vpop.f32.mrf.mxu0 }
 0x2d5   :  { %v12384_v33 = vadd.f32 %v5149_v63, %v4898_v7  ;;  %v4899_v42 = vadd.f32 %v4845_v9, %v12151_v62  ;;  %v13126_v7 = vld [vmem:[#allocation15_spill] sm:$0xff] }
 0x2d6   :  { %v4847_v18 = vpop.f32.mrf.mxu1  ;;  %v5153_v24 = vpop.f32.mrf.mxu0  ;;  %v6805_v37 = vpack.c.bf16 %v11923_v13, %v13126_v7 }
 0x2d7   :  { %v12389_v61 = vadd.f32 %v5151_v44, %v4899_v42  ;;  %v4900_v17 = vadd.f32 %v4847_v18, %v12154_v30  ;;  %v8968_v30 = vld [vmem:[%s13006_s0 + $0x141] sm:$0xff] }
 0x2d8   :  { %v4849_v47 = vpop.f32.mrf.mxu1  ;;  %v5155_v46 = vpop.f32.mrf.mxu0 }
 0x2d9   :  { %v12392_v35 = vadd.f32 %v5153_v24, %v4900_v17  ;;  %v4901_v43 = vadd.f32 %v4849_v47, %v12159_v11  ;;  %v8969_v11 = vld [vmem:[%s13006_s0 + $0x151] sm:$0xff] }
 0x2da   :  { %v4853_v22 = vpop.f32.mrf.mxu1  ;;  %v5159_v52 = vpop.f32.mrf.mxu0  ;;  %8993 = vmatmul.mubr.msk.bf16.gmra.mxu1 %vm151_vm0, %v6498_v41  ;;  %9033 = vmatmul.mubr.msk.bf16.gmra.mxu0 %vm151_vm0, %v6804_v4  ;;  %v6499_v63 = vpack.c.bf16 %v8969_v11, %v8968_v30 }
 0x2db   :  { %v12397_v62 = vadd.f32 %v5155_v46, %v4901_v43  ;;  %v4902_v26 = vadd.f32 %v4853_v22, %v12174_v12  ;;  %6698 = vmatprep.mubr.bf16.mxu1 %v13059_v48  ;;  %7004 = vmatprep.mubr.bf16.mxu0 %v13059_v48 }
 0x2dc   :  { %v4855_v31 = vpop.f32.mrf.mxu1  ;;  %v5161_v19 = vpop.f32.mrf.mxu0 }
 0x2dd   :  { %v12408_v2 = vadd.f32 %v5159_v52, %v4902_v26  ;;  %v4903_v1 = vadd.f32 %v4855_v31, %v12181_v58  ;;  %v13127_v52 = vld [vmem:[#allocation3_spill] sm:$0xff] }
 0x2de   :  { %v4857_v10 = vpop.f32.mrf.mxu1  ;;  %v5163_v12 = vpop.f32.mrf.mxu0  ;;  %v6806_v26 = vpack.c.bf16 %v9011_v56, %v13127_v52 }
 0x2df   :  { %v12413_v0 = vadd.f32 %v5161_v19, %v4903_v1  ;;  %v4904_v9 = vadd.f32 %v4857_v10, %v12184_v16  ;;  %v8970_v16 = vld [vmem:[%s13006_s0 + $0x161] sm:$0xff] }
 0x2e0   :  { %v4859_v44 = vpop.f32.mrf.mxu1  ;;  %v5165_v42 = vpop.f32.mrf.mxu0 }
 0x2e1   :  { %v12416_v18 = vadd.f32 %v5163_v12, %v4904_v9  ;;  %v4905_v24 = vadd.f32 %v4859_v44, %v12189_v3  ;;  %v8971_v3 = vld [vmem:[%s13006_s0 + $0x171] sm:$0xff] }
 0x2e2   :  { %v4863_v41 = vpop.f32.mrf.mxu1  ;;  %v5169_v53 = vpop.f32.mrf.mxu0  ;;  %8994 = vmatmul.mubr.msk.bf16.gmra.mxu1 %vm151_vm0, %v6499_v63  ;;  %9034 = vmatmul.mubr.msk.bf16.gmra.mxu0 %vm151_vm0, %v6805_v37  ;;  %v6500_v22 = vpack.c.bf16 %v8971_v3, %v8970_v16 }
 0x2e3   :  { %v12421_v58 = vadd.f32 %v5165_v42, %v4905_v24  ;;  %v4906_v13 = vadd.f32 %v4863_v41, %v12207_v14  ;;  %6708 = vmatprep.mubr.bf16.mxu1 %v13059_v48  ;;  %7014 = vmatprep.mubr.bf16.mxu0 %v13059_v48 }
 0x2e4   :  { %v4865_v4 = vpop.f32.mrf.mxu1  ;;  %v5171_v17 = vpop.f32.mrf.mxu0 }
 0x2e5   :  { %v12435_v47 = vadd.f32 %v5169_v53, %v4906_v13  ;;  %v4907_v14 = vadd.f32 %v4865_v4, %v12213_v28  ;;  %v13128_v53 = vld [vmem:[#allocation6_spill] sm:$0xff] }
 0x2e6   :  { %v4867_v46 = vpop.f32.mrf.mxu1  ;;  %v5173_v43 = vpop.f32.mrf.mxu0  ;;  %v7411_v13 = vpack.c.bf16 %v11985_v34, %v13128_v53  ;;  %v9038_v34 = vld [vmem:[%s13006_s0 + $0x63] sm:$0xff]  ;;  %v7413_v53 = vpack.c.bf16 %v12084_v49, %v12047_v39 }
 0x2e7   :  { %v12439_v30 = vadd.f32 %v5171_v17, %v4907_v14  ;;  %v4908_v11 = vadd.f32 %v4867_v46, %v12216_v54  ;;  %v9036_v54 = vld [vmem:[%s13006_s0 + $0x43] sm:$0xff] }
 0x2e8   :  { %v4869_v31 = vpop.f32.mrf.mxu1  ;;  %v5175_v19 = vpop.f32.mrf.mxu0  ;;  %v9042_v49 = vld [vmem:[%s13006_s0 + $0xa3] sm:$0xff] }
 0x2e9   :  { %v12442_v1 = vadd.f32 %v5173_v43, %v4908_v11  ;;  %v4909_v10 = vadd.f32 %v4869_v31, %v12221_v21  ;;  %v9037_v21 = vld [vmem:[%s13006_s0 + $0x53] sm:$0xff]  ;;  %v7412_v31 = vpack.c.bf16 %v12042_v32, %v11991_v5  ;;  %v9040_v32 = vld [vmem:[%s13006_s0 + $0x83] sm:$0xff] }
 0x2ea   :  { %v4873_v12 = vpop.f32.mrf.mxu1  ;;  %v5179_v63 = vpop.f32.mrf.mxu0  ;;  %8995 = vmatmul.mubr.msk.bf16.gmra.mxu1 %vm151_vm0, %v6500_v22  ;;  %9035 = vmatmul.mubr.msk.bf16.gmra.mxu0 %vm151_vm0, %v6806_v26  ;;  %v7105_v41 = vpack.c.bf16 %v9037_v21, %v9036_v54 }
 0x2eb   :  { %v12447_v28 = vadd.f32 %v5175_v19, %v4909_v10  ;;  %v4910_v7 = vadd.f32 %v4873_v12, %v12232_v23  ;;  %7250 = vmatprep.mubr.bf16.mxu1 %v13059_v48  ;;  %7556 = vmatprep.mubr.bf16.mxu0 %v13059_v48 }
 0x2ec   :  { %v4875_v37 = vpop.f32.mrf.mxu1  ;;  %v5181_v9 = vpop.f32.mrf.mxu0 }
 0x2ed   :  { %v12458_v44 = vadd.f32 %v5179_v63, %v4910_v7  ;;  %v4911_v42 = vadd.f32 %v4875_v37, %v12237_v38  ;;  %v9039_v38 = vld [vmem:[%s13006_s0 + $0x73] sm:$0xff] }
 0x2ee   :  { %v4877_v24 = vpop.f32.mrf.mxu1  ;;  %v5183_v23 = vpop.f32.mrf.mxu0  ;;  %v7106_v11 = vpack.c.bf16 %v9039_v38, %v9038_v34 }
 0x2ef   :  { %v12463_v16 = vadd.f32 %v5181_v9, %v4911_v42 }
 0x2f0   :  { %v4879_v3 = vpop.f32.mrf.mxu1  ;;  %v5185_v56 = vpop.f32.mrf.mxu0 }
 0x2f2   :  { %v5415_v4 = vpop.f32.mrf.mxu1  ;;  %v5721_v17 = vpop.f32.mrf.mxu0  ;;  %9068 = vmatmul.mubr.msk.bf16.vlgmr.msra.gmra.mxu1 %vm151_vm0, %v7105_v41  ;;  %9108 = vmatmul.mubr.msk.bf16.vlgmr.msra.gmra.mxu0 %vm151_vm0, %v7411_v13 }
 0x2f3   :  { %v5494_v14 = vadd.f32 %v5415_v4, %v12274_v45  ;;  %7260 = vmatprep.mubr.bf16.mxu1 %v13059_v48  ;;  %7566 = vmatprep.mubr.bf16.mxu0 %v13059_v48 }
 0x2f4   :  { %v5417_v46 = vpop.f32.mrf.mxu1  ;;  %v5723_v43 = vpop.f32.mrf.mxu0 }
 0x2f5   :  { %v12476_v22 = vadd.f32 %v5721_v17, %v5494_v14  ;;  %v5495_v52 = vadd.f32 %v5417_v46, %v12279_v29 }
 0x2f6   :  { %v5419_v26 = vpop.f32.mrf.mxu1  ;;  %v5725_v45 = vpop.f32.mrf.mxu0 }
 0x2f7   :  { %v12481_v19 = vadd.f32 %v5723_v43, %v5495_v52  ;;  %v5496_v10 = vadd.f32 %v5419_v26, %v12288_v6  ;;  %v9041_v6 = vld [vmem:[%s13006_s0 + $0x93] sm:$0xff] }
 0x2f8   :  { %v5421_v12 = vpop.f32.mrf.mxu1  ;;  %v5727_v63 = vpop.f32.mrf.mxu0  ;;  %v7107_v41 = vpack.c.bf16 %v9041_v6, %v9040_v32 }
 0x2f9   :  { %v12484_v7 = vadd.f32 %v5725_v45, %v5496_v10  ;;  %v5497_v54 = vadd.f32 %v5421_v12, %v12299_v15 }
 0x2fa   :  { %v5425_v21 = vpop.f32.mrf.mxu1  ;;  %v5731_v37 = vpop.f32.mrf.mxu0  ;;  %9069 = vmatmul.mubr.msk.bf16.gmra.mxu1 %vm151_vm0, %v7106_v11  ;;  %9109 = vmatmul.mubr.msk.bf16.gmra.mxu0 %vm151_vm0, %v7412_v31 }
 0x2fb   :  { %v12489_v29 = vadd.f32 %v5727_v63, %v5497_v54  ;;  %v5498_v5 = vadd.f32 %v5425_v21, %v12316_v51  ;;  %7270 = vmatprep.mubr.bf16.mxu1 %v13059_v48  ;;  %7576 = vmatprep.mubr.bf16.mxu0 %v13059_v48 }
 0x2fc   :  { %v5427_v15 = vpop.f32.mrf.mxu1  ;;  %v5733_v9 = vpop.f32.mrf.mxu0 }
 0x2fd   :  { %v12500_v42 = vadd.f32 %v5731_v37, %v5498_v5  ;;  %v5499_v24 = vadd.f32 %v5427_v15, %v12321_v36 }
 0x2fe   :  { %v5429_v23 = vpop.f32.mrf.mxu1  ;;  %v5735_v51 = vpop.f32.mrf.mxu0 }
 0x2ff   :  { %v12505_v13 = vadd.f32 %v5733_v9, %v5499_v24  ;;  %v5500_v3 = vadd.f32 %v5429_v23, %v12324_v8  ;;  %v9043_v8 = vld [vmem:[%s13006_s0 + $0xb3] sm:$0xff] }
 0x300   :  { %v5431_v56 = vpop.f32.mrf.mxu1  ;;  %v5737_v4 = vpop.f32.mrf.mxu0  ;;  %v7108_v11 = vpack.c.bf16 %v9043_v8, %v9042_v49 }
 0x301   :  { %v12508_v17 = vadd.f32 %v5735_v51, %v5500_v3  ;;  %v5501_v14 = vadd.f32 %v5431_v56, %v12329_v20  ;;  %v9083_v20 = vld [vmem:[%s13006_s0 + $0xb4] sm:$0xff] }
 0x302   :  { %v5435_v34 = vpop.f32.mrf.mxu1  ;;  %v5741_v38 = vpop.f32.mrf.mxu0  ;;  %9070 = vmatmul.mubr.msk.bf16.gmra.mxu1 %vm151_vm0, %v7107_v41  ;;  %9110 = vmatmul.mubr.msk.bf16.gmra.mxu0 %vm151_vm0, %v7413_v53  ;;  %v7414_v31 = vpack.c.bf16 %v9083_v20, %v12089_v25  ;;  %v13129_v41 = vld [vmem:[#allocation7_spill] sm:$0xff] }
 0x303   :  { %v12513_v36 = vadd.f32 %v5737_v4, %v5501_v14  ;;  %v5502_v39 = vadd.f32 %v5435_v34, %v12343_v27  ;;  %7280 = vmatprep.mubr.bf16.mxu1 %v13059_v48  ;;  %7586 = vmatprep.mubr.bf16.mxu0 %v13059_v48  ;;  %v7415_v53 = vpack.c.bf16 %v13129_v41, %v12119_v55  ;;  %v9046_v55 = vld [vmem:[%s13006_s0 + $0x123] sm:$0xff] }
 0x304   :  { %v5437_v46 = vpop.f32.mrf.mxu1  ;;  %v5743_v43 = vpop.f32.mrf.mxu0 }
 0x305   :  { %v12527_v52 = vadd.f32 %v5741_v38, %v5502_v39  ;;  %v5503_v27 = vadd.f32 %v5437_v46, %v12347_v60 }
 0x306   :  { %v5439_v26 = vpop.f32.mrf.mxu1  ;;  %v5745_v45 = vpop.f32.mrf.mxu0 }
 0x307   :  { %v12531_v10 = vadd.f32 %v5743_v43, %v5503_v27  ;;  %v5504_v12 = vadd.f32 %v5439_v26, %v12350_v57  ;;  %v9044_v57 = vld [vmem:[%s13006_s0 + $0x103] sm:$0xff]  ;;  %v13131_v26 = vld [vmem:[#allocation9_spill] sm:$0xff] }
 0x308   :  { %v5441_v63 = vpop.f32.mrf.mxu1  ;;  %v5747_v54 = vpop.f32.mrf.mxu0  ;;  %v13130_v27 = vld [vmem:[#allocation8_spill] sm:$0xff] }
 0x309   :  { %v12534_v21 = vadd.f32 %v5745_v45, %v5504_v12  ;;  %v5505_v37 = vadd.f32 %v5441_v63, %v12355_v50  ;;  %v9045_v50 = vld [vmem:[%s13006_s0 + $0x113] sm:$0xff]  ;;  %v7416_v45 = vpack.c.bf16 %v13131_v26, %v13130_v27  ;;  %v13134_v26 = vld [vmem:[#allocation16_spill] sm:$0xff] }
 0x30a   :  { %v5445_v5 = vpop.f32.mrf.mxu1  ;;  %v5751_v32 = vpop.f32.mrf.mxu0  ;;  %9071 = vmatmul.mubr.msk.bf16.gmra.mxu1 %vm151_vm0, %v7108_v11  ;;  %9111 = vmatmul.mubr.msk.bf16.gmra.mxu0 %vm151_vm0, %v7414_v31  ;;  %v7109_v51 = vpack.c.bf16 %v9045_v50, %v9044_v57 }
 0x30b   :  { %v12539_v60 = vadd.f32 %v5747_v54, %v5505_v37  ;;  %v5506_v25 = vadd.f32 %v5445_v5, %v12366_v59  ;;  %7290 = vmatprep.mubr.bf16.mxu1 %v13059_v48  ;;  %7596 = vmatprep.mubr.bf16.mxu0 %v13059_v48 }
 0x30c   :  { %v5447_v6 = vpop.f32.mrf.mxu1  ;;  %v5753_v15 = vpop.f32.mrf.mxu0 }
 0x30d   :  { %v12550_v9 = vadd.f32 %v5751_v32, %v5506_v25  ;;  %v5507_v24 = vadd.f32 %v5447_v6, %v12371_v40  ;;  %v9047_v40 = vld [vmem:[%s13006_s0 + $0x133] sm:$0xff] }
 0x30e   :  { %v5449_v23 = vpop.f32.mrf.mxu1  ;;  %v5755_v59 = vpop.f32.mrf.mxu0  ;;  %v7110_v43 = vpack.c.bf16 %v9047_v40, %v9046_v55 }
 0x30f   :  { %v12555_v3 = vadd.f32 %v5753_v15, %v5507_v24  ;;  %v13132_v59 = vld [vmem:[#allocation4_spill] sm:$0xff] }
 0x310   :  { %v5451_v56 = vpop.f32.mrf.mxu1  ;;  %v5757_v4 = vpop.f32.mrf.mxu0 }
 0x312   :  { %v5455_v14 = vpop.f32.mrf.mxu1  ;;  %v5761_v34 = vpop.f32.mrf.mxu0  ;;  %9072 = vmatmul.mubr.msk.bf16.gmra.mxu1 %vm151_vm0, %v7109_v51  ;;  %9112 = vmatmul.mubr.msk.bf16.gmra.mxu0 %vm151_vm0, %v7415_v53  ;;  %v13133_v51 = vld [vmem:[#allocation5_spill] sm:$0xff] }
 0x313   :  { %v5510_v38 = vadd.f32 %v5455_v14, %v12384_v33  ;;  %7300 = vmatprep.mubr.bf16.mxu1 %v13059_v48  ;;  %7606 = vmatprep.mubr.bf16.mxu0 %v13059_v48  ;;  %v7417_v41 = vpack.c.bf16 %v13133_v51, %v13132_v59 }
 0x314   :  { %v5457_v39 = vpop.f32.mrf.mxu1  ;;  %v5763_v49 = vpop.f32.mrf.mxu0 }
 0x315   :  { %v12568_v8 = vadd.f32 %v5761_v34, %v5510_v38  ;;  %v5511_v20 = vadd.f32 %v5457_v39, %v12389_v61 }
 0x316   :  { %v5459_v46 = vpop.f32.mrf.mxu1  ;;  %v5765_v33 = vpop.f32.mrf.mxu0 }
 0x317   :  { %v12573_v11 = vadd.f32 %v5763_v49, %v5511_v20  ;;  %v5512_v31 = vadd.f32 %v5459_v46, %v12392_v35  ;;  %v9048_v35 = vld [vmem:[%s13006_s0 + $0x143] sm:$0xff]  ;;  %v9091_v49 = vld [vmem:[%s13006_s0 + $0x174] sm:$0xff] }
 0x318   :  { %v5461_v12 = vpop.f32.mrf.mxu1  ;;  %v5767_v63 = vpop.f32.mrf.mxu0 }
 0x319   :  { %v12576_v54 = vadd.f32 %v5765_v33, %v5512_v31  ;;  %v5513_v37 = vadd.f32 %v5461_v12, %v12397_v62  ;;  %v9049_v62 = vld [vmem:[%s13006_s0 + $0x153] sm:$0xff] }
 0x31a   :  { %v5465_v5 = vpop.f32.mrf.mxu1  ;;  %v5771_v32 = vpop.f32.mrf.mxu0  ;;  %9073 = vmatmul.mubr.msk.bf16.gmra.mxu1 %vm151_vm0, %v7110_v43  ;;  %9113 = vmatmul.mubr.msk.bf16.gmra.mxu0 %vm151_vm0, %v7416_v45  ;;  %v7111_v23 = vpack.c.bf16 %v9049_v62, %v9048_v35  ;;  %v7418_v45 = vpack.c.bf16 %v9091_v49, %v13134_v26 }
 0x31b   :  { %v12581_v61 = vadd.f32 %v5767_v63, %v5513_v37  ;;  %v5514_v25 = vadd.f32 %v5465_v5, %v12408_v2  ;;  %7310 = vmatprep.mubr.bf16.mxu1 %v13059_v48  ;;  %7616 = vmatprep.mubr.bf16.mxu0 %v13059_v48 }
 0x31c   :  { %v5467_v57 = vpop.f32.mrf.mxu1  ;;  %v5773_v50 = vpop.f32.mrf.mxu0 }
 0x31d   :  { %v12592_v6 = vadd.f32 %v5771_v32, %v5514_v25  ;;  %v5515_v15 = vadd.f32 %v5467_v57, %v12413_v0 }
 0x31e   :  { %v5469_v24 = vpop.f32.mrf.mxu1  ;;  %v5775_v2 = vpop.f32.mrf.mxu0 }
 0x31f   :  { %v12597_v53 = vadd.f32 %v5773_v50, %v5515_v15  ;;  %v5516_v56 = vadd.f32 %v5469_v24, %v12416_v18  ;;  %v9050_v18 = vld [vmem:[%s13006_s0 + $0x163] sm:$0xff] }
 0x320   :  { %v5471_v4 = vpop.f32.mrf.mxu1  ;;  %v5777_v14 = vpop.f32.mrf.mxu0 }
 0x321   :  { %v12600_v34 = vadd.f32 %v5775_v2, %v5516_v56  ;;  %v5517_v38 = vadd.f32 %v5471_v4, %v12421_v58  ;;  %v9051_v58 = vld [vmem:[%s13006_s0 + $0x173] sm:$0xff] }
 0x322   :  { %v5475_v55 = vpop.f32.mrf.mxu1  ;;  %v5781_v40 = vpop.f32.mrf.mxu0  ;;  %9074 = vmatmul.mubr.msk.bf16.gmra.mxu1 %vm151_vm0, %v7111_v23  ;;  %9114 = vmatmul.mubr.msk.bf16.gmra.mxu0 %vm151_vm0, %v7417_v41  ;;  %v7112_v27 = vpack.c.bf16 %v9051_v58, %v9050_v18 }
 0x323   :  { %v12605_v0 = vadd.f32 %v5777_v14, %v5517_v38  ;;  %v5518_v39 = vadd.f32 %v5475_v55, %v12435_v47  ;;  %7320 = vmatprep.mubr.bf16.mxu1 %v13059_v48  ;;  %7626 = vmatprep.mubr.bf16.mxu0 %v13059_v48 }
 0x324   :  { %v5477_v20 = vpop.f32.mrf.mxu1  ;;  %v5783_v46 = vpop.f32.mrf.mxu0 }
 0x325   :  { %v12619_v33 = vadd.f32 %v5781_v40, %v5518_v39  ;;  %v5519_v47 = vadd.f32 %v5477_v20, %v12439_v30 }
 0x326   :  { %v5479_v43 = vpop.f32.mrf.mxu1  ;;  %v5785_v48 = vpop.f32.mrf.mxu0 }
 0x327   :  { %v12623_v31 = vadd.f32 %v5783_v46, %v5519_v47  ;;  %v5520_v12 = vadd.f32 %v5479_v43, %v12442_v1 }
 0x328   :  { %v5481_v63 = vpop.f32.mrf.mxu1  ;;  %v5787_v37 = vpop.f32.mrf.mxu0 }
 0x329   :  { %v12626_v5 = vadd.f32 %v5785_v48, %v5520_v12  ;;  %v5521_v32 = vadd.f32 %v5481_v63, %v12447_v28 }
 0x32a   :  { %v5485_v25 = vpop.f32.mrf.mxu1  ;;  %v5791_v35 = vpop.f32.mrf.mxu0  ;;  %9075 = vmatmul.mubr.msk.bf16.gmra.mxu1 %vm151_vm0, %v7112_v27  ;;  %9115 = vmatmul.mubr.msk.bf16.gmra.mxu0 %vm151_vm0, %v7418_v45 }
 0x32b   :  { %v12631_v30 = vadd.f32 %v5787_v37, %v5521_v32  ;;  %v5522_v62 = vadd.f32 %v5485_v25, %v12458_v44 }
 0x32c   :  { %v5487_v57 = vpop.f32.mrf.mxu1  ;;  %v5793_v50 = vpop.f32.mrf.mxu0 }
 0x32d   :  { %v12634_v15 = vadd.f32 %v5791_v35, %v5522_v62  ;;  %v5523_v1 = vadd.f32 %v5487_v57, %v12463_v16 }
 0x32e   :  { %v5489_v24 = vpop.f32.mrf.mxu1  ;;  %v5795_v2 = vpop.f32.mrf.mxu0 }
 0x32f   :  { %v12637_v23 = vadd.f32 %v5793_v50, %v5523_v1 }
 0x330   :  { %v5491_v28 = vpop.f32.mrf.mxu1  ;;  %v5797_v59 = vpop.f32.mrf.mxu0 }
 0x332   :  { %v6027_v51 = vpop.f32.mrf.mxu1  ;;  %v6334_v41 = vpop.f32.mrf.mxu0 }
 0x333   :  { %v6106_v56 = vadd.f32 %v6027_v51, %v12476_v22 }
 0x334   :  { %v6029_v4 = vpop.f32.mrf.mxu1  ;;  %v6336_v14 = vpop.f32.mrf.mxu0 }
 0x335   :  { %v12640_v38 = vadd.f32 %v6334_v41, %v6106_v56  ;;  %v6107_v44 = vadd.f32 %v6029_v4, %v12481_v19 }
 0x336   :  { %v6031_v55 = vpop.f32.mrf.mxu1  ;;  %v6338_v40 = vpop.f32.mrf.mxu0 }
 0x337   :  { %v12643_v39 = vadd.f32 %v6336_v14, %v6107_v44  ;;  %v6108_v16 = vadd.f32 %v6031_v55, %v12484_v7 }
 0x338   :  { %v6033_v18 = vpop.f32.mrf.mxu1  ;;  %v6340_v58 = vpop.f32.mrf.mxu0 }
 0x339   :  { %v12646_v49 = vadd.f32 %v6338_v40, %v6108_v16  ;;  %v6109_v20 = vadd.f32 %v6033_v18, %v12489_v29 }
 0x33a   :  { %v6037_v46 = vpop.f32.mrf.mxu1  ;;  %v6344_v22 = vpop.f32.mrf.mxu0 }
 0x33b   :  { %v12649_v47 = vadd.f32 %v6340_v58, %v6109_v20  ;;  %v6110_v43 = vadd.f32 %v6037_v46, %v12500_v42 }
 0x33c   :  { %v6039_v48 = vpop.f32.mrf.mxu1  ;;  %v6346_v19 = vpop.f32.mrf.mxu0 }
 0x33d   :  { %v12652_v27 = vadd.f32 %v6344_v22, %v6110_v43  ;;  %v6111_v26 = vadd.f32 %v6039_v48, %v12505_v13 }
 0x33e   :  { %v6041_v45 = vpop.f32.mrf.mxu1  ;;  %v6348_v7 = vpop.f32.mrf.mxu0 }
 0x33f   :  { %v12655_v12 = vadd.f32 %v6346_v19, %v6111_v26  ;;  %v6112_v63 = vadd.f32 %v6041_v45, %v12508_v17 }
 0x340   :  { %v6043_v37 = vpop.f32.mrf.mxu1  ;;  %v6350_v29 = vpop.f32.mrf.mxu0 }
 0x341   :  { %v12658_v32 = vadd.f32 %v6348_v7, %v6112_v63  ;;  %v6113_v25 = vadd.f32 %v6043_v37, %v12513_v36 }
 0x342   :  { %v6047_v35 = vpop.f32.mrf.mxu1  ;;  %v6354_v42 = vpop.f32.mrf.mxu0 }
 0x343   :  { %v12661_v62 = vadd.f32 %v6350_v29, %v6113_v25  ;;  %v6114_v57 = vadd.f32 %v6047_v35, %v12527_v52 }
 0x344   :  { %v6049_v50 = vpop.f32.mrf.mxu1  ;;  %v6356_v13 = vpop.f32.mrf.mxu0 }
 0x345   :  { %v12664_v1 = vadd.f32 %v6354_v42, %v6114_v57  ;;  %v6115_v24 = vadd.f32 %v6049_v50, %v12531_v10 }
 0x346   :  { %v6051_v2 = vpop.f32.mrf.mxu1  ;;  %v6358_v17 = vpop.f32.mrf.mxu0 }
 0x347   :  { %v12667_v28 = vadd.f32 %v6356_v13, %v6115_v24  ;;  %v6116_v59 = vadd.f32 %v6051_v2, %v12534_v21 }
 0x348   :  { %v6053_v51 = vpop.f32.mrf.mxu1  ;;  %v6360_v36 = vpop.f32.mrf.mxu0 }
 0x349   :  { %v12670_v41 = vadd.f32 %v6358_v17, %v6116_v59  ;;  %v6117_v56 = vadd.f32 %v6053_v51, %v12539_v60 }
 0x34a   :  { %v6057_v4 = vpop.f32.mrf.mxu1  ;;  %v6364_v52 = vpop.f32.mrf.mxu0 }
 0x34b   :  { %v12673_v14 = vadd.f32 %v6360_v36, %v6117_v56  ;;  %v6118_v44 = vadd.f32 %v6057_v4, %v12550_v9 }
 0x34c   :  { %v6059_v55 = vpop.f32.mrf.mxu1  ;;  %v6366_v10 = vpop.f32.mrf.mxu0 }
 0x34d   :  { %v12676_v40 = vadd.f32 %v6364_v52, %v6118_v44  ;;  %v6119_v16 = vadd.f32 %v6059_v55, %v12555_v3 }
 0x34e   :  { %v6061_v18 = vpop.f32.mrf.mxu1  ;;  %v6368_v21 = vpop.f32.mrf.mxu0 }
 0x34f   :  { %v12679_v58 = vadd.f32 %v6366_v10, %v6119_v16 }
 0x350   :  { %v6063_v20 = vpop.f32.mrf.mxu1  ;;  %v6370_v46 = vpop.f32.mrf.mxu0 }
 0x352   :  { %v6067_v22 = vpop.f32.mrf.mxu1  ;;  %v6374_v60 = vpop.f32.mrf.mxu0 }
 0x353   :  { %v6122_v43 = vadd.f32 %v6067_v22, %v12568_v8 }
 0x354   :  { %v6069_v48 = vpop.f32.mrf.mxu1  ;;  %v6376_v19 = vpop.f32.mrf.mxu0 }
 0x355   :  { %v12682_v26 = vadd.f32 %v6374_v60, %v6122_v43  ;;  %v6123_v9 = vadd.f32 %v6069_v48, %v12573_v11 }
 0x356   :  { %v6071_v45 = vpop.f32.mrf.mxu1  ;;  %v6378_v7 = vpop.f32.mrf.mxu0 }
 0x357   :  { %v12685_v63 = vadd.f32 %v6376_v19, %v6123_v9  ;;  %v6124_v3 = vadd.f32 %v6071_v45, %v12576_v54 }
 0x358   :  { %v6073_v37 = vpop.f32.mrf.mxu1  ;;  %v6380_v29 = vpop.f32.mrf.mxu0 }
 0x359   :  { %v12688_v25 = vadd.f32 %v6378_v7, %v6124_v3  ;;  %v6125_v35 = vadd.f32 %v6073_v37, %v12581_v61 }
 0x35a   :  { %v6077_v42 = vpop.f32.mrf.mxu1  ;;  %v6384_v8 = vpop.f32.mrf.mxu0 }
 0x35b   :  { %v12691_v57 = vadd.f32 %v6380_v29, %v6125_v35  ;;  %v6126_v50 = vadd.f32 %v6077_v42, %v12592_v6 }
 0x35c   :  { %v6079_v13 = vpop.f32.mrf.mxu1  ;;  %v6386_v11 = vpop.f32.mrf.mxu0 }
 0x35d   :  { %v12694_v24 = vadd.f32 %v6384_v8, %v6126_v50  ;;  %v6127_v2 = vadd.f32 %v6079_v13, %v12597_v53 }
 0x35e   :  { %v6081_v17 = vpop.f32.mrf.mxu1  ;;  %v6388_v54 = vpop.f32.mrf.mxu0 }
 0x35f   :  { %v12697_v59 = vadd.f32 %v6386_v11, %v6127_v2  ;;  %v6128_v51 = vadd.f32 %v6081_v17, %v12600_v34 }
 0x360   :  { %v6083_v36 = vpop.f32.mrf.mxu1  ;;  %v6390_v61 = vpop.f32.mrf.mxu0 }
 0x361   :  { %v12700_v56 = vadd.f32 %v6388_v54, %v6128_v51  ;;  %v6129_v4 = vadd.f32 %v6083_v36, %v12605_v0 }
 0x362   :  { %v6087_v52 = vpop.f32.mrf.mxu1  ;;  %v6394_v6 = vpop.f32.mrf.mxu0 }
 0x363   :  { %v12703_v44 = vadd.f32 %v6390_v61, %v6129_v4  ;;  %v6130_v55 = vadd.f32 %v6087_v52, %v12619_v33 }
 0x364   :  { %v6089_v10 = vpop.f32.mrf.mxu1  ;;  %v6396_v53 = vpop.f32.mrf.mxu0 }
 0x365   :  { %v12706_v16 = vadd.f32 %v6394_v6, %v6130_v55  ;;  %v6131_v18 = vadd.f32 %v6089_v10, %v12623_v31 }
 0x366   :  { %v6091_v21 = vpop.f32.mrf.mxu1  ;;  %v6398_v34 = vpop.f32.mrf.mxu0 }
 0x367   :  { %v12709_v20 = vadd.f32 %v6396_v53, %v6131_v18  ;;  %v6132_v46 = vadd.f32 %v6091_v21, %v12626_v5 }
 0x368   :  { %v6093_v22 = vpop.f32.mrf.mxu1  ;;  %v6400_v0 = vpop.f32.mrf.mxu0 }
 0x369   :  { %v12712_v60 = vadd.f32 %v6398_v34, %v6132_v46  ;;  %v6133_v43 = vadd.f32 %v6093_v22, %v12631_v30 }
 0x36a   :  { %v6097_v48 = vpop.f32.mrf.mxu1  ;;  %v6404_v33 = vpop.f32.mrf.mxu0 }
 0x36b   :  { %v12715_v19 = vadd.f32 %v6400_v0, %v6133_v43  ;;  %v6134_v9 = vadd.f32 %v6097_v48, %v12634_v15 }
 0x36c   :  { %v6099_v45 = vpop.f32.mrf.mxu1  ;;  %v6406_v31 = vpop.f32.mrf.mxu0 }
 0x36d   :  { %v12718_v7 = vadd.f32 %v6404_v33, %v6134_v9  ;;  %v6135_v3 = vadd.f32 %v6099_v45, %v12637_v23 }
 0x36e   :  { %v6101_v37 = vpop.f32.mrf.mxu1  ;;  %v6408_v5 = vpop.f32.mrf.mxu0 }
 0x36f   :  { %v12721_v29 = vadd.f32 %v6406_v31, %v6135_v3 }
 0x370   :  { %v6103_v35 = vpop.f32.mrf.mxu1  ;;  %v6410_v42 = vpop.f32.mrf.mxu0 }
 0x372   :  { %v6640_v8 = vpop.f32.mrf.mxu1  ;;  %v6946_v30 = vpop.f32.mrf.mxu0 }
 0x373   :  { %v6719_v50 = vadd.f32 %v6640_v8, %v12640_v38 }
 0x374   :  { %v6642_v13 = vpop.f32.mrf.mxu1  ;;  %v6948_v11 = vpop.f32.mrf.mxu0 }
 0x375   :  { %v12724_v2 = vadd.f32 %v6946_v30, %v6719_v50  ;;  %v6720_v15 = vadd.f32 %v6642_v13, %v12643_v39 }
 0x376   :  { %v6644_v17 = vpop.f32.mrf.mxu1  ;;  %v6950_v54 = vpop.f32.mrf.mxu0 }
 0x377   :  { %v12727_v51 = vadd.f32 %v6948_v11, %v6720_v15  ;;  %v6721_v23 = vadd.f32 %v6644_v17, %v12646_v49 }
 0x378   :  { %v6646_v36 = vpop.f32.mrf.mxu1  ;;  %v6952_v61 = vpop.f32.mrf.mxu0 }
 0x379   :  { %v12730_v4 = vadd.f32 %v6950_v54, %v6721_v23  ;;  %v6722_v52 = vadd.f32 %v6646_v36, %v12649_v47 }
 0x37a   :  { %v6650_v6 = vpop.f32.mrf.mxu1  ;;  %v6956_v38 = vpop.f32.mrf.mxu0 }
 0x37b   :  { %v12733_v55 = vadd.f32 %v6952_v61, %v6722_v52  ;;  %v6723_v10 = vadd.f32 %v6650_v6, %v12652_v27 }
 0x37c   :  { %v6652_v53 = vpop.f32.mrf.mxu1  ;;  %v6958_v39 = vpop.f32.mrf.mxu0 }
 0x37d   :  { %v12736_v18 = vadd.f32 %v6956_v38, %v6723_v10  ;;  %v6724_v21 = vadd.f32 %v6652_v53, %v12655_v12 }
 0x37e   :  { %v6654_v34 = vpop.f32.mrf.mxu1  ;;  %v6960_v49 = vpop.f32.mrf.mxu0 }
 0x37f   :  { %v12739_v46 = vadd.f32 %v6958_v39, %v6724_v21  ;;  %v6725_v22 = vadd.f32 %v6654_v34, %v12658_v32 }
 0x380   :  { %v6656_v0 = vpop.f32.mrf.mxu1  ;;  %v6962_v47 = vpop.f32.mrf.mxu0 }
 0x381   :  { %v12742_v43 = vadd.f32 %v6960_v49, %v6725_v22  ;;  %v6726_v48 = vadd.f32 %v6656_v0, %v12661_v62 }
 0x382   :  { %v6660_v33 = vpop.f32.mrf.mxu1  ;;  %v6966_v27 = vpop.f32.mrf.mxu0 }
 0x383   :  { %v12745_v9 = vadd.f32 %v6962_v47, %v6726_v48  ;;  %v6727_v45 = vadd.f32 %v6660_v33, %v12664_v1 }
 0x384   :  { %v6662_v31 = vpop.f32.mrf.mxu1  ;;  %v6968_v12 = vpop.f32.mrf.mxu0 }
 0x385   :  { %v12748_v3 = vadd.f32 %v6966_v27, %v6727_v45  ;;  %v6728_v37 = vadd.f32 %v6662_v31, %v12667_v28 }
 0x386   :  { %v6664_v5 = vpop.f32.mrf.mxu1  ;;  %v6970_v32 = vpop.f32.mrf.mxu0 }
 0x387   :  { %v12751_v35 = vadd.f32 %v6968_v12, %v6728_v37  ;;  %v6729_v42 = vadd.f32 %v6664_v5, %v12670_v41 }
 0x388   :  { %v6666_v8 = vpop.f32.mrf.mxu1  ;;  %v6972_v62 = vpop.f32.mrf.mxu0 }
 0x389   :  { %v12754_v30 = vadd.f32 %v6970_v32, %v6729_v42  ;;  %v6730_v50 = vadd.f32 %v6666_v8, %v12673_v14 }
 0x38a   :  { %v6670_v13 = vpop.f32.mrf.mxu1  ;;  %v6976_v1 = vpop.f32.mrf.mxu0 }
 0x38b   :  { %v12757_v11 = vadd.f32 %v6972_v62, %v6730_v50  ;;  %v6731_v15 = vadd.f32 %v6670_v13, %v12676_v40 }
 0x38c   :  { %v6672_v17 = vpop.f32.mrf.mxu1  ;;  %v6978_v28 = vpop.f32.mrf.mxu0 }
 0x38d   :  { %v12760_v54 = vadd.f32 %v6976_v1, %v6731_v15  ;;  %v6732_v23 = vadd.f32 %v6672_v17, %v12679_v58 }
 0x38e   :  { %v6674_v36 = vpop.f32.mrf.mxu1  ;;  %v6980_v41 = vpop.f32.mrf.mxu0 }
 0x38f   :  { %v12763_v61 = vadd.f32 %v6978_v28, %v6732_v23 }
 0x390   :  { %v6676_v52 = vpop.f32.mrf.mxu1  ;;  %v6982_v6 = vpop.f32.mrf.mxu0 }
 0x391   :  { %v7735_v6 = vlaneseq }
 0x392   :  { %v6680_v38 = vpop.f32.mrf.mxu1  ;;  %v6986_v14 = vpop.f32.mrf.mxu0 }
 0x393   :  { %v6735_v10 = vadd.f32 %v6680_v38, %v12682_v26 }
 0x394   :  { %v6682_v53 = vpop.f32.mrf.mxu1  ;;  %v6988_v39 = vpop.f32.mrf.mxu0 }
 0x395   :  { %v12766_v21 = vadd.f32 %v6986_v14, %v6735_v10  ;;  %v6736_v40 = vadd.f32 %v6682_v53, %v12685_v63 }
 0x396   :  { %v6684_v34 = vpop.f32.mrf.mxu1  ;;  %v6990_v49 = vpop.f32.mrf.mxu0 }
 0x397   :  { %v12769_v22 = vadd.f32 %v6988_v39, %v6736_v40  ;;  %v6737_v58 = vadd.f32 %v6684_v34, %v12688_v25  ;;  %v12804_v34 = vshrl.u32 %v7735_v6, 7 }
 0x398   :  { %v6686_v0 = vpop.f32.mrf.mxu1  ;;  %v6992_v47 = vpop.f32.mrf.mxu0 }
 0x399   :  { %v12772_v48 = vadd.f32 %v6990_v49, %v6737_v58  ;;  %v6738_v33 = vadd.f32 %v6686_v0, %v12691_v57 }
 0x39a   :  { %v6690_v27 = vpop.f32.mrf.mxu1  ;;  %v6996_v26 = vpop.f32.mrf.mxu0 }
 0x39b   :  { %v12775_v45 = vadd.f32 %v6992_v47, %v6738_v33  ;;  %v6739_v31 = vadd.f32 %v6690_v27, %v12694_v24  ;;  %v7737_v27 = vsub.s32 0, %v12804_v34 }
 0x39c   :  { %v12778_v12 = vpop.f32.mrf.mxu1  ;;  %v12780_v63 = vpop.f32.mrf.mxu0 }
 0x39d   :  { %v12782_v37 = vadd.f32 %v6996_v26, %v6739_v31 }
 0x39e   :  { %v6694_v5 = vpop.f32.mrf.mxu1  ;;  %v7000_v25 = vpop.f32.mrf.mxu0 }
 0x39f   :  { %v6741_v32 = vadd.f32 %v6694_v5, %v12700_v56  ;;  %v7741_v5 = vsub.s32 1, %v12804_v34 }
 0x3a0   :  { %v6696_v42 = vpop.f32.mrf.mxu1  ;;  %v7002_v8 = vpop.f32.mrf.mxu0 }
 0x3a1   :  { %v12785_v62 = vadd.f32 %v7000_v25, %v6741_v32  ;;  %v6742_v57 = vadd.f32 %v6696_v42, %v12703_v44 }
 0x3a2   :  { %v6700_v50 = vpop.f32.mrf.mxu1  ;;  %v7006_v13 = vpop.f32.mrf.mxu0 }
 0x3a3   :  { %v12788_v1 = vadd.f32 %v7002_v8, %v6742_v57  ;;  %v6743_v24 = vadd.f32 %v6700_v50, %v12706_v16 }
 0x3a4   :  { %v12791_v15 = vpop.f32.mrf.mxu1  ;;  %v12793_v17 = vpop.f32.mrf.mxu0 }
 0x3a5   :  { %v12795_v28 = vadd.f32 %v7006_v13, %v6743_v24 }
 0x3a6   :  { %v6704_v23 = vpop.f32.mrf.mxu1  ;;  %v7010_v56 = vpop.f32.mrf.mxu0 }
 0x3a7   :  { %v6745_v36 = vadd.f32 %v6704_v23, %v12712_v60 }
 0x3a8   :  { %v6706_v41 = vpop.f32.mrf.mxu1  ;;  %v7012_v52 = vpop.f32.mrf.mxu0 }
 0x3a9   :  { %v12798_v44 = vadd.f32 %v7010_v56, %v6745_v36  ;;  %v6746_v38 = vadd.f32 %v6706_v41, %v12715_v19 }
 0x3aa   :  { %v6710_v14 = vpop.f32.mrf.mxu1  ;;  %v7016_v10 = vpop.f32.mrf.mxu0 }
 0x3ab   :  { %v12801_v16 = vadd.f32 %v7012_v52, %v6746_v38  ;;  %v6747_v53 = vadd.f32 %v6710_v14, %v12718_v7  ;;  %v7733_v7 = vld [vmem:[%s13007_s2] sm:$0x3] }
 0x3ac   :  { %v6712_v39 = vpop.f32.mrf.mxu1  ;;  %v7018_v40 = vpop.f32.mrf.mxu0  ;;  %v12817_v32 = vrot.slane %v7733_v7, %v7737_v27  ;;  %v12820_v50 = vrot.slane %v7733_v7, %v7741_v5 }
 0x3ad   :  { %v12806_v49 = vadd.f32 %v7016_v10, %v6747_v53  ;;  %v6748_v60 = vadd.f32 %v6712_v39, %v12721_v29 }
 0x3ae   :  { %v6714_v58 = vpop.f32.mrf.mxu1  ;;  %v7020_v0 = vpop.f32.mrf.mxu0 }
 0x3af   :  { %v12809_v47 = vadd.f32 %v7018_v40, %v6748_v60 }
 0x3b0   :  { %v6716_v33 = vpop.f32.mrf.mxu1  ;;  %v7022_v19 = vpop.f32.mrf.mxu0 }
 0x3b2   :  { %v7252_v26 = vpop.f32.mrf.mxu1  ;;  %v7558_v31 = vpop.f32.mrf.mxu0 }
 0x3b3   :  { %v7331_v25 = vadd.f32 %v7252_v26, %v12724_v2 }
 0x3b4   :  { %v7254_v29 = vpop.f32.mrf.mxu1  ;;  %v7560_v42 = vpop.f32.mrf.mxu0 }
 0x3b5   :  { %v7637_v8 = vadd.f32 %v7558_v31, %v7331_v25  ;;  %v7332_v57 = vadd.f32 %v7254_v29, %v12727_v51 }
 0x3b6   :  { %v7256_v13 = vpop.f32.mrf.mxu1  ;;  %v7562_v24 = vpop.f32.mrf.mxu0 }
 0x3b7   :  { %v7638_v23 = vadd.f32 %v7560_v42, %v7332_v57  ;;  %v7333_v56 = vadd.f32 %v7256_v13, %v12730_v4  ;;  %v7745_v36 = vadd.f32 %v12817_v32, %v7637_v8 }
 0x3b8   :  { %v7258_v41 = vpop.f32.mrf.mxu1  ;;  %v7564_v52 = vpop.f32.mrf.mxu0 }
 0x3b9   :  { %v7639_v6 = vadd.f32 %v7562_v24, %v7333_v56  ;;  %v7334_v2 = vadd.f32 %v7258_v41, %v12733_v55  ;;  %v7746_v38 = vadd.f32 %v12820_v50, %v7638_v23  ;;  %v7777_v40 = vmax.f32 %v7745_v36, 0.0 }
 0x3ba   :  { %v7262_v14 = vpop.f32.mrf.mxu1  ;;  %v7568_v10 = vpop.f32.mrf.mxu0 }
 0x3bb   :  { %v7747_v51 = vadd.f32 %v12817_v32, %v7639_v6  ;;  %v7640_v53 = vadd.f32 %v7564_v52, %v7334_v2  ;;  %v7335_v39 = vadd.f32 %v7262_v14, %v12736_v18  ;;  %v7778_v27 = vmax.f32 %v7746_v38, 0.0 }
 0x3bc   :  { %v7264_v60 = vpop.f32.mrf.mxu1  ;;  %v7570_v58 = vpop.f32.mrf.mxu0 }
 0x3bd   :  { %v7779_v4 = vmax.f32 %v7747_v51, 0.0  ;;  %v7748_v0 = vadd.f32 %v12820_v50, %v7640_v53  ;;  %v7641_v33 = vadd.f32 %v7568_v10, %v7335_v39  ;;  %v7336_v19 = vadd.f32 %v7264_v60, %v12739_v46 }
 0x3be   :  { %v7266_v55 = vpop.f32.mrf.mxu1  ;;  %v7572_v7 = vpop.f32.mrf.mxu0 }
 0x3bf   :  { %v7850_v26 = vmax.f32 %v7777_v40, %v7779_v4  ;;  %v7780_v31 = vmax.f32 %v7748_v0, 0.0  ;;  %v7749_v5 = vadd.f32 %v12817_v32, %v7641_v33  ;;  %v7642_v25 = vadd.f32 %v7570_v58, %v7336_v19 }
 0x3c0   :  { %v7337_v29 = vadd.f32 %v7266_v55, %v12742_v43  ;;  %v7268_v18 = vpop.f32.mrf.mxu1  ;;  %v7574_v42 = vpop.f32.mrf.mxu0 }
 0x3c1   :  { %v7851_v8 = vmax.f32 %v7778_v27, %v7780_v31  ;;  %v7781_v57 = vmax.f32 %v7749_v5, 0.0  ;;  %v7750_v13 = vadd.f32 %v12820_v50, %v7642_v25  ;;  %v7338_v24 = vadd.f32 %v7268_v18, %v12745_v9 }
 0x3c2   :  { %v7643_v23 = vadd.f32 %v7572_v7, %v7337_v29  ;;  %v7272_v46 = vpop.f32.mrf.mxu1  ;;  %v7578_v56 = vpop.f32.mrf.mxu0 }
 0x3c3   :  { %v7859_v36 = vmax.f32 %v7850_v26, %v7781_v57  ;;  %v7782_v41 = vmax.f32 %v7750_v13, 0.0  ;;  %v7644_v52 = vadd.f32 %v7574_v42, %v7338_v24  ;;  %v7339_v6 = vadd.f32 %v7272_v46, %v12748_v3 }
 0x3c4   :  { %v7751_v2 = vadd.f32 %v12817_v32, %v7643_v23  ;;  %v7274_v38 = vpop.f32.mrf.mxu1  ;;  %v7580_v43 = vpop.f32.mrf.mxu0 }
 0x3c5   :  { %v7867_v14 = vrot.slane %v7859_v36, 1  ;;  %v7860_v10 = vmax.f32 %v7851_v8, %v7782_v41  ;;  %v7752_v51 = vadd.f32 %v12820_v50, %v7644_v52  ;;  %v7645_v39 = vadd.f32 %v7578_v56, %v7339_v6 }
 0x3c6   :  { %v7783_v53 = vmax.f32 %v7751_v2, 0.0  ;;  %v7340_v9 = vadd.f32 %v7274_v38, %v12751_v35  ;;  %v7276_v40 = vpop.f32.mrf.mxu1  ;;  %v7582_v60 = vpop.f32.mrf.mxu0  ;;  %v7879_v4 = vrot.slane %v7859_v36, 2 }
 0x3c7   :  { %v7875_v58 = vmax.f32 %v7859_v36, %v7867_v14  ;;  %v7868_v0 = vrot.slane %v7860_v10, 1  ;;  %v7784_v33 = vmax.f32 %v7752_v51, 0.0  ;;  %v7753_v3 = vadd.f32 %v12817_v32, %v7645_v39 }
 0x3c8   :  { %v7973_v19 = vmax.f32 %v7781_v57, %v7783_v53  ;;  %v7646_v27 = vadd.f32 %v7580_v43, %v7340_v9  ;;  %v7341_v55 = vadd.f32 %v7276_v40, %v12754_v30  ;;  %v7278_v7 = vpop.f32.mrf.mxu1  ;;  %v7584_v26 = vpop.f32.mrf.mxu0  ;;  %v7880_v5 = vrot.slane %v7860_v10, 2 }
 0x3c9   :  { %v7876_v31 = vmax.f32 %v7860_v10, %v7868_v0  ;;  %v7974_v25 = vmax.f32 %v7782_v41, %v7784_v33  ;;  %v7342_v29 = vadd.f32 %v7278_v7, %v12757_v11  ;;  %v7785_v35 = vmax.f32 %v7753_v3, 0.0 }
 0x3ca   :  { %v7754_v18 = vadd.f32 %v12820_v50, %v7646_v27  ;;  %v7647_v42 = vadd.f32 %v7582_v60, %v7341_v55  ;;  %v7282_v8 = vpop.f32.mrf.mxu1  ;;  %v7588_v13 = vpop.f32.mrf.mxu0  ;;  %v12842_v24 = vmax.f32 %v7875_v58, %v7879_v4 }
 0x3cb   :  { %v12844_v57 = vmax.f32 %v7876_v31, %v7880_v5  ;;  %v7648_v23 = vadd.f32 %v7584_v26, %v7342_v29  ;;  %v7343_v30 = vadd.f32 %v7282_v8, %v12760_v54  ;;  %v7982_v46 = vmax.f32 %v7973_v19, %v7785_v35 }
 0x3cc   :  { %v7786_v56 = vmax.f32 %v7754_v18, 0.0  ;;  %v7755_v36 = vadd.f32 %v12817_v32, %v7647_v42  ;;  %v7284_v41 = vpop.f32.mrf.mxu1  ;;  %v7590_v52 = vpop.f32.mrf.mxu0  ;;  %v6740_v8 = vadd.f32 %v12778_v12, %v12697_v59 }
 0x3cd   :  { %v7895_v11 = vcombine.low %v12842_v24, %v12844_v57  ;;  %v7938_v6 = vcombine.high %v12842_v24, %v12844_v57  ;;  %v7756_v2 = vadd.f32 %v12820_v50, %v7648_v23  ;;  %v7649_v38 = vadd.f32 %v7588_v13, %v7343_v30 }
 0x3ce   :  { %v7990_v43 = vrot.slane %v7982_v46, 1  ;;  %v7983_v14 = vmax.f32 %v7974_v25, %v7786_v56  ;;  %v7787_v10 = vmax.f32 %v7755_v36, 0.0  ;;  %v7286_v51 = vpop.f32.mrf.mxu1  ;;  %v7592_v54 = vpop.f32.mrf.mxu0  ;;  %v7344_v19 = vadd.f32 %v7284_v41, %v12763_v61 }
 0x3cf   :  { %v7788_v53 = vmax.f32 %v7756_v2, 0.0  ;;  %v7757_v39 = vadd.f32 %v12817_v32, %v7649_v38  ;;  %v8002_v3 = vrot.slane %v7982_v46, 2  ;;  %v9438_v13 = vmov 1983009808  }
 0x3d0   :  { %v7998_v9 = vmax.f32 %v7982_v46, %v7990_v43  ;;  %v7991_v40 = vrot.slane %v7983_v14, 1  ;;  %v8091_v60 = vmax.f32 %v7785_v35, %v7787_v10  ;;  %v7288_v58 = vpop.f32.mrf.mxu1  ;;  %v7594_v4 = vpop.f32.mrf.mxu0  ;;  %v8003_v55 = vrot.slane %v7983_v14, 2 }
 0x3d1   :  { %v8092_v0 = vmax.f32 %v7786_v56, %v7788_v53  ;;  %v7789_v33 = vmax.f32 %v7757_v39, 0.0  ;;  %v7650_v5 = vadd.f32 %v7590_v52, %v7344_v19  ;;  %v7897_v61 = vunpack.c.l.s4 %v9438_v13 }
 0x3d2   :  { %v7999_v27 = vmax.f32 %v7983_v14, %v7991_v40  ;;  %v7292_v7 = vpop.f32.mrf.mxu1  ;;  %v7598_v26 = vpop.f32.mrf.mxu0  ;;  %v12856_v29 = vmax.f32 %v7998_v9, %v8002_v3  ;;  %v7046_v54 = vadd.f32 %v12780_v63, %v6740_v8 }
 0x3d3   :  { %v8100_v31 = vmax.f32 %v8091_v60, %v7789_v33  ;;  %v7347_v25 = vadd.f32 %v7292_v7, %v12766_v21  ;;  %v7758_v23 = vadd.f32 %v12820_v50, %v7650_v5  ;;  %v7898_v53 = vunpack.c.0.s8 %v7897_v61 }
 0x3d4   :  { %v12858_v18 = vmax.f32 %v7999_v27, %v8003_v55  ;;  %v7294_v35 = vpop.f32.mrf.mxu1  ;;  %v7600_v42 = vpop.f32.mrf.mxu0 }
 0x3d5   :  { %v7653_v30 = vadd.f32 %v7598_v26, %v7347_v25  ;;  %v8108_v56 = vrot.slane %v8100_v31, 1  ;;  %v7348_v36 = vadd.f32 %v7294_v35, %v12769_v22  ;;  %v7790_v2 = vmax.f32 %v7758_v23, 0.0 }
 0x3d6   :  { %v8018_v46 = vcombine.low %v12856_v29, %v12858_v18  ;;  %v8056_v21 = vcombine.high %v12856_v29, %v12858_v18  ;;  %v7296_v41 = vpop.f32.mrf.mxu1  ;;  %v7602_v52 = vpop.f32.mrf.mxu0  ;;  %v8120_v60 = vrot.slane %v8100_v31, 2  ;;  %v6744_v23 = vadd.f32 %v12791_v15, %v12709_v20 }
 0x3d7   :  { %v7349_v38 = vadd.f32 %v7296_v41, %v12772_v48  ;;  %v7761_v59 = vadd.f32 %v12817_v32, %v7653_v30  ;;  %v7654_v12 = vadd.f32 %v7600_v42, %v7348_v36  ;;  %v8101_v10 = vmax.f32 %v8092_v0, %v7790_v2 }
 0x3d8   :  { %v7298_v43 = vpop.f32.mrf.mxu1  ;;  %v7604_v14 = vpop.f32.mrf.mxu0  ;;  %v8116_v39 = vmax.f32 %v8100_v31, %v8108_v56 }
 0x3d9   :  { %v7655_v51 = vadd.f32 %v7602_v52, %v7349_v38  ;;  %v7350_v9 = vadd.f32 %v7298_v43, %v12775_v45  ;;  %v8109_v58 = vrot.slane %v8101_v10, 1  ;;  %v8121_v33 = vrot.slane %v8101_v10, 2 }
 0x3da   :  { %v7302_v40 = vpop.f32.mrf.mxu1  ;;  %v7608_v22 = vpop.f32.mrf.mxu0  ;;  %v7793_v19 = vmax.f32 %v7761_v59, 0.0  ;;  %v7762_v3 = vadd.f32 %v12820_v50, %v7654_v12  ;;  %v12876_v45 = vsub.s32 %v7898_v53, %v12804_v34  ;;  %v12878_v31 = vmax.f32 %v8116_v39, %v8120_v60 }
 0x3db   :  { %v7763_v4 = vadd.f32 %v12817_v32, %v7655_v51  ;;  %v7351_v48 = vadd.f32 %v7302_v40, %v12782_v37  ;;  %v7656_v0 = vadd.f32 %v7604_v14, %v7350_v9  ;;  %v8117_v63 = vmax.f32 %v8101_v10, %v8109_v58 }
 0x3dc   :  { %v7304_v27 = vpop.f32.mrf.mxu1  ;;  %v7610_v55 = vpop.f32.mrf.mxu0  ;;  %v7794_v30 = vmax.f32 %v7762_v3, 0.0 }
 0x3dd   :  { %v7795_v7 = vmax.f32 %v7763_v4, 0.0  ;;  %v7657_v26 = vadd.f32 %v7608_v22, %v7351_v48  ;;  %v7352_v5 = vadd.f32 %v7304_v27, %v7046_v54  ;;  %v7764_v25 = vadd.f32 %v12820_v50, %v7656_v0 }
 0x3de   :  { %v7306_v35 = vpop.f32.mrf.mxu1  ;;  %v7612_v37 = vpop.f32.mrf.mxu0  ;;  %v12881_v42 = vmax.f32 %v8117_v63, %v8121_v33  ;;  %v12900_v22 = vrot.slane %v7895_v11, %v12876_v45 }
 0x3df   :  { %v7852_v8 = vmax.f32 %v7793_v19, %v7795_v7  ;;  %v7765_v13 = vadd.f32 %v12817_v32, %v7657_v26  ;;  %v7658_v61 = vadd.f32 %v7610_v55, %v7352_v5  ;;  %v7796_v56 = vmax.f32 %v7764_v25, 0.0 }
 0x3e0   :  { %v7353_v34 = vadd.f32 %v7306_v35, %v12785_v62  ;;  %v7308_v36 = vpop.f32.mrf.mxu1  ;;  %v7614_v41 = vpop.f32.mrf.mxu0  ;;  %v8136_v52 = vcombine.low %v12878_v31, %v12881_v42  ;;  %v8174_v2 = vcombine.high %v12878_v31, %v12881_v42  ;;  %v7050_v62 = vadd.f32 %v12793_v17, %v6744_v23 }
 0x3e1   :  { %v7797_v38 = vmax.f32 %v7765_v13, 0.0  ;;  %v7766_v59 = vadd.f32 %v12820_v50, %v7658_v61  ;;  %v7853_v12 = vmax.f32 %v7794_v30, %v7796_v56  ;;  %v7354_v14 = vadd.f32 %v7308_v36, %v12788_v1 }
 0x3e2   :  { %v7659_v43 = vadd.f32 %v7612_v37, %v7353_v34  ;;  %v7312_v20 = vpop.f32.mrf.mxu1  ;;  %v7618_v15 = vpop.f32.mrf.mxu0 }
 0x3e3   :  { %v7861_v10 = vmax.f32 %v7852_v8, %v7797_v38  ;;  %v7798_v51 = vmax.f32 %v7766_v59, 0.0  ;;  %v7660_v53 = vadd.f32 %v7614_v41, %v7354_v14  ;;  %v7355_v39 = vadd.f32 %v7312_v20, %v12795_v28 }
 0x3e4   :  { %v7767_v54 = vadd.f32 %v12817_v32, %v7659_v43  ;;  %v7314_v9 = vpop.f32.mrf.mxu1  ;;  %v7620_v40 = vpop.f32.mrf.mxu0  ;;  %v7945_v59 = vrot.slane %v7938_v6, %v12876_v45 }
 0x3e5   :  { %v7869_v1 = vrot.slane %v7861_v10, 1  ;;  %v7862_v60 = vmax.f32 %v7853_v12, %v7798_v51  ;;  %v7768_v4 = vadd.f32 %v12820_v50, %v7660_v53  ;;  %v7661_v48 = vadd.f32 %v7618_v15, %v7355_v39 }
 0x3e6   :  { %v7799_v58 = vmax.f32 %v7767_v54, 0.0  ;;  %v7356_v17 = vadd.f32 %v7314_v9, %v7050_v62  ;;  %v7316_v33 = vpop.f32.mrf.mxu1  ;;  %v7622_v19 = vpop.f32.mrf.mxu0  ;;  %v7881_v0 = vrot.slane %v7861_v10, 2  ;;  %v7926_v62 = vcombine.high %v12900_v22, %v12900_v22 }
 0x3e7   :  { %v7877_v3 = vmax.f32 %v7861_v10, %v7869_v1  ;;  %v7870_v28 = vrot.slane %v7862_v60, 1  ;;  %v7357_v27 = vadd.f32 %v7316_v33, %v12798_v44  ;;  %v7800_v63 = vmax.f32 %v7768_v4, 0.0 }
 0x3e8   :  { %v7975_v55 = vmax.f32 %v7797_v38, %v7799_v58  ;;  %v7769_v11 = vadd.f32 %v12817_v32, %v7661_v48  ;;  %v7662_v7 = vadd.f32 %v7620_v40, %v7356_v17  ;;  %v7318_v26 = vpop.f32.mrf.mxu1  ;;  %v7624_v5 = vpop.f32.mrf.mxu0  ;;  %v7882_v35 = vrot.slane %v7862_v60, 2 }
 0x3e9   :  { %v7878_v25 = vmax.f32 %v7862_v60, %v7870_v28  ;;  %v7663_v37 = vadd.f32 %v7622_v19, %v7357_v27  ;;  %v7358_v8 = vadd.f32 %v7318_v26, %v12801_v16  ;;  %v7889_v13 = vmax.f32 %v7877_v3, %v7881_v0 }
 0x3ea   :  { %v7976_v61 = vmax.f32 %v7798_v51, %v7800_v63  ;;  %v7801_v23 = vmax.f32 %v7769_v11, 0.0  ;;  %v7770_v44 = vadd.f32 %v12820_v50, %v7662_v7  ;;  %v7322_v30 = vpop.f32.mrf.mxu1  ;;  %v7628_v56 = vpop.f32.mrf.mxu0 }
 0x3eb   :  { %v7890_v34 = vmax.f32 %v7878_v25, %v7882_v35  ;;  %v7771_v36 = vadd.f32 %v12817_v32, %v7663_v37  ;;  %v7664_v41 = vadd.f32 %v7624_v5, %v7358_v8  ;;  %v7359_v38 = vadd.f32 %v7322_v30, %v12806_v49 }
 0x3ec   :  { %v7984_v16 = vmax.f32 %v7975_v55, %v7801_v23  ;;  %v7802_v12 = vmax.f32 %v7770_v44, 0.0  ;;  %v7324_v43 = vpop.f32.mrf.mxu1  ;;  %v7630_v14 = vpop.f32.mrf.mxu0 }
 0x3ed   :  { %v7903_v20 = vcombine.low %v7889_v13, %v7890_v34  ;;  %v7946_v15 = vcombine.high %v7889_v13, %v7890_v34  ;;  %v7803_v10 = vmax.f32 %v7771_v36, 0.0  ;;  %v7772_v51 = vadd.f32 %v12820_v50, %v7664_v41 }
 0x3ee   :  { %v7992_v54 = vrot.slane %v7984_v16, 1  ;;  %v7985_v49 = vmax.f32 %v7976_v61, %v7802_v12  ;;  %v7665_v53 = vadd.f32 %v7628_v56, %v7359_v38  ;;  %v7326_v39 = vpop.f32.mrf.mxu1  ;;  %v7632_v9 = vpop.f32.mrf.mxu0  ;;  %v8004_v60 = vrot.slane %v7984_v16, 2 }
 0x3ef   :  { %v7910_v24 = vrot.slane %v7903_v20, %v12876_v45  ;;  %v7953_v57 = vrot.slane %v7946_v15, %v12876_v45  ;;  %v8093_v6 = vmax.f32 %v7801_v23, %v7803_v10  ;;  %v7804_v40 = vmax.f32 %v7772_v51, 0.0 }
 0x3f0   :  { %v8000_v1 = vmax.f32 %v7984_v16, %v7992_v54  ;;  %v7993_v58 = vrot.slane %v7985_v49, 1  ;;  %v7773_v4 = vadd.f32 %v12817_v32, %v7665_v53  ;;  %v7328_v48 = vpop.f32.mrf.mxu1  ;;  %v7634_v17 = vpop.f32.mrf.mxu0  ;;  %v8005_v27 = vrot.slane %v7985_v49, 2 }
 0x3f1   :  { %v7915_v33 = vrot.slane %v7910_v24, 7  ;;  %v7927_v19 = vcombine.high %v7910_v24, %v7910_v24  ;;  %v7956_v3 = vrot.slane %v7953_v57, 7  ;;  %v8094_v0 = vmax.f32 %v7802_v12, %v7804_v40 }
 0x3f2   :  { %v8001_v28 = vmax.f32 %v7985_v49, %v7993_v58  ;;  %v7805_v55 = vmax.f32 %v7773_v4, 0.0  ;;  %v7360_v63 = vadd.f32 %v7324_v43, %v12809_v47  ;;  %v8012_v5 = vmax.f32 %v8000_v1, %v8004_v60 }
 0x3f3   :  { %v7917_v11 = vsel %vm7916_vm1, %v7915_v33, %v12900_v22  ;;  %v7930_v7 = vrot.slane %v7927_v19, 7  ;;  %v7957_v26 = vsel %vm7916_vm1, %v7956_v3, %v7945_v59  ;;  %v8025_v36 = vrot.slane %v8018_v46, %v12876_v45 }
 0x3f4   :  { %v7919_v32 = vsel %vm7918_vm2, %v7915_v33, %v7917_v11  ;;  %v7958_v25 = vsel %vm7918_vm2, %v7956_v3, %v7957_v26  ;;  %v8013_v35 = vmax.f32 %v8001_v28, %v8005_v27  ;;  %v8102_v37 = vmax.f32 %v8093_v6, %v7805_v55 }
 0x3f5   :  { %v7921_v8 = vsel %vm7920_vm3, %v7915_v33, %v7919_v32  ;;  %v7931_v13 = vsel %vm7916_vm1, %v7930_v7, %v7926_v62  ;;  %v7959_v61 = vsel %vm7920_vm3, %v7956_v3, %v7958_v25  ;;  %v7666_v47 = vadd.f32 %v7630_v14, %v7360_v63 }
 0x3f6   :  { %v7923_v23 = vsel %vm7922_vm4, %v7915_v33, %v7921_v8  ;;  %v7932_v22 = vsel %vm7918_vm2, %v7930_v7, %v7931_v13  ;;  %v7960_v44 = vsel %vm7922_vm4, %v7956_v3, %v7959_v61  ;;  %v8026_v30 = vcombine.low %v8012_v5, %v8013_v35 }
 0x3f7   :  { %7925 = vst [vmem:[%s13008_s3] sm:$0xf] %v7923_v23  ;;  %v7933_v56 = vsel %vm7920_vm3, %v7930_v7, %v7932_v22  ;;  %9117 = vst [vmem:[%s13008_s3 + $0x8] sm:$0xf] %v7960_v44  ;;  %v8064_v34 = vcombine.high %v8012_v5, %v8013_v35  ;;  %v7774_v59 = vadd.f32 %v12820_v50, %v7666_v47  ;;  %v8110_v12 = vrot.slane %v8102_v37, 1 }
 0x3f8   :  { %v7934_v41 = vsel %vm7922_vm4, %v7930_v7, %v7933_v56  ;;  %v8033_v38 = vrot.slane %v8026_v30, %v12876_v45  ;;  %v8063_v46 = vrot.slane %v8056_v21, %v12876_v45  ;;  %v8044_v10 = vcombine.high %v8025_v36, %v8025_v36 }
 0x3f9   :  { %9116 = vst [vmem:[%s13008_s3 + $0x4] sm:$0xf] %v7934_v41  ;;  %v8071_v16 = vrot.slane %v8064_v34, %v12876_v45  ;;  %v7806_v20 = vmax.f32 %v7774_v59, 0.0  ;;  %v8118_v53 = vmax.f32 %v8102_v37, %v8110_v12  ;;  %v8122_v6 = vrot.slane %v8102_v37, 2 }
 0x3fa   :  { %v8036_v43 = vrot.slane %v8033_v38, 7  ;;  %v8045_v14 = vcombine.high %v8033_v38, %v8033_v38  ;;  %v8143_v3 = vrot.slane %v8136_v52, %v12876_v45  ;;  %v8181_v27 = vrot.slane %v8174_v2, %v12876_v45 }
 0x3fb   :  { %v8074_v15 = vrot.slane %v8071_v16, 7  ;;  %v8103_v62 = vmax.f32 %v8094_v0, %v7806_v20  ;;  %v8130_v48 = vmax.f32 %v8118_v53, %v8122_v6 }
 0x3fc   :  { %v8037_v51 = vsel %vm7916_vm1, %v8036_v43, %v8025_v36  ;;  %v8048_v50 = vrot.slane %v8045_v14, 7  ;;  %v8162_v7 = vcombine.high %v8143_v3, %v8143_v3 }
 0x3fd   :  { %v8038_v54 = vsel %vm7918_vm2, %v8036_v43, %v8037_v51  ;;  %v8075_v49 = vsel %vm7916_vm1, %v8074_v15, %v8063_v46  ;;  %v8111_v57 = vrot.slane %v8103_v62, 1  ;;  %v8123_v58 = vrot.slane %v8103_v62, 2 }
 0x3fe   :  { %v8039_v39 = vsel %vm7920_vm3, %v8036_v43, %v8038_v54  ;;  %v8049_v9 = vsel %vm7916_vm1, %v8048_v50, %v8044_v10  ;;  %v8076_v24 = vsel %vm7918_vm2, %v8074_v15, %v8075_v49 }
 0x3ff   :  { %v8040_v29 = vsel %vm7922_vm4, %v8036_v43, %v8039_v39  ;;  %v8050_v18 = vsel %vm7918_vm2, %v8048_v50, %v8049_v9  ;;  %v8077_v21 = vsel %vm7920_vm3, %v8074_v15, %v8076_v24  ;;  %v8119_v60 = vmax.f32 %v8103_v62, %v8111_v57 }
 0x400   :  { %9118 = vst [vmem:[%s13008_s3 + $0xc] sm:$0xf] %v8040_v29  ;;  %v8051_v40 = vsel %vm7920_vm3, %v8048_v50, %v8050_v18  ;;  %v8078_v1 = vsel %vm7922_vm4, %v8074_v15, %v8077_v21 }
 0x401   :  { %v8052_v4 = vsel %vm7922_vm4, %v8048_v50, %v8051_v40  ;;  %9120 = vst [vmem:[%s13008_s3 + $0x14] sm:$0xf] %v8078_v1  ;;  %v8131_v17 = vmax.f32 %v8119_v60, %v8123_v58 }
 0x402   :  { %9119 = vst [vmem:[%s13008_s3 + $0x10] sm:$0xf] %v8052_v4 }
 0x403   :  { %v8144_v33 = vcombine.low %v8130_v48, %v8131_v17  ;;  %v8182_v19 = vcombine.high %v8130_v48, %v8131_v17 }
 0x405   :  { %v8151_v0 = vrot.slane %v8144_v33, %v12876_v45  ;;  %v8189_v28 = vrot.slane %v8182_v19, %v12876_v45 }
 0x407   :  { %v8154_v55 = vrot.slane %v8151_v0, 7  ;;  %v8163_v63 = vcombine.high %v8151_v0, %v8151_v0  ;;  %v8192_v11 = vrot.slane %v8189_v28, 7 }
 0x409   :  { %v8155_v26 = vsel %vm7916_vm1, %v8154_v55, %v8143_v3  ;;  %v8166_v5 = vrot.slane %v8163_v63, 7  ;;  %v8193_v32 = vsel %vm7916_vm1, %v8192_v11, %v8181_v27 }
 0x40a   :  { %v8156_v52 = vsel %vm7918_vm2, %v8154_v55, %v8155_v26  ;;  %v8194_v25 = vsel %vm7918_vm2, %v8192_v11, %v8193_v32 }
 0x40b   :  { %v8157_v35 = vsel %vm7920_vm3, %v8154_v55, %v8156_v52  ;;  %v8167_v37 = vsel %vm7916_vm1, %v8166_v5, %v8162_v7  ;;  %v8195_v31 = vsel %vm7920_vm3, %v8192_v11, %v8194_v25 }
 0x40c   :  { %v8158_v45 = vsel %vm7922_vm4, %v8154_v55, %v8157_v35  ;;  %v8168_v42 = vsel %vm7918_vm2, %v8166_v5, %v8167_v37  ;;  %v8196_v2 = vsel %vm7922_vm4, %v8192_v11, %v8195_v31 }
 0x40d   :  { %9121 = vst [vmem:[%s13008_s3 + $0x18] sm:$0xf] %v8158_v45  ;;  %v8169_v8 = vsel %vm7920_vm3, %v8166_v5, %v8168_v42  ;;  %9123 = vst [vmem:[%s13008_s3 + $0x20] sm:$0xf] %v8196_v2 }
 0x40e   :  { %v8170_v13 = vsel %vm7922_vm4, %v8166_v5, %v8169_v8 }
 0x40f   :  { %9122 = vst [vmem:[%s13008_s3 + $0x1c] sm:$0xf] %v8170_v13 }

</bundles_post_ra>
